<compile_context>
chip_gen: v7x
topology: tpu7x:2x2x1
jax: 0.10.0
libtpu: 0.0.40
codegen_flags: <defaults>
</compile_context>

<pallas_src>
import jax
import jax.numpy as jnp
import numpy as np
from jax.experimental import pallas as pl
from jax.experimental.pallas import tpu as pltpu


# -----------------------------------------------------------------------------
# Shared step math: used verbatim by the Pallas kernel and by a pure-JAX mirror
# (so the test can isolate the Pallas lowering from the precision choices).
# -----------------------------------------------------------------------------
def _lstm_gates(pre, c_prev):
    R = c_prev.shape[-1]
    # One full-width EUP pass over (B, 4R), then lane slices; tanh only on g.
    # PyTorch LSTMCell gate order: i, f, g, o.
    sig = jax.nn.sigmoid(pre)
    i = sig[:, 0 * R:1 * R]
    f = sig[:, 1 * R:2 * R]
    o = sig[:, 3 * R:4 * R]
    g = jnp.tanh(pre[:, 2 * R:3 * R])
    c = f * c_prev + i * g
    h = o * jnp.tanh(c)
    return h, c


def _nse_step(gx_t, hr, cr, hw, cw, M, wr_hh, w_write, bw, lhs_scratch=None):
    """One NSE time step. All matmul operands bf16 (single MXU pass), f32 accumulate."""
    R = hr.shape[-1]
    mm_dtype = w_write.dtype

    # ---- read LSTM: x-projection + fused bias precomputed (gx_t); only the
    #      recurrent matmul sits on the serial critical path. ----
    pre_r = gx_t + jnp.dot(hr.astype(mm_dtype), wr_hh,
                           preferred_element_type=jnp.float32)
    hr, cr = _lstm_gates(pre_r, cr)

    # ---- attention over memory: tiny contractions stay off the MXU (VPU multiply
    #      + XLU reduces, all f32, no transpose of M, no MXU push latency). ----
    sim = jnp.sum(hr[:, None, :] * M, axis=-1)                       # (B, L)
    p = jnp.exp(sim - jnp.max(sim, axis=-1, keepdims=True))
    z = p / jnp.sum(p, axis=-1, keepdims=True)                       # exact normalize
    m_read = jnp.sum(z[:, :, None] * M, axis=1)                      # (B, R)

    # ---- write LSTM with the compose Linear folded in (output_dropout == identity):
    #      pre_w = hr@(wc_h@ww_ih) + m@(wc_m@ww_ih) + hw@ww_hh + (bc@ww_ih + bw)
    #      K-stacked into a single (B,3R)@(3R,4R) MXU push. ----
    if lhs_scratch is None:
        lhs = jnp.concatenate([hr, m_read, hw], axis=1)              # pure-JAX path
    else:
        lhs_scratch[:, 0 * R:1 * R] = hr                              # kernel path:
        lhs_scratch[:, 1 * R:2 * R] = m_read                          # stage via VMEM
        lhs_scratch[:, 2 * R:3 * R] = hw                              # (no lane concat)
        lhs = lhs_scratch[...]
    pre_w = jnp.dot(lhs.astype(mm_dtype), w_write,
                    preferred_element_type=jnp.float32) + bw
    hw, cw = _lstm_gates(pre_w, cw)

    # ---- memory update: M_new = (1 - z) * (M + hw)
    #      (exactly what the PyTorch addcmul sequence computes). ----
    M = (1.0 - z)[:, :, None] * (M + hw[:, None, :])
    return hr, cr, hw, cw, M


# -----------------------------------------------------------------------------
# Pallas kernel: whole recurrence in one grid step, state resident in vregs/VMEM.
# -----------------------------------------------------------------------------
def nse_kernel(gx_ref, m0_ref, h0_ref, wr_hh_ref, w_write_ref, bw_ref,
               out_ref, hfin_ref, m_out_ref, lhs_scratch):
    T = gx_ref.shape[0]

    # Loop-invariant operands loaded once (already bf16 for the matmul weights).
    wr_hh = wr_hh_ref[...]
    w_write = w_write_ref[...]
    bw = bw_ref[...]                      # pre-broadcast to (B, 4R) in the wrapper

    hr = h0_ref[0]
    cr = h0_ref[1]
    hw = h0_ref[2]
    cw = h0_ref[3]
    M = m0_ref[...]                       # (B, L, R)

    # Fully unrolled time loop (T small & static); all state stays resident.
    # TODO(synk): switch to lax.fori_loop(..., unroll=True) if T grows and the
    #             bundle dump shows vreg spills from the full unroll.
    for t in range(T):
        hr, cr, hw, cw, M = _nse_step(gx_ref[t], hr, cr, hw, cw, M,
                                      wr_hh, w_write, bw, lhs_scratch=lhs_scratch)
        out_ref[t] = hw

    hfin_ref[0] = hr
    hfin_ref[1] = cr
    hfin_ref[2] = hw
    hfin_ref[3] = cw
    m_out_ref[...] = M


# -----------------------------------------------------------------------------
# Wrapper: hoist / fold / pack everything that does not need to be on the serial
# path, then make one pallas_call.
# -----------------------------------------------------------------------------
def prepare_kernel_operands(emb_utts, hidden, M, params, matmul_dtype=jnp.bfloat16):
    T, B, R = emb_utts.shape
    (hr0, cr0), (hw0, cw0) = hidden
    wr_ih, wr_hh, br, wc, bc, ww_ih, ww_hh, bw = params
    hi = jax.lax.Precision.HIGHEST        # one-time wrapper matmuls: off the hot path

    # Hoist the read-LSTM input projection (+ fused bias) out of the recurrence.
    gx = jnp.einsum('tbr,rg->tbg', emb_utts, wr_ih, precision=hi) + br     # (T, B, 4R)

    # Fold the compose Linear into the write-LSTM input projection
    # (valid only because output_dropout is identity in eval mode).
    wc_h, wc_m = wc[:R], wc[R:]
    w1 = jnp.dot(wc_h, ww_ih, precision=hi)                                # (R, 4R)
    w2 = jnp.dot(wc_m, ww_ih, precision=hi)                                # (R, 4R)
    bw_fold = jnp.dot(bc, ww_ih, precision=hi) + bw                        # (1, 4R)

    # K-stack so the write LSTM is a single MXU push per step.
    w_write = jnp.concatenate([w1, w2, ww_hh], axis=0).astype(matmul_dtype)  # (3R, 4R)

    # Hoist the bias broadcast out of the unrolled loop.
    bw_full = jnp.broadcast_to(bw_fold, (B, 4 * R))                        # (B, 4R)

    # Pack the four initial states into one input.
    h0 = jnp.stack([hr0, cr0, hw0, cw0], axis=0)                           # (4, B, R)

    return gx, M, h0, wr_hh.astype(matmul_dtype), w_write, bw_full


def nse_forward(emb_utts, hidden, M, params):
    T, B, R = emb_utts.shape
    L = M.shape[1]
    gx, M0, h0, wr_hh_b, w_write_b, bw_full = prepare_kernel_operands(
        emb_utts, hidden, M, params)

    def full(shape):
        n = len(shape)
        return pl.BlockSpec(shape, lambda i, n=n: (0,) * n)

    grid_spec = pltpu.PrefetchScalarGridSpec(
        num_scalar_prefetch=0,
        grid=(1,),                          # whole recurrence in one kernel invocation
        in_specs=[
            full((T, B, 4 * R)),            # hoisted input projection (f32)
            full((B, L, R)),                # M init (f32)
            full((4, B, R)),                # packed initial states (f32)
            full((R, 4 * R)),               # read-LSTM W_hh (bf16)
            full((3 * R, 4 * R)),           # folded + K-stacked write weights (bf16)
            full((B, 4 * R)),               # folded write bias, pre-broadcast (f32)
        ],
        out_specs=[
            full((T, B, R)),                # stacked outputs
            full((4, B, R)),                # packed final states
            full((B, L, R)),                # final M
        ],
        scratch_shapes=[pltpu.VMEM((B, 3 * R), jnp.float32)],   # [hr | m | hw] staging
    )

    out_shape = [
        jax.ShapeDtypeStruct((T, B, R), jnp.float32),
        jax.ShapeDtypeStruct((4, B, R), jnp.float32),
        jax.ShapeDtypeStruct((B, L, R), jnp.float32),
    ]

    outputs, hfin, M_out = pl.pallas_call(
        nse_kernel,
        grid_spec=grid_spec,
        out_shape=out_shape,
        compiler_params=pltpu.CompilerParams(
            dimension_semantics=("arbitrary",)),
    )(gx, M0, h0, wr_hh_b, w_write_b, bw_full)

    return outputs, ((hfin[0], hfin[1]), (hfin[2], hfin[3])), M_out


# -----------------------------------------------------------------------------
# References for verification.
# -----------------------------------------------------------------------------
def nse_reference(emb_utts, hidden, M, params):
    """Pure-JAX, full-f32 (HIGHEST matmul precision) mirror of the PyTorch forward."""
    (hr, cr), (hw, cw) = hidden
    wr_ih, wr_hh, br, wc, bc, ww_ih, ww_hh, bw = params
    R = hr.shape[-1]
    hi = jax.lax.Precision.HIGHEST

    def lstm_cell(x, h, c, w_ih, w_hh, b):
        g = jnp.dot(x, w_ih, precision=hi) + jnp.dot(h, w_hh, precision=hi) + b
        i = jax.nn.sigmoid(g[:, 0 * R:1 * R])
        f = jax.nn.sigmoid(g[:, 1 * R:2 * R])
        gg = jnp.tanh(g[:, 2 * R:3 * R])
        o = jax.nn.sigmoid(g[:, 3 * R:4 * R])
        c_new = f * c + i * gg
        h_new = o * jnp.tanh(c_new)
        return h_new, c_new

    outputs = []
    for t in range(emb_utts.shape[0]):
        w = emb_utts[t]
        hr, cr = lstm_cell(w, hr, cr, wr_ih, wr_hh, br)
        sim = jnp.einsum('br,blr->bl', hr, M, precision=hi)
        z = jax.nn.softmax(sim, axis=-1)
        m = jnp.einsum('bl,blr->br', z, M, precision=hi)
        comp = jnp.dot(jnp.concatenate([hr, m], axis=1), wc, precision=hi) + bc
        hw, cw = lstm_cell(comp, hw, cw, ww_ih, ww_hh, bw)
        M = (1.0 - z[:, :, None]) * (M + hw[:, None, :])
        outputs.append(hw)
    return jnp.stack(outputs), ((hr, cr), (hw, cw)), M


def nse_reference_kernel_math(emb_utts, hidden, M, params):
    """Pure-JAX loop over the exact math the kernel runs (same folded bf16 weights,
    same op structure).  Isolates the Pallas/Mosaic lowering for a tighter check."""
    gx, M0, h0, wr_hh_b, w_write_b, bw_full = prepare_kernel_operands(
        emb_utts, hidden, M, params)
    hr, cr, hw, cw = h0[0], h0[1], h0[2], h0[3]
    Mc = M0
    outs = []
    for t in range(gx.shape[0]):
        hr, cr, hw, cw, Mc = _nse_step(gx[t], hr, cr, hw, cw, Mc,
                                       wr_hh_b, w_write_b, bw_full)
        outs.append(hw)
    return jnp.stack(outs), ((hr, cr), (hw, cw)), Mc


# -----------------------------------------------------------------------------
# Self-test.
# -----------------------------------------------------------------------------
if __name__ == "__main__":
    T, B, R, L = 8, 2, 32, 8      # seq, batch, rnn_size, memory slots

    key = jax.random.PRNGKey(0)
    keys = jax.random.split(key, 12)
    k = 1.0 / np.sqrt(R)

    def u(kk, shape):
        return jax.random.uniform(kk, shape, jnp.float32, -k, k)

    # Inputs
    emb_utts = jax.random.normal(keys[0], (T, B, R), jnp.float32)
    M_init = jax.random.normal(keys[1], (B, L, R), jnp.float32)
    zeros = jnp.zeros((B, R), jnp.float32)
    hidden = ((zeros, zeros), (zeros, zeros))   # make_init_hidden

    # Parameters (deterministic, PyTorch-like uniform init).
    # LSTM weights stored transposed: (in_features, 4R); biases b_ih + b_hh fused.
    wr_ih = u(keys[2], (R, 4 * R))
    wr_hh = u(keys[3], (R, 4 * R))
    br = u(keys[4], (1, 4 * R)) + u(keys[5], (1, 4 * R))
    wc = u(keys[6], (2 * R, R))          # compose Linear weight, transposed
    bc = u(keys[7], (1, R))
    ww_ih = u(keys[8], (R, 4 * R))
    ww_hh = u(keys[9], (R, 4 * R))
    bw = u(keys[10], (1, 4 * R)) + u(keys[11], (1, 4 * R))
    params = (wr_ih, wr_hh, br, wc, bc, ww_ih, ww_hh, bw)

    fwd = jax.jit(nse_forward)
    outputs, ((hr, cr), (hw, cw)), M_out = fwd(emb_utts, hidden, M_init, params)
    jax.block_until_ready((outputs, hr, cr, hw, cw, M_out))

    got = {"outputs": outputs, "hr": hr, "cr": cr, "hw": hw, "cw": cw, "M": M_out}

    def check(reference_fn, rtol, atol, tag):
        r_out, ((rhr, rcr), (rhw, rcw)), r_M = jax.jit(reference_fn)(
            emb_utts, hidden, M_init, params)
        want = {"outputs": r_out, "hr": rhr, "cr": rcr, "hw": rhw, "cw": rcw, "M": r_M}
        for name in got:
            np.testing.assert_allclose(np.asarray(got[name]), np.asarray(want[name]),
                                       rtol=rtol, atol=atol,
                                       err_msg=f"{tag}:{name}")

    # (1) Tight check vs. a pure-JAX mirror of the kernel's exact math (same folded
    #     bf16 weights, same op structure) — validates the Pallas lowering.
    #     Tolerance covers transcendental-implementation differences and bf16
    #     operand-rounding effects compounded through the T-step recurrence.
    check(nse_reference_kernel_math, rtol=1e-2, atol=1e-2, tag="kernel-math")

    # (2) Semantic check vs. the faithful full-f32 reference of the PyTorch forward —
    #     tolerance reflects bf16 MXU operands (single-pass matmuls) accumulating
    #     over T recurrent steps.
    check(nse_reference, rtol=5e-2, atol=5e-2, tag="f32-semantics")

    print("KERNEL_OK")
</pallas_src>

<mosaic_0001>
module attributes {stable_mosaic.version = 11 : i64} {
  func.func @nse_kernel(%arg0: i32, %arg1: memref<8x2x128xf32, #tpu.memory_space<vmem>>, %arg2: memref<2x8x32xf32, #tpu.memory_space<vmem>>, %arg3: memref<4x2x32xf32, #tpu.memory_space<vmem>>, %arg4: memref<32x128xbf16, #tpu.memory_space<vmem>>, %arg5: memref<96x128xbf16, #tpu.memory_space<vmem>>, %arg6: memref<2x128xf32, #tpu.memory_space<vmem>>, %arg7: memref<8x2x32xf32, #tpu.memory_space<vmem>>, %arg8: memref<4x2x32xf32, #tpu.memory_space<vmem>>, %arg9: memref<2x8x32xf32, #tpu.memory_space<vmem>>, %arg10: memref<2x96xf32, #tpu.memory_space<vmem>>) attributes {dimension_semantics = [#tpu.dimension_semantics<arbitrary>], iteration_bounds = array<i64: 1>, scalar_prefetch = 0 : i64, scratch_operands = 1 : i64, tpu.core_type = #tpu.core_type<tc>, window_params = [{pipeline_mode = #tpu.pipeline_mode<synchronous>, transform_indices = @transform_0, window_bounds = array<i64: 8, 2, 128>}, {pipeline_mode = #tpu.pipeline_mode<synchronous>, transform_indices = @transform_1, window_bounds = array<i64: 2, 8, 32>}, {pipeline_mode = #tpu.pipeline_mode<synchronous>, transform_indices = @transform_2, window_bounds = array<i64: 4, 2, 32>}, {pipeline_mode = #tpu.pipeline_mode<synchronous>, transform_indices = @transform_3, window_bounds = array<i64: 32, 128>}, {pipeline_mode = #tpu.pipeline_mode<synchronous>, transform_indices = @transform_4, window_bounds = array<i64: 96, 128>}, {pipeline_mode = #tpu.pipeline_mode<synchronous>, transform_indices = @transform_5, window_bounds = array<i64: 2, 128>}, {pipeline_mode = #tpu.pipeline_mode<synchronous>, transform_indices = @transform_6, window_bounds = array<i64: 8, 2, 32>}, {pipeline_mode = #tpu.pipeline_mode<synchronous>, transform_indices = @transform_7, window_bounds = array<i64: 4, 2, 32>}, {pipeline_mode = #tpu.pipeline_mode<synchronous>, transform_indices = @transform_8, window_bounds = array<i64: 2, 8, 32>}]} {
    %c0 = arith.constant 0 : index
    %c0_0 = arith.constant 0 : index
    %0 = vector.load %arg4[%c0, %c0_0] : memref<32x128xbf16, #tpu.memory_space<vmem>>, vector<32x128xbf16>
    %c0_1 = arith.constant 0 : index
    %c0_2 = arith.constant 0 : index
    %1 = vector.load %arg5[%c0_1, %c0_2] : memref<96x128xbf16, #tpu.memory_space<vmem>>, vector<96x128xbf16>
    %c0_3 = arith.constant 0 : index
    %c0_4 = arith.constant 0 : index
    %2 = vector.load %arg6[%c0_3, %c0_4] : memref<2x128xf32, #tpu.memory_space<vmem>>, vector<2x128xf32>
    %c0_5 = arith.constant 0 : index
    %c0_6 = arith.constant 0 : index
    %c0_7 = arith.constant 0 : index
    %3 = vector.load %arg3[%c0_5, %c0_6, %c0_7] : memref<4x2x32xf32, #tpu.memory_space<vmem>>, vector<1x2x32xf32>
    %4 = vector.shape_cast %3 : vector<1x2x32xf32> to vector<2x32xf32>
    %c1 = arith.constant 1 : index
    %c0_8 = arith.constant 0 : index
    %c0_9 = arith.constant 0 : index
    %5 = vector.load %arg3[%c1, %c0_8, %c0_9] : memref<4x2x32xf32, #tpu.memory_space<vmem>>, vector<1x2x32xf32>
    %6 = vector.shape_cast %5 : vector<1x2x32xf32> to vector<2x32xf32>
    %c2 = arith.constant 2 : index
    %c0_10 = arith.constant 0 : index
    %c0_11 = arith.constant 0 : index
    %7 = vector.load %arg3[%c2, %c0_10, %c0_11] : memref<4x2x32xf32, #tpu.memory_space<vmem>>, vector<1x2x32xf32>
    %8 = vector.shape_cast %7 : vector<1x2x32xf32> to vector<2x32xf32>
    %c3 = arith.constant 3 : index
    %c0_12 = arith.constant 0 : index
    %c0_13 = arith.constant 0 : index
    %9 = vector.load %arg3[%c3, %c0_12, %c0_13] : memref<4x2x32xf32, #tpu.memory_space<vmem>>, vector<1x2x32xf32>
    %10 = vector.shape_cast %9 : vector<1x2x32xf32> to vector<2x32xf32>
    %c0_14 = arith.constant 0 : index
    %c0_15 = arith.constant 0 : index
    %c0_16 = arith.constant 0 : index
    %11 = vector.load %arg2[%c0_14, %c0_15, %c0_16] : memref<2x8x32xf32, #tpu.memory_space<vmem>>, vector<2x8x32xf32>
    %c0_17 = arith.constant 0 : index
    %c0_18 = arith.constant 0 : index
    %c0_19 = arith.constant 0 : index
    %12 = vector.load %arg1[%c0_17, %c0_18, %c0_19] : memref<8x2x128xf32, #tpu.memory_space<vmem>>, vector<1x2x128xf32>
    %13 = vector.shape_cast %12 : vector<1x2x128xf32> to vector<2x128xf32>
    %14 = arith.truncf %4 : vector<2x32xf32> to vector<2x32xbf16>
    %cst = arith.constant dense<0.000000e+00> : vector<2x128xf32>
    %15 = tpu.matmul %14, %0, %cst {dimension_numbers = #tpu.dot_dimension_numbers<[1], [0], [0], [1], [0, 0, 1, 1], [], []>} : vector<2x32xbf16>, vector<32x128xbf16>, vector<2x128xf32> -> vector<2x128xf32>
    %16 = arith.addf %13, %15 : vector<2x128xf32>
    %17 = arith.negf %16 : vector<2x128xf32>
    %18 = math.exp %17 : vector<2x128xf32>
    %cst_20 = arith.constant 1.000000e+00 : f32
    %19 = vector.broadcast %cst_20 : f32 to vector<2x128xf32>
    %20 = arith.addf %19, %18 : vector<2x128xf32>
    %21 = arith.divf %19, %20 : vector<2x128xf32>
    %22 = vector.extract_strided_slice %21 {offsets = [0, 0], sizes = [2, 32], strides = [1, 1]} : vector<2x128xf32> to vector<2x32xf32>
    %23 = vector.extract_strided_slice %21 {offsets = [0, 32], sizes = [2, 32], strides = [1, 1]} : vector<2x128xf32> to vector<2x32xf32>
    %24 = vector.extract_strided_slice %21 {offsets = [0, 96], sizes = [2, 32], strides = [1, 1]} : vector<2x128xf32> to vector<2x32xf32>
    %25 = vector.extract_strided_slice %16 {offsets = [0, 64], sizes = [2, 32], strides = [1, 1]} : vector<2x128xf32> to vector<2x32xf32>
    %26 = math.tanh %25 : vector<2x32xf32>
    %27 = arith.mulf %23, %6 : vector<2x32xf32>
    %28 = arith.mulf %22, %26 : vector<2x32xf32>
    %29 = arith.addf %27, %28 : vector<2x32xf32>
    %30 = math.tanh %29 : vector<2x32xf32>
    %31 = arith.mulf %24, %30 : vector<2x32xf32>
    %32 = vector.shape_cast %31 : vector<2x32xf32> to vector<2x1x32xf32>
    %33 = vector.broadcast %32 : vector<2x1x32xf32> to vector<2x8x32xf32>
    %34 = arith.mulf %33, %11 : vector<2x8x32xf32>
    %cst_21 = arith.constant dense<0.000000e+00> : vector<2x8xf32>
    %35 = vector.multi_reduction <add>, %34, %cst_21 [2] : vector<2x8x32xf32> to vector<2x8xf32>
    %cst_22 = arith.constant dense<0xFF800000> : vector<2xf32>
    %36 = vector.multi_reduction <maximumf>, %35, %cst_22 [1] : vector<2x8xf32> to vector<2xf32>
    %37 = vector.shape_cast %36 : vector<2xf32> to vector<2x1xf32>
    %38 = vector.broadcast %37 : vector<2x1xf32> to vector<2x8xf32>
    %39 = arith.subf %35, %38 : vector<2x8xf32>
    %40 = math.exp %39 : vector<2x8xf32>
    %cst_23 = arith.constant dense<0.000000e+00> : vector<2xf32>
    %41 = vector.multi_reduction <add>, %40, %cst_23 [1] : vector<2x8xf32> to vector<2xf32>
    %42 = vector.shape_cast %41 : vector<2xf32> to vector<2x1xf32>
    %43 = vector.broadcast %42 : vector<2x1xf32> to vector<2x8xf32>
    %44 = arith.divf %40, %43 : vector<2x8xf32>
    %45 = vector.shape_cast %44 : vector<2x8xf32> to vector<2x8x1xf32>
    %46 = vector.broadcast %45 : vector<2x8x1xf32> to vector<2x8x32xf32>
    %47 = arith.mulf %46, %11 : vector<2x8x32xf32>
    %cst_24 = arith.constant dense<0.000000e+00> : vector<2x32xf32>
    %48 = vector.multi_reduction <add>, %47, %cst_24 [1] : vector<2x8x32xf32> to vector<2x32xf32>
    %c0_25 = arith.constant 0 : index
    %c0_26 = arith.constant 0 : index
    %49 = vector.load %arg10[%c0_25, %c0_26] : memref<2x96xf32, #tpu.memory_space<vmem>>, vector<2x32xf32>
    tpu.vector_store %arg10[%c0_25, %c0_26], %31 {strides = array<i32>} : memref<2x96xf32, #tpu.memory_space<vmem>>, vector<2x32xf32>,
    %c0_27 = arith.constant 0 : index
    %c32 = arith.constant 32 : index
    %50 = vector.load %arg10[%c0_27, %c32] : memref<2x96xf32, #tpu.memory_space<vmem>>, vector<2x32xf32>
    tpu.vector_store %arg10[%c0_27, %c32], %48 {strides = array<i32>} : memref<2x96xf32, #tpu.memory_space<vmem>>, vector<2x32xf32>,
    %c0_28 = arith.constant 0 : index
    %c64 = arith.constant 64 : index
    %51 = vector.load %arg10[%c0_28, %c64] : memref<2x96xf32, #tpu.memory_space<vmem>>, vector<2x32xf32>
    tpu.vector_store %arg10[%c0_28, %c64], %8 {strides = array<i32>} : memref<2x96xf32, #tpu.memory_space<vmem>>, vector<2x32xf32>,
    %c0_29 = arith.constant 0 : index
    %c0_30 = arith.constant 0 : index
    %52 = vector.load %arg10[%c0_29, %c0_30] : memref<2x96xf32, #tpu.memory_space<vmem>>, vector<2x96xf32>
    %53 = arith.truncf %52 : vector<2x96xf32> to vector<2x96xbf16>
    %cst_31 = arith.constant dense<0.000000e+00> : vector<2x128xf32>
    %54 = tpu.matmul %53, %1, %cst_31 {dimension_numbers = #tpu.dot_dimension_numbers<[1], [0], [0], [1], [0, 0, 1, 1], [], []>} : vector<2x96xbf16>, vector<96x128xbf16>, vector<2x128xf32> -> vector<2x128xf32>
    %55 = arith.addf %54, %2 : vector<2x128xf32>
    %56 = arith.negf %55 : vector<2x128xf32>
    %57 = math.exp %56 : vector<2x128xf32>
    %cst_32 = arith.constant 1.000000e+00 : f32
    %58 = vector.broadcast %cst_32 : f32 to vector<2x128xf32>
    %59 = arith.addf %58, %57 : vector<2x128xf32>
    %60 = arith.divf %58, %59 : vector<2x128xf32>
    %61 = vector.extract_strided_slice %60 {offsets = [0, 0], sizes = [2, 32], strides = [1, 1]} : vector<2x128xf32> to vector<2x32xf32>
    %62 = vector.extract_strided_slice %60 {offsets = [0, 32], sizes = [2, 32], strides = [1, 1]} : vector<2x128xf32> to vector<2x32xf32>
    %63 = vector.extract_strided_slice %60 {offsets = [0, 96], sizes = [2, 32], strides = [1, 1]} : vector<2x128xf32> to vector<2x32xf32>
    %64 = vector.extract_strided_slice %55 {offsets = [0, 64], sizes = [2, 32], strides = [1, 1]} : vector<2x128xf32> to vector<2x32xf32>
    %65 = math.tanh %64 : vector<2x32xf32>
    %66 = arith.mulf %62, %10 : vector<2x32xf32>
    %67 = arith.mulf %61, %65 : vector<2x32xf32>
    %68 = arith.addf %66, %67 : vector<2x32xf32>
    %69 = math.tanh %68 : vector<2x32xf32>
    %70 = arith.mulf %63, %69 : vector<2x32xf32>
    %cst_33 = arith.constant 1.000000e+00 : f32
    %71 = vector.broadcast %cst_33 : f32 to vector<2x8xf32>
    %72 = arith.subf %71, %44 : vector<2x8xf32>
    %73 = vector.shape_cast %72 : vector<2x8xf32> to vector<2x8x1xf32>
    %74 = vector.shape_cast %70 : vector<2x32xf32> to vector<2x1x32xf32>
    %75 = vector.broadcast %74 : vector<2x1x32xf32> to vector<2x8x32xf32>
    %76 = arith.addf %11, %75 : vector<2x8x32xf32>
    %77 = vector.broadcast %73 : vector<2x8x1xf32> to vector<2x8x32xf32>
    %78 = arith.mulf %77, %76 : vector<2x8x32xf32>
    %c0_34 = arith.constant 0 : index
    %c0_35 = arith.constant 0 : index
    %c0_36 = arith.constant 0 : index
    %79 = vector.load %arg7[%c0_34, %c0_35, %c0_36] : memref<8x2x32xf32, #tpu.memory_space<vmem>>, vector<1x2x32xf32>
    %80 = vector.shape_cast %79 : vector<1x2x32xf32> to vector<2x32xf32>
    %81 = vector.shape_cast %70 : vector<2x32xf32> to vector<1x2x32xf32>
    tpu.vector_store %arg7[%c0_34, %c0_35, %c0_36], %81 {strides = array<i32>} : memref<8x2x32xf32, #tpu.memory_space<vmem>>, vector<1x2x32xf32>,
    %c1_37 = arith.constant 1 : index
    %c0_38 = arith.constant 0 : index
    %c0_39 = arith.constant 0 : index
    %82 = vector.load %arg1[%c1_37, %c0_38, %c0_39] : memref<8x2x128xf32, #tpu.memory_space<vmem>>, vector<1x2x128xf32>
    %83 = vector.shape_cast %82 : vector<1x2x128xf32> to vector<2x128xf32>
    %84 = arith.truncf %31 : vector<2x32xf32> to vector<2x32xbf16>
    %cst_40 = arith.constant dense<0.000000e+00> : vector<2x128xf32>
    %85 = tpu.matmul %84, %0, %cst_40 {dimension_numbers = #tpu.dot_dimension_numbers<[1], [0], [0], [1], [0, 0, 1, 1], [], []>} : vector<2x32xbf16>, vector<32x128xbf16>, vector<2x128xf32> -> vector<2x128xf32>
    %86 = arith.addf %83, %85 : vector<2x128xf32>
    %87 = arith.negf %86 : vector<2x128xf32>
    %88 = math.exp %87 : vector<2x128xf32>
    %cst_41 = arith.constant 1.000000e+00 : f32
    %89 = vector.broadcast %cst_41 : f32 to vector<2x128xf32>
    %90 = arith.addf %89, %88 : vector<2x128xf32>
    %91 = arith.divf %89, %90 : vector<2x128xf32>
    %92 = vector.extract_strided_slice %91 {offsets = [0, 0], sizes = [2, 32], strides = [1, 1]} : vector<2x128xf32> to vector<2x32xf32>
    %93 = vector.extract_strided_slice %91 {offsets = [0, 32], sizes = [2, 32], strides = [1, 1]} : vector<2x128xf32> to vector<2x32xf32>
    %94 = vector.extract_strided_slice %91 {offsets = [0, 96], sizes = [2, 32], strides = [1, 1]} : vector<2x128xf32> to vector<2x32xf32>
    %95 = vector.extract_strided_slice %86 {offsets = [0, 64], sizes = [2, 32], strides = [1, 1]} : vector<2x128xf32> to vector<2x32xf32>
    %96 = math.tanh %95 : vector<2x32xf32>
    %97 = arith.mulf %93, %29 : vector<2x32xf32>
    %98 = arith.mulf %92, %96 : vector<2x32xf32>
    %99 = arith.addf %97, %98 : vector<2x32xf32>
    %100 = math.tanh %99 : vector<2x32xf32>
    %101 = arith.mulf %94, %100 : vector<2x32xf32>
    %102 = vector.shape_cast %101 : vector<2x32xf32> to vector<2x1x32xf32>
    %103 = vector.broadcast %102 : vector<2x1x32xf32> to vector<2x8x32xf32>
    %104 = arith.mulf %103, %78 : vector<2x8x32xf32>
    %cst_42 = arith.constant dense<0.000000e+00> : vector<2x8xf32>
    %105 = vector.multi_reduction <add>, %104, %cst_42 [2] : vector<2x8x32xf32> to vector<2x8xf32>
    %cst_43 = arith.constant dense<0xFF800000> : vector<2xf32>
    %106 = vector.multi_reduction <maximumf>, %105, %cst_43 [1] : vector<2x8xf32> to vector<2xf32>
    %107 = vector.shape_cast %106 : vector<2xf32> to vector<2x1xf32>
    %108 = vector.broadcast %107 : vector<2x1xf32> to vector<2x8xf32>
    %109 = arith.subf %105, %108 : vector<2x8xf32>
    %110 = math.exp %109 : vector<2x8xf32>
    %cst_44 = arith.constant dense<0.000000e+00> : vector<2xf32>
    %111 = vector.multi_reduction <add>, %110, %cst_44 [1] : vector<2x8xf32> to vector<2xf32>
    %112 = vector.shape_cast %111 : vector<2xf32> to vector<2x1xf32>
    %113 = vector.broadcast %112 : vector<2x1xf32> to vector<2x8xf32>
    %114 = arith.divf %110, %113 : vector<2x8xf32>
    %115 = vector.shape_cast %114 : vector<2x8xf32> to vector<2x8x1xf32>
    %116 = vector.broadcast %115 : vector<2x8x1xf32> to vector<2x8x32xf32>
    %117 = arith.mulf %116, %78 : vector<2x8x32xf32>
    %cst_45 = arith.constant dense<0.000000e+00> : vector<2x32xf32>
    %118 = vector.multi_reduction <add>, %117, %cst_45 [1] : vector<2x8x32xf32> to vector<2x32xf32>
    %c0_46 = arith.constant 0 : index
    %c0_47 = arith.constant 0 : index
    %119 = vector.load %arg10[%c0_46, %c0_47] : memref<2x96xf32, #tpu.memory_space<vmem>>, vector<2x32xf32>
    tpu.vector_store %arg10[%c0_46, %c0_47], %101 {strides = array<i32>} : memref<2x96xf32, #tpu.memory_space<vmem>>, vector<2x32xf32>,
    %c0_48 = arith.constant 0 : index
    %c32_49 = arith.constant 32 : index
    %120 = vector.load %arg10[%c0_48, %c32_49] : memref<2x96xf32, #tpu.memory_space<vmem>>, vector<2x32xf32>
    tpu.vector_store %arg10[%c0_48, %c32_49], %118 {strides = array<i32>} : memref<2x96xf32, #tpu.memory_space<vmem>>, vector<2x32xf32>,
    %c0_50 = arith.constant 0 : index
    %c64_51 = arith.constant 64 : index
    %121 = vector.load %arg10[%c0_50, %c64_51] : memref<2x96xf32, #tpu.memory_space<vmem>>, vector<2x32xf32>
    tpu.vector_store %arg10[%c0_50, %c64_51], %70 {strides = array<i32>} : memref<2x96xf32, #tpu.memory_space<vmem>>, vector<2x32xf32>,
    %c0_52 = arith.constant 0 : index
    %c0_53 = arith.constant 0 : index
    %122 = vector.load %arg10[%c0_52, %c0_53] : memref<2x96xf32, #tpu.memory_space<vmem>>, vector<2x96xf32>
    %123 = arith.truncf %122 : vector<2x96xf32> to vector<2x96xbf16>
    %cst_54 = arith.constant dense<0.000000e+00> : vector<2x128xf32>
    %124 = tpu.matmul %123, %1, %cst_54 {dimension_numbers = #tpu.dot_dimension_numbers<[1], [0], [0], [1], [0, 0, 1, 1], [], []>} : vector<2x96xbf16>, vector<96x128xbf16>, vector<2x128xf32> -> vector<2x128xf32>
    %125 = arith.addf %124, %2 : vector<2x128xf32>
    %126 = arith.negf %125 : vector<2x128xf32>
    %127 = math.exp %126 : vector<2x128xf32>
    %cst_55 = arith.constant 1.000000e+00 : f32
    %128 = vector.broadcast %cst_55 : f32 to vector<2x128xf32>
    %129 = arith.addf %128, %127 : vector<2x128xf32>
    %130 = arith.divf %128, %129 : vector<2x128xf32>
    %131 = vector.extract_strided_slice %130 {offsets = [0, 0], sizes = [2, 32], strides = [1, 1]} : vector<2x128xf32> to vector<2x32xf32>
    %132 = vector.extract_strided_slice %130 {offsets = [0, 32], sizes = [2, 32], strides = [1, 1]} : vector<2x128xf32> to vector<2x32xf32>
    %133 = vector.extract_strided_slice %130 {offsets = [0, 96], sizes = [2, 32], strides = [1, 1]} : vector<2x128xf32> to vector<2x32xf32>
    %134 = vector.extract_strided_slice %125 {offsets = [0, 64], sizes = [2, 32], strides = [1, 1]} : vector<2x128xf32> to vector<2x32xf32>
    %135 = math.tanh %134 : vector<2x32xf32>
    %136 = arith.mulf %132, %68 : vector<2x32xf32>
    %137 = arith.mulf %131, %135 : vector<2x32xf32>
    %138 = arith.addf %136, %137 : vector<2x32xf32>
    %139 = math.tanh %138 : vector<2x32xf32>
    %140 = arith.mulf %133, %139 : vector<2x32xf32>
    %cst_56 = arith.constant 1.000000e+00 : f32
    %141 = vector.broadcast %cst_56 : f32 to vector<2x8xf32>
    %142 = arith.subf %141, %114 : vector<2x8xf32>
    %143 = vector.shape_cast %142 : vector<2x8xf32> to vector<2x8x1xf32>
    %144 = vector.shape_cast %140 : vector<2x32xf32> to vector<2x1x32xf32>
    %145 = vector.broadcast %144 : vector<2x1x32xf32> to vector<2x8x32xf32>
    %146 = arith.addf %78, %145 : vector<2x8x32xf32>
    %147 = vector.broadcast %143 : vector<2x8x1xf32> to vector<2x8x32xf32>
    %148 = arith.mulf %147, %146 : vector<2x8x32xf32>
    %c1_57 = arith.constant 1 : index
    %c0_58 = arith.constant 0 : index
    %c0_59 = arith.constant 0 : index
    %149 = vector.load %arg7[%c1_57, %c0_58, %c0_59] : memref<8x2x32xf32, #tpu.memory_space<vmem>>, vector<1x2x32xf32>
    %150 = vector.shape_cast %149 : vector<1x2x32xf32> to vector<2x32xf32>
    %151 = vector.shape_cast %140 : vector<2x32xf32> to vector<1x2x32xf32>
    tpu.vector_store %arg7[%c1_57, %c0_58, %c0_59], %151 {strides = array<i32>} : memref<8x2x32xf32, #tpu.memory_space<vmem>>, vector<1x2x32xf32>,
    %c2_60 = arith.constant 2 : index
    %c0_61 = arith.constant 0 : index
    %c0_62 = arith.constant 0 : index
    %152 = vector.load %arg1[%c2_60, %c0_61, %c0_62] : memref<8x2x128xf32, #tpu.memory_space<vmem>>, vector<1x2x128xf32>
    %153 = vector.shape_cast %152 : vector<1x2x128xf32> to vector<2x128xf32>
    %154 = arith.truncf %101 : vector<2x32xf32> to vector<2x32xbf16>
    %cst_63 = arith.constant dense<0.000000e+00> : vector<2x128xf32>
    %155 = tpu.matmul %154, %0, %cst_63 {dimension_numbers = #tpu.dot_dimension_numbers<[1], [0], [0], [1], [0, 0, 1, 1], [], []>} : vector<2x32xbf16>, vector<32x128xbf16>, vector<2x128xf32> -> vector<2x128xf32>
    %156 = arith.addf %153, %155 : vector<2x128xf32>
    %157 = arith.negf %156 : vector<2x128xf32>
    %158 = math.exp %157 : vector<2x128xf32>
    %cst_64 = arith.constant 1.000000e+00 : f32
    %159 = vector.broadcast %cst_64 : f32 to vector<2x128xf32>
    %160 = arith.addf %159, %158 : vector<2x128xf32>
    %161 = arith.divf %159, %160 : vector<2x128xf32>
    %162 = vector.extract_strided_slice %161 {offsets = [0, 0], sizes = [2, 32], strides = [1, 1]} : vector<2x128xf32> to vector<2x32xf32>
    %163 = vector.extract_strided_slice %161 {offsets = [0, 32], sizes = [2, 32], strides = [1, 1]} : vector<2x128xf32> to vector<2x32xf32>
    %164 = vector.extract_strided_slice %161 {offsets = [0, 96], sizes = [2, 32], strides = [1, 1]} : vector<2x128xf32> to vector<2x32xf32>
    %165 = vector.extract_strided_slice %156 {offsets = [0, 64], sizes = [2, 32], strides = [1, 1]} : vector<2x128xf32> to vector<2x32xf32>
    %166 = math.tanh %165 : vector<2x32xf32>
    %167 = arith.mulf %163, %99 : vector<2x32xf32>
    %168 = arith.mulf %162, %166 : vector<2x32xf32>
    %169 = arith.addf %167, %168 : vector<2x32xf32>
    %170 = math.tanh %169 : vector<2x32xf32>
    %171 = arith.mulf %164, %170 : vector<2x32xf32>
    %172 = vector.shape_cast %171 : vector<2x32xf32> to vector<2x1x32xf32>
    %173 = vector.broadcast %172 : vector<2x1x32xf32> to vector<2x8x32xf32>
    %174 = arith.mulf %173, %148 : vector<2x8x32xf32>
    %cst_65 = arith.constant dense<0.000000e+00> : vector<2x8xf32>
    %175 = vector.multi_reduction <add>, %174, %cst_65 [2] : vector<2x8x32xf32> to vector<2x8xf32>
    %cst_66 = arith.constant dense<0xFF800000> : vector<2xf32>
    %176 = vector.multi_reduction <maximumf>, %175, %cst_66 [1] : vector<2x8xf32> to vector<2xf32>
    %177 = vector.shape_cast %176 : vector<2xf32> to vector<2x1xf32>
    %178 = vector.broadcast %177 : vector<2x1xf32> to vector<2x8xf32>
    %179 = arith.subf %175, %178 : vector<2x8xf32>
    %180 = math.exp %179 : vector<2x8xf32>
    %cst_67 = arith.constant dense<0.000000e+00> : vector<2xf32>
    %181 = vector.multi_reduction <add>, %180, %cst_67 [1] : vector<2x8xf32> to vector<2xf32>
    %182 = vector.shape_cast %181 : vector<2xf32> to vector<2x1xf32>
    %183 = vector.broadcast %182 : vector<2x1xf32> to vector<2x8xf32>
    %184 = arith.divf %180, %183 : vector<2x8xf32>
    %185 = vector.shape_cast %184 : vector<2x8xf32> to vector<2x8x1xf32>
    %186 = vector.broadcast %185 : vector<2x8x1xf32> to vector<2x8x32xf32>
    %187 = arith.mulf %186, %148 : vector<2x8x32xf32>
    %cst_68 = arith.constant dense<0.000000e+00> : vector<2x32xf32>
    %188 = vector.multi_reduction <add>, %187, %cst_68 [1] : vector<2x8x32xf32> to vector<2x32xf32>
    %c0_69 = arith.constant 0 : index
    %c0_70 = arith.constant 0 : index
    %189 = vector.load %arg10[%c0_69, %c0_70] : memref<2x96xf32, #tpu.memory_space<vmem>>, vector<2x32xf32>
    tpu.vector_store %arg10[%c0_69, %c0_70], %171 {strides = array<i32>} : memref<2x96xf32, #tpu.memory_space<vmem>>, vector<2x32xf32>,
    %c0_71 = arith.constant 0 : index
    %c32_72 = arith.constant 32 : index
    %190 = vector.load %arg10[%c0_71, %c32_72] : memref<2x96xf32, #tpu.memory_space<vmem>>, vector<2x32xf32>
    tpu.vector_store %arg10[%c0_71, %c32_72], %188 {strides = array<i32>} : memref<2x96xf32, #tpu.memory_space<vmem>>, vector<2x32xf32>,
    %c0_73 = arith.constant 0 : index
    %c64_74 = arith.constant 64 : index
    %191 = vector.load %arg10[%c0_73, %c64_74] : memref<2x96xf32, #tpu.memory_space<vmem>>, vector<2x32xf32>
    tpu.vector_store %arg10[%c0_73, %c64_74], %140 {strides = array<i32>} : memref<2x96xf32, #tpu.memory_space<vmem>>, vector<2x32xf32>,
    %c0_75 = arith.constant 0 : index
    %c0_76 = arith.constant 0 : index
    %192 = vector.load %arg10[%c0_75, %c0_76] : memref<2x96xf32, #tpu.memory_space<vmem>>, vector<2x96xf32>
    %193 = arith.truncf %192 : vector<2x96xf32> to vector<2x96xbf16>
    %cst_77 = arith.constant dense<0.000000e+00> : vector<2x128xf32>
    %194 = tpu.matmul %193, %1, %cst_77 {dimension_numbers = #tpu.dot_dimension_numbers<[1], [0], [0], [1], [0, 0, 1, 1], [], []>} : vector<2x96xbf16>, vector<96x128xbf16>, vector<2x128xf32> -> vector<2x128xf32>
    %195 = arith.addf %194, %2 : vector<2x128xf32>
    %196 = arith.negf %195 : vector<2x128xf32>
    %197 = math.exp %196 : vector<2x128xf32>
    %cst_78 = arith.constant 1.000000e+00 : f32
    %198 = vector.broadcast %cst_78 : f32 to vector<2x128xf32>
    %199 = arith.addf %198, %197 : vector<2x128xf32>
    %200 = arith.divf %198, %199 : vector<2x128xf32>
    %201 = vector.extract_strided_slice %200 {offsets = [0, 0], sizes = [2, 32], strides = [1, 1]} : vector<2x128xf32> to vector<2x32xf32>
    %202 = vector.extract_strided_slice %200 {offsets = [0, 32], sizes = [2, 32], strides = [1, 1]} : vector<2x128xf32> to vector<2x32xf32>
    %203 = vector.extract_strided_slice %200 {offsets = [0, 96], sizes = [2, 32], strides = [1, 1]} : vector<2x128xf32> to vector<2x32xf32>
    %204 = vector.extract_strided_slice %195 {offsets = [0, 64], sizes = [2, 32], strides = [1, 1]} : vector<2x128xf32> to vector<2x32xf32>
    %205 = math.tanh %204 : vector<2x32xf32>
    %206 = arith.mulf %202, %138 : vector<2x32xf32>
    %207 = arith.mulf %201, %205 : vector<2x32xf32>
    %208 = arith.addf %206, %207 : vector<2x32xf32>
    %209 = math.tanh %208 : vector<2x32xf32>
    %210 = arith.mulf %203, %209 : vector<2x32xf32>
    %cst_79 = arith.constant 1.000000e+00 : f32
    %211 = vector.broadcast %cst_79 : f32 to vector<2x8xf32>
    %212 = arith.subf %211, %184 : vector<2x8xf32>
    %213 = vector.shape_cast %212 : vector<2x8xf32> to vector<2x8x1xf32>
    %214 = vector.shape_cast %210 : vector<2x32xf32> to vector<2x1x32xf32>
    %215 = vector.broadcast %214 : vector<2x1x32xf32> to vector<2x8x32xf32>
    %216 = arith.addf %148, %215 : vector<2x8x32xf32>
    %217 = vector.broadcast %213 : vector<2x8x1xf32> to vector<2x8x32xf32>
    %218 = arith.mulf %217, %216 : vector<2x8x32xf32>
    %c2_80 = arith.constant 2 : index
    %c0_81 = arith.constant 0 : index
    %c0_82 = arith.constant 0 : index
    %219 = vector.load %arg7[%c2_80, %c0_81, %c0_82] : memref<8x2x32xf32, #tpu.memory_space<vmem>>, vector<1x2x32xf32>
    %220 = vector.shape_cast %219 : vector<1x2x32xf32> to vector<2x32xf32>
    %221 = vector.shape_cast %210 : vector<2x32xf32> to vector<1x2x32xf32>
    tpu.vector_store %arg7[%c2_80, %c0_81, %c0_82], %221 {strides = array<i32>} : memref<8x2x32xf32, #tpu.memory_space<vmem>>, vector<1x2x32xf32>,
    %c3_83 = arith.constant 3 : index
    %c0_84 = arith.constant 0 : index
    %c0_85 = arith.constant 0 : index
    %222 = vector.load %arg1[%c3_83, %c0_84, %c0_85] : memref<8x2x128xf32, #tpu.memory_space<vmem>>, vector<1x2x128xf32>
    %223 = vector.shape_cast %222 : vector<1x2x128xf32> to vector<2x128xf32>
    %224 = arith.truncf %171 : vector<2x32xf32> to vector<2x32xbf16>
    %cst_86 = arith.constant dense<0.000000e+00> : vector<2x128xf32>
    %225 = tpu.matmul %224, %0, %cst_86 {dimension_numbers = #tpu.dot_dimension_numbers<[1], [0], [0], [1], [0, 0, 1, 1], [], []>} : vector<2x32xbf16>, vector<32x128xbf16>, vector<2x128xf32> -> vector<2x128xf32>
    %226 = arith.addf %223, %225 : vector<2x128xf32>
    %227 = arith.negf %226 : vector<2x128xf32>
    %228 = math.exp %227 : vector<2x128xf32>
    %cst_87 = arith.constant 1.000000e+00 : f32
    %229 = vector.broadcast %cst_87 : f32 to vector<2x128xf32>
    %230 = arith.addf %229, %228 : vector<2x128xf32>
    %231 = arith.divf %229, %230 : vector<2x128xf32>
    %232 = vector.extract_strided_slice %231 {offsets = [0, 0], sizes = [2, 32], strides = [1, 1]} : vector<2x128xf32> to vector<2x32xf32>
    %233 = vector.extract_strided_slice %231 {offsets = [0, 32], sizes = [2, 32], strides = [1, 1]} : vector<2x128xf32> to vector<2x32xf32>
    %234 = vector.extract_strided_slice %231 {offsets = [0, 96], sizes = [2, 32], strides = [1, 1]} : vector<2x128xf32> to vector<2x32xf32>
    %235 = vector.extract_strided_slice %226 {offsets = [0, 64], sizes = [2, 32], strides = [1, 1]} : vector<2x128xf32> to vector<2x32xf32>
    %236 = math.tanh %235 : vector<2x32xf32>
    %237 = arith.mulf %233, %169 : vector<2x32xf32>
    %238 = arith.mulf %232, %236 : vector<2x32xf32>
    %239 = arith.addf %237, %238 : vector<2x32xf32>
    %240 = math.tanh %239 : vector<2x32xf32>
    %241 = arith.mulf %234, %240 : vector<2x32xf32>
    %242 = vector.shape_cast %241 : vector<2x32xf32> to vector<2x1x32xf32>
    %243 = vector.broadcast %242 : vector<2x1x32xf32> to vector<2x8x32xf32>
    %244 = arith.mulf %243, %218 : vector<2x8x32xf32>
    %cst_88 = arith.constant dense<0.000000e+00> : vector<2x8xf32>
    %245 = vector.multi_reduction <add>, %244, %cst_88 [2] : vector<2x8x32xf32> to vector<2x8xf32>
    %cst_89 = arith.constant dense<0xFF800000> : vector<2xf32>
    %246 = vector.multi_reduction <maximumf>, %245, %cst_89 [1] : vector<2x8xf32> to vector<2xf32>
    %247 = vector.shape_cast %246 : vector<2xf32> to vector<2x1xf32>
    %248 = vector.broadcast %247 : vector<2x1xf32> to vector<2x8xf32>
    %249 = arith.subf %245, %248 : vector<2x8xf32>
    %250 = math.exp %249 : vector<2x8xf32>
    %cst_90 = arith.constant dense<0.000000e+00> : vector<2xf32>
    %251 = vector.multi_reduction <add>, %250, %cst_90 [1] : vector<2x8xf32> to vector<2xf32>
    %252 = vector.shape_cast %251 : vector<2xf32> to vector<2x1xf32>
    %253 = vector.broadcast %252 : vector<2x1xf32> to vector<2x8xf32>
    %254 = arith.divf %250, %253 : vector<2x8xf32>
    %255 = vector.shape_cast %254 : vector<2x8xf32> to vector<2x8x1xf32>
    %256 = vector.broadcast %255 : vector<2x8x1xf32> to vector<2x8x32xf32>
    %257 = arith.mulf %256, %218 : vector<2x8x32xf32>
    %cst_91 = arith.constant dense<0.000000e+00> : vector<2x32xf32>
    %258 = vector.multi_reduction <add>, %257, %cst_91 [1] : vector<2x8x32xf32> to vector<2x32xf32>
    %c0_92 = arith.constant 0 : index
    %c0_93 = arith.constant 0 : index
    %259 = vector.load %arg10[%c0_92, %c0_93] : memref<2x96xf32, #tpu.memory_space<vmem>>, vector<2x32xf32>
    tpu.vector_store %arg10[%c0_92, %c0_93], %241 {strides = array<i32>} : memref<2x96xf32, #tpu.memory_space<vmem>>, vector<2x32xf32>,
    %c0_94 = arith.constant 0 : index
    %c32_95 = arith.constant 32 : index
    %260 = vector.load %arg10[%c0_94, %c32_95] : memref<2x96xf32, #tpu.memory_space<vmem>>, vector<2x32xf32>
    tpu.vector_store %arg10[%c0_94, %c32_95], %258 {strides = array<i32>} : memref<2x96xf32, #tpu.memory_space<vmem>>, vector<2x32xf32>,
    %c0_96 = arith.constant 0 : index
    %c64_97 = arith.constant 64 : index
    %261 = vector.load %arg10[%c0_96, %c64_97] : memref<2x96xf32, #tpu.memory_space<vmem>>, vector<2x32xf32>
    tpu.vector_store %arg10[%c0_96, %c64_97], %210 {strides = array<i32>} : memref<2x96xf32, #tpu.memory_space<vmem>>, vector<2x32xf32>,
    %c0_98 = arith.constant 0 : index
    %c0_99 = arith.constant 0 : index
    %262 = vector.load %arg10[%c0_98, %c0_99] : memref<2x96xf32, #tpu.memory_space<vmem>>, vector<2x96xf32>
    %263 = arith.truncf %262 : vector<2x96xf32> to vector<2x96xbf16>
    %cst_100 = arith.constant dense<0.000000e+00> : vector<2x128xf32>
    %264 = tpu.matmul %263, %1, %cst_100 {dimension_numbers = #tpu.dot_dimension_numbers<[1], [0], [0], [1], [0, 0, 1, 1], [], []>} : vector<2x96xbf16>, vector<96x128xbf16>, vector<2x128xf32> -> vector<2x128xf32>
    %265 = arith.addf %264, %2 : vector<2x128xf32>
    %266 = arith.negf %265 : vector<2x128xf32>
    %267 = math.exp %266 : vector<2x128xf32>
    %cst_101 = arith.constant 1.000000e+00 : f32
    %268 = vector.broadcast %cst_101 : f32 to vector<2x128xf32>
    %269 = arith.addf %268, %267 : vector<2x128xf32>
    %270 = arith.divf %268, %269 : vector<2x128xf32>
    %271 = vector.extract_strided_slice %270 {offsets = [0, 0], sizes = [2, 32], strides = [1, 1]} : vector<2x128xf32> to vector<2x32xf32>
    %272 = vector.extract_strided_slice %270 {offsets = [0, 32], sizes = [2, 32], strides = [1, 1]} : vector<2x128xf32> to vector<2x32xf32>
    %273 = vector.extract_strided_slice %270 {offsets = [0, 96], sizes = [2, 32], strides = [1, 1]} : vector<2x128xf32> to vector<2x32xf32>
    %274 = vector.extract_strided_slice %265 {offsets = [0, 64], sizes = [2, 32], strides = [1, 1]} : vector<2x128xf32> to vector<2x32xf32>
    %275 = math.tanh %274 : vector<2x32xf32>
    %276 = arith.mulf %272, %208 : vector<2x32xf32>
    %277 = arith.mulf %271, %275 : vector<2x32xf32>
    %278 = arith.addf %276, %277 : vector<2x32xf32>
    %279 = math.tanh %278 : vector<2x32xf32>
    %280 = arith.mulf %273, %279 : vector<2x32xf32>
    %cst_102 = arith.constant 1.000000e+00 : f32
    %281 = vector.broadcast %cst_102 : f32 to vector<2x8xf32>
    %282 = arith.subf %281, %254 : vector<2x8xf32>
    %283 = vector.shape_cast %282 : vector<2x8xf32> to vector<2x8x1xf32>
    %284 = vector.shape_cast %280 : vector<2x32xf32> to vector<2x1x32xf32>
    %285 = vector.broadcast %284 : vector<2x1x32xf32> to vector<2x8x32xf32>
    %286 = arith.addf %218, %285 : vector<2x8x32xf32>
    %287 = vector.broadcast %283 : vector<2x8x1xf32> to vector<2x8x32xf32>
    %288 = arith.mulf %287, %286 : vector<2x8x32xf32>
    %c3_103 = arith.constant 3 : index
    %c0_104 = arith.constant 0 : index
    %c0_105 = arith.constant 0 : index
    %289 = vector.load %arg7[%c3_103, %c0_104, %c0_105] : memref<8x2x32xf32, #tpu.memory_space<vmem>>, vector<1x2x32xf32>
    %290 = vector.shape_cast %289 : vector<1x2x32xf32> to vector<2x32xf32>
    %291 = vector.shape_cast %280 : vector<2x32xf32> to vector<1x2x32xf32>
    tpu.vector_store %arg7[%c3_103, %c0_104, %c0_105], %291 {strides = array<i32>} : memref<8x2x32xf32, #tpu.memory_space<vmem>>, vector<1x2x32xf32>,
    %c4 = arith.constant 4 : index
    %c0_106 = arith.constant 0 : index
    %c0_107 = arith.constant 0 : index
    %292 = vector.load %arg1[%c4, %c0_106, %c0_107] : memref<8x2x128xf32, #tpu.memory_space<vmem>>, vector<1x2x128xf32>
    %293 = vector.shape_cast %292 : vector<1x2x128xf32> to vector<2x128xf32>
    %294 = arith.truncf %241 : vector<2x32xf32> to vector<2x32xbf16>
    %cst_108 = arith.constant dense<0.000000e+00> : vector<2x128xf32>
    %295 = tpu.matmul %294, %0, %cst_108 {dimension_numbers = #tpu.dot_dimension_numbers<[1], [0], [0], [1], [0, 0, 1, 1], [], []>} : vector<2x32xbf16>, vector<32x128xbf16>, vector<2x128xf32> -> vector<2x128xf32>
    %296 = arith.addf %293, %295 : vector<2x128xf32>
    %297 = arith.negf %296 : vector<2x128xf32>
    %298 = math.exp %297 : vector<2x128xf32>
    %cst_109 = arith.constant 1.000000e+00 : f32
    %299 = vector.broadcast %cst_109 : f32 to vector<2x128xf32>
    %300 = arith.addf %299, %298 : vector<2x128xf32>
    %301 = arith.divf %299, %300 : vector<2x128xf32>
    %302 = vector.extract_strided_slice %301 {offsets = [0, 0], sizes = [2, 32], strides = [1, 1]} : vector<2x128xf32> to vector<2x32xf32>
    %303 = vector.extract_strided_slice %301 {offsets = [0, 32], sizes = [2, 32], strides = [1, 1]} : vector<2x128xf32> to vector<2x32xf32>
    %304 = vector.extract_strided_slice %301 {offsets = [0, 96], sizes = [2, 32], strides = [1, 1]} : vector<2x128xf32> to vector<2x32xf32>
    %305 = vector.extract_strided_slice %296 {offsets = [0, 64], sizes = [2, 32], strides = [1, 1]} : vector<2x128xf32> to vector<2x32xf32>
    %306 = math.tanh %305 : vector<2x32xf32>
    %307 = arith.mulf %303, %239 : vector<2x32xf32>
    %308 = arith.mulf %302, %306 : vector<2x32xf32>
    %309 = arith.addf %307, %308 : vector<2x32xf32>
    %310 = math.tanh %309 : vector<2x32xf32>
    %311 = arith.mulf %304, %310 : vector<2x32xf32>
    %312 = vector.shape_cast %311 : vector<2x32xf32> to vector<2x1x32xf32>
    %313 = vector.broadcast %312 : vector<2x1x32xf32> to vector<2x8x32xf32>
    %314 = arith.mulf %313, %288 : vector<2x8x32xf32>
    %cst_110 = arith.constant dense<0.000000e+00> : vector<2x8xf32>
    %315 = vector.multi_reduction <add>, %314, %cst_110 [2] : vector<2x8x32xf32> to vector<2x8xf32>
    %cst_111 = arith.constant dense<0xFF800000> : vector<2xf32>
    %316 = vector.multi_reduction <maximumf>, %315, %cst_111 [1] : vector<2x8xf32> to vector<2xf32>
    %317 = vector.shape_cast %316 : vector<2xf32> to vector<2x1xf32>
    %318 = vector.broadcast %317 : vector<2x1xf32> to vector<2x8xf32>
    %319 = arith.subf %315, %318 : vector<2x8xf32>
    %320 = math.exp %319 : vector<2x8xf32>
    %cst_112 = arith.constant dense<0.000000e+00> : vector<2xf32>
    %321 = vector.multi_reduction <add>, %320, %cst_112 [1] : vector<2x8xf32> to vector<2xf32>
    %322 = vector.shape_cast %321 : vector<2xf32> to vector<2x1xf32>
    %323 = vector.broadcast %322 : vector<2x1xf32> to vector<2x8xf32>
    %324 = arith.divf %320, %323 : vector<2x8xf32>
    %325 = vector.shape_cast %324 : vector<2x8xf32> to vector<2x8x1xf32>
    %326 = vector.broadcast %325 : vector<2x8x1xf32> to vector<2x8x32xf32>
    %327 = arith.mulf %326, %288 : vector<2x8x32xf32>
    %cst_113 = arith.constant dense<0.000000e+00> : vector<2x32xf32>
    %328 = vector.multi_reduction <add>, %327, %cst_113 [1] : vector<2x8x32xf32> to vector<2x32xf32>
    %c0_114 = arith.constant 0 : index
    %c0_115 = arith.constant 0 : index
    %329 = vector.load %arg10[%c0_114, %c0_115] : memref<2x96xf32, #tpu.memory_space<vmem>>, vector<2x32xf32>
    tpu.vector_store %arg10[%c0_114, %c0_115], %311 {strides = array<i32>} : memref<2x96xf32, #tpu.memory_space<vmem>>, vector<2x32xf32>,
    %c0_116 = arith.constant 0 : index
    %c32_117 = arith.constant 32 : index
    %330 = vector.load %arg10[%c0_116, %c32_117] : memref<2x96xf32, #tpu.memory_space<vmem>>, vector<2x32xf32>
    tpu.vector_store %arg10[%c0_116, %c32_117], %328 {strides = array<i32>} : memref<2x96xf32, #tpu.memory_space<vmem>>, vector<2x32xf32>,
    %c0_118 = arith.constant 0 : index
    %c64_119 = arith.constant 64 : index
    %331 = vector.load %arg10[%c0_118, %c64_119] : memref<2x96xf32, #tpu.memory_space<vmem>>, vector<2x32xf32>
    tpu.vector_store %arg10[%c0_118, %c64_119], %280 {strides = array<i32>} : memref<2x96xf32, #tpu.memory_space<vmem>>, vector<2x32xf32>,
    %c0_120 = arith.constant 0 : index
    %c0_121 = arith.constant 0 : index
    %332 = vector.load %arg10[%c0_120, %c0_121] : memref<2x96xf32, #tpu.memory_space<vmem>>, vector<2x96xf32>
    %333 = arith.truncf %332 : vector<2x96xf32> to vector<2x96xbf16>
    %cst_122 = arith.constant dense<0.000000e+00> : vector<2x128xf32>
    %334 = tpu.matmul %333, %1, %cst_122 {dimension_numbers = #tpu.dot_dimension_numbers<[1], [0], [0], [1], [0, 0, 1, 1], [], []>} : vector<2x96xbf16>, vector<96x128xbf16>, vector<2x128xf32> -> vector<2x128xf32>
    %335 = arith.addf %334, %2 : vector<2x128xf32>
    %336 = arith.negf %335 : vector<2x128xf32>
    %337 = math.exp %336 : vector<2x128xf32>
    %cst_123 = arith.constant 1.000000e+00 : f32
    %338 = vector.broadcast %cst_123 : f32 to vector<2x128xf32>
    %339 = arith.addf %338, %337 : vector<2x128xf32>
    %340 = arith.divf %338, %339 : vector<2x128xf32>
    %341 = vector.extract_strided_slice %340 {offsets = [0, 0], sizes = [2, 32], strides = [1, 1]} : vector<2x128xf32> to vector<2x32xf32>
    %342 = vector.extract_strided_slice %340 {offsets = [0, 32], sizes = [2, 32], strides = [1, 1]} : vector<2x128xf32> to vector<2x32xf32>
    %343 = vector.extract_strided_slice %340 {offsets = [0, 96], sizes = [2, 32], strides = [1, 1]} : vector<2x128xf32> to vector<2x32xf32>
    %344 = vector.extract_strided_slice %335 {offsets = [0, 64], sizes = [2, 32], strides = [1, 1]} : vector<2x128xf32> to vector<2x32xf32>
    %345 = math.tanh %344 : vector<2x32xf32>
    %346 = arith.mulf %342, %278 : vector<2x32xf32>
    %347 = arith.mulf %341, %345 : vector<2x32xf32>
    %348 = arith.addf %346, %347 : vector<2x32xf32>
    %349 = math.tanh %348 : vector<2x32xf32>
    %350 = arith.mulf %343, %349 : vector<2x32xf32>
    %cst_124 = arith.constant 1.000000e+00 : f32
    %351 = vector.broadcast %cst_124 : f32 to vector<2x8xf32>
    %352 = arith.subf %351, %324 : vector<2x8xf32>
    %353 = vector.shape_cast %352 : vector<2x8xf32> to vector<2x8x1xf32>
    %354 = vector.shape_cast %350 : vector<2x32xf32> to vector<2x1x32xf32>
    %355 = vector.broadcast %354 : vector<2x1x32xf32> to vector<2x8x32xf32>
    %356 = arith.addf %288, %355 : vector<2x8x32xf32>
    %357 = vector.broadcast %353 : vector<2x8x1xf32> to vector<2x8x32xf32>
    %358 = arith.mulf %357, %356 : vector<2x8x32xf32>
    %c4_125 = arith.constant 4 : index
    %c0_126 = arith.constant 0 : index
    %c0_127 = arith.constant 0 : index
    %359 = vector.load %arg7[%c4_125, %c0_126, %c0_127] : memref<8x2x32xf32, #tpu.memory_space<vmem>>, vector<1x2x32xf32>
    %360 = vector.shape_cast %359 : vector<1x2x32xf32> to vector<2x32xf32>
    %361 = vector.shape_cast %350 : vector<2x32xf32> to vector<1x2x32xf32>
    tpu.vector_store %arg7[%c4_125, %c0_126, %c0_127], %361 {strides = array<i32>} : memref<8x2x32xf32, #tpu.memory_space<vmem>>, vector<1x2x32xf32>,
    %c5 = arith.constant 5 : index
    %c0_128 = arith.constant 0 : index
    %c0_129 = arith.constant 0 : index
    %362 = vector.load %arg1[%c5, %c0_128, %c0_129] : memref<8x2x128xf32, #tpu.memory_space<vmem>>, vector<1x2x128xf32>
    %363 = vector.shape_cast %362 : vector<1x2x128xf32> to vector<2x128xf32>
    %364 = arith.truncf %311 : vector<2x32xf32> to vector<2x32xbf16>
    %cst_130 = arith.constant dense<0.000000e+00> : vector<2x128xf32>
    %365 = tpu.matmul %364, %0, %cst_130 {dimension_numbers = #tpu.dot_dimension_numbers<[1], [0], [0], [1], [0, 0, 1, 1], [], []>} : vector<2x32xbf16>, vector<32x128xbf16>, vector<2x128xf32> -> vector<2x128xf32>
    %366 = arith.addf %363, %365 : vector<2x128xf32>
    %367 = arith.negf %366 : vector<2x128xf32>
    %368 = math.exp %367 : vector<2x128xf32>
    %cst_131 = arith.constant 1.000000e+00 : f32
    %369 = vector.broadcast %cst_131 : f32 to vector<2x128xf32>
    %370 = arith.addf %369, %368 : vector<2x128xf32>
    %371 = arith.divf %369, %370 : vector<2x128xf32>
    %372 = vector.extract_strided_slice %371 {offsets = [0, 0], sizes = [2, 32], strides = [1, 1]} : vector<2x128xf32> to vector<2x32xf32>
    %373 = vector.extract_strided_slice %371 {offsets = [0, 32], sizes = [2, 32], strides = [1, 1]} : vector<2x128xf32> to vector<2x32xf32>
    %374 = vector.extract_strided_slice %371 {offsets = [0, 96], sizes = [2, 32], strides = [1, 1]} : vector<2x128xf32> to vector<2x32xf32>
    %375 = vector.extract_strided_slice %366 {offsets = [0, 64], sizes = [2, 32], strides = [1, 1]} : vector<2x128xf32> to vector<2x32xf32>
    %376 = math.tanh %375 : vector<2x32xf32>
    %377 = arith.mulf %373, %309 : vector<2x32xf32>
    %378 = arith.mulf %372, %376 : vector<2x32xf32>
    %379 = arith.addf %377, %378 : vector<2x32xf32>
    %380 = math.tanh %379 : vector<2x32xf32>
    %381 = arith.mulf %374, %380 : vector<2x32xf32>
    %382 = vector.shape_cast %381 : vector<2x32xf32> to vector<2x1x32xf32>
    %383 = vector.broadcast %382 : vector<2x1x32xf32> to vector<2x8x32xf32>
    %384 = arith.mulf %383, %358 : vector<2x8x32xf32>
    %cst_132 = arith.constant dense<0.000000e+00> : vector<2x8xf32>
    %385 = vector.multi_reduction <add>, %384, %cst_132 [2] : vector<2x8x32xf32> to vector<2x8xf32>
    %cst_133 = arith.constant dense<0xFF800000> : vector<2xf32>
    %386 = vector.multi_reduction <maximumf>, %385, %cst_133 [1] : vector<2x8xf32> to vector<2xf32>
    %387 = vector.shape_cast %386 : vector<2xf32> to vector<2x1xf32>
    %388 = vector.broadcast %387 : vector<2x1xf32> to vector<2x8xf32>
    %389 = arith.subf %385, %388 : vector<2x8xf32>
    %390 = math.exp %389 : vector<2x8xf32>
    %cst_134 = arith.constant dense<0.000000e+00> : vector<2xf32>
    %391 = vector.multi_reduction <add>, %390, %cst_134 [1] : vector<2x8xf32> to vector<2xf32>
    %392 = vector.shape_cast %391 : vector<2xf32> to vector<2x1xf32>
    %393 = vector.broadcast %392 : vector<2x1xf32> to vector<2x8xf32>
    %394 = arith.divf %390, %393 : vector<2x8xf32>
    %395 = vector.shape_cast %394 : vector<2x8xf32> to vector<2x8x1xf32>
    %396 = vector.broadcast %395 : vector<2x8x1xf32> to vector<2x8x32xf32>
    %397 = arith.mulf %396, %358 : vector<2x8x32xf32>
    %cst_135 = arith.constant dense<0.000000e+00> : vector<2x32xf32>
    %398 = vector.multi_reduction <add>, %397, %cst_135 [1] : vector<2x8x32xf32> to vector<2x32xf32>
    %c0_136 = arith.constant 0 : index
    %c0_137 = arith.constant 0 : index
    %399 = vector.load %arg10[%c0_136, %c0_137] : memref<2x96xf32, #tpu.memory_space<vmem>>, vector<2x32xf32>
    tpu.vector_store %arg10[%c0_136, %c0_137], %381 {strides = array<i32>} : memref<2x96xf32, #tpu.memory_space<vmem>>, vector<2x32xf32>,
    %c0_138 = arith.constant 0 : index
    %c32_139 = arith.constant 32 : index
    %400 = vector.load %arg10[%c0_138, %c32_139] : memref<2x96xf32, #tpu.memory_space<vmem>>, vector<2x32xf32>
    tpu.vector_store %arg10[%c0_138, %c32_139], %398 {strides = array<i32>} : memref<2x96xf32, #tpu.memory_space<vmem>>, vector<2x32xf32>,
    %c0_140 = arith.constant 0 : index
    %c64_141 = arith.constant 64 : index
    %401 = vector.load %arg10[%c0_140, %c64_141] : memref<2x96xf32, #tpu.memory_space<vmem>>, vector<2x32xf32>
    tpu.vector_store %arg10[%c0_140, %c64_141], %350 {strides = array<i32>} : memref<2x96xf32, #tpu.memory_space<vmem>>, vector<2x32xf32>,
    %c0_142 = arith.constant 0 : index
    %c0_143 = arith.constant 0 : index
    %402 = vector.load %arg10[%c0_142, %c0_143] : memref<2x96xf32, #tpu.memory_space<vmem>>, vector<2x96xf32>
    %403 = arith.truncf %402 : vector<2x96xf32> to vector<2x96xbf16>
    %cst_144 = arith.constant dense<0.000000e+00> : vector<2x128xf32>
    %404 = tpu.matmul %403, %1, %cst_144 {dimension_numbers = #tpu.dot_dimension_numbers<[1], [0], [0], [1], [0, 0, 1, 1], [], []>} : vector<2x96xbf16>, vector<96x128xbf16>, vector<2x128xf32> -> vector<2x128xf32>
    %405 = arith.addf %404, %2 : vector<2x128xf32>
    %406 = arith.negf %405 : vector<2x128xf32>
    %407 = math.exp %406 : vector<2x128xf32>
    %cst_145 = arith.constant 1.000000e+00 : f32
    %408 = vector.broadcast %cst_145 : f32 to vector<2x128xf32>
    %409 = arith.addf %408, %407 : vector<2x128xf32>
    %410 = arith.divf %408, %409 : vector<2x128xf32>
    %411 = vector.extract_strided_slice %410 {offsets = [0, 0], sizes = [2, 32], strides = [1, 1]} : vector<2x128xf32> to vector<2x32xf32>
    %412 = vector.extract_strided_slice %410 {offsets = [0, 32], sizes = [2, 32], strides = [1, 1]} : vector<2x128xf32> to vector<2x32xf32>
    %413 = vector.extract_strided_slice %410 {offsets = [0, 96], sizes = [2, 32], strides = [1, 1]} : vector<2x128xf32> to vector<2x32xf32>
    %414 = vector.extract_strided_slice %405 {offsets = [0, 64], sizes = [2, 32], strides = [1, 1]} : vector<2x128xf32> to vector<2x32xf32>
    %415 = math.tanh %414 : vector<2x32xf32>
    %416 = arith.mulf %412, %348 : vector<2x32xf32>
    %417 = arith.mulf %411, %415 : vector<2x32xf32>
    %418 = arith.addf %416, %417 : vector<2x32xf32>
    %419 = math.tanh %418 : vector<2x32xf32>
    %420 = arith.mulf %413, %419 : vector<2x32xf32>
    %cst_146 = arith.constant 1.000000e+00 : f32
    %421 = vector.broadcast %cst_146 : f32 to vector<2x8xf32>
    %422 = arith.subf %421, %394 : vector<2x8xf32>
    %423 = vector.shape_cast %422 : vector<2x8xf32> to vector<2x8x1xf32>
    %424 = vector.shape_cast %420 : vector<2x32xf32> to vector<2x1x32xf32>
    %425 = vector.broadcast %424 : vector<2x1x32xf32> to vector<2x8x32xf32>
    %426 = arith.addf %358, %425 : vector<2x8x32xf32>
    %427 = vector.broadcast %423 : vector<2x8x1xf32> to vector<2x8x32xf32>
    %428 = arith.mulf %427, %426 : vector<2x8x32xf32>
    %c5_147 = arith.constant 5 : index
    %c0_148 = arith.constant 0 : index
    %c0_149 = arith.constant 0 : index
    %429 = vector.load %arg7[%c5_147, %c0_148, %c0_149] : memref<8x2x32xf32, #tpu.memory_space<vmem>>, vector<1x2x32xf32>
    %430 = vector.shape_cast %429 : vector<1x2x32xf32> to vector<2x32xf32>
    %431 = vector.shape_cast %420 : vector<2x32xf32> to vector<1x2x32xf32>
    tpu.vector_store %arg7[%c5_147, %c0_148, %c0_149], %431 {strides = array<i32>} : memref<8x2x32xf32, #tpu.memory_space<vmem>>, vector<1x2x32xf32>,
    %c6 = arith.constant 6 : index
    %c0_150 = arith.constant 0 : index
    %c0_151 = arith.constant 0 : index
    %432 = vector.load %arg1[%c6, %c0_150, %c0_151] : memref<8x2x128xf32, #tpu.memory_space<vmem>>, vector<1x2x128xf32>
    %433 = vector.shape_cast %432 : vector<1x2x128xf32> to vector<2x128xf32>
    %434 = arith.truncf %381 : vector<2x32xf32> to vector<2x32xbf16>
    %cst_152 = arith.constant dense<0.000000e+00> : vector<2x128xf32>
    %435 = tpu.matmul %434, %0, %cst_152 {dimension_numbers = #tpu.dot_dimension_numbers<[1], [0], [0], [1], [0, 0, 1, 1], [], []>} : vector<2x32xbf16>, vector<32x128xbf16>, vector<2x128xf32> -> vector<2x128xf32>
    %436 = arith.addf %433, %435 : vector<2x128xf32>
    %437 = arith.negf %436 : vector<2x128xf32>
    %438 = math.exp %437 : vector<2x128xf32>
    %cst_153 = arith.constant 1.000000e+00 : f32
    %439 = vector.broadcast %cst_153 : f32 to vector<2x128xf32>
    %440 = arith.addf %439, %438 : vector<2x128xf32>
    %441 = arith.divf %439, %440 : vector<2x128xf32>
    %442 = vector.extract_strided_slice %441 {offsets = [0, 0], sizes = [2, 32], strides = [1, 1]} : vector<2x128xf32> to vector<2x32xf32>
    %443 = vector.extract_strided_slice %441 {offsets = [0, 32], sizes = [2, 32], strides = [1, 1]} : vector<2x128xf32> to vector<2x32xf32>
    %444 = vector.extract_strided_slice %441 {offsets = [0, 96], sizes = [2, 32], strides = [1, 1]} : vector<2x128xf32> to vector<2x32xf32>
    %445 = vector.extract_strided_slice %436 {offsets = [0, 64], sizes = [2, 32], strides = [1, 1]} : vector<2x128xf32> to vector<2x32xf32>
    %446 = math.tanh %445 : vector<2x32xf32>
    %447 = arith.mulf %443, %379 : vector<2x32xf32>
    %448 = arith.mulf %442, %446 : vector<2x32xf32>
    %449 = arith.addf %447, %448 : vector<2x32xf32>
    %450 = math.tanh %449 : vector<2x32xf32>
    %451 = arith.mulf %444, %450 : vector<2x32xf32>
    %452 = vector.shape_cast %451 : vector<2x32xf32> to vector<2x1x32xf32>
    %453 = vector.broadcast %452 : vector<2x1x32xf32> to vector<2x8x32xf32>
    %454 = arith.mulf %453, %428 : vector<2x8x32xf32>
    %cst_154 = arith.constant dense<0.000000e+00> : vector<2x8xf32>
    %455 = vector.multi_reduction <add>, %454, %cst_154 [2] : vector<2x8x32xf32> to vector<2x8xf32>
    %cst_155 = arith.constant dense<0xFF800000> : vector<2xf32>
    %456 = vector.multi_reduction <maximumf>, %455, %cst_155 [1] : vector<2x8xf32> to vector<2xf32>
    %457 = vector.shape_cast %456 : vector<2xf32> to vector<2x1xf32>
    %458 = vector.broadcast %457 : vector<2x1xf32> to vector<2x8xf32>
    %459 = arith.subf %455, %458 : vector<2x8xf32>
    %460 = math.exp %459 : vector<2x8xf32>
    %cst_156 = arith.constant dense<0.000000e+00> : vector<2xf32>
    %461 = vector.multi_reduction <add>, %460, %cst_156 [1] : vector<2x8xf32> to vector<2xf32>
    %462 = vector.shape_cast %461 : vector<2xf32> to vector<2x1xf32>
    %463 = vector.broadcast %462 : vector<2x1xf32> to vector<2x8xf32>
    %464 = arith.divf %460, %463 : vector<2x8xf32>
    %465 = vector.shape_cast %464 : vector<2x8xf32> to vector<2x8x1xf32>
    %466 = vector.broadcast %465 : vector<2x8x1xf32> to vector<2x8x32xf32>
    %467 = arith.mulf %466, %428 : vector<2x8x32xf32>
    %cst_157 = arith.constant dense<0.000000e+00> : vector<2x32xf32>
    %468 = vector.multi_reduction <add>, %467, %cst_157 [1] : vector<2x8x32xf32> to vector<2x32xf32>
    %c0_158 = arith.constant 0 : index
    %c0_159 = arith.constant 0 : index
    %469 = vector.load %arg10[%c0_158, %c0_159] : memref<2x96xf32, #tpu.memory_space<vmem>>, vector<2x32xf32>
    tpu.vector_store %arg10[%c0_158, %c0_159], %451 {strides = array<i32>} : memref<2x96xf32, #tpu.memory_space<vmem>>, vector<2x32xf32>,
    %c0_160 = arith.constant 0 : index
    %c32_161 = arith.constant 32 : index
    %470 = vector.load %arg10[%c0_160, %c32_161] : memref<2x96xf32, #tpu.memory_space<vmem>>, vector<2x32xf32>
    tpu.vector_store %arg10[%c0_160, %c32_161], %468 {strides = array<i32>} : memref<2x96xf32, #tpu.memory_space<vmem>>, vector<2x32xf32>,
    %c0_162 = arith.constant 0 : index
    %c64_163 = arith.constant 64 : index
    %471 = vector.load %arg10[%c0_162, %c64_163] : memref<2x96xf32, #tpu.memory_space<vmem>>, vector<2x32xf32>
    tpu.vector_store %arg10[%c0_162, %c64_163], %420 {strides = array<i32>} : memref<2x96xf32, #tpu.memory_space<vmem>>, vector<2x32xf32>,
    %c0_164 = arith.constant 0 : index
    %c0_165 = arith.constant 0 : index
    %472 = vector.load %arg10[%c0_164, %c0_165] : memref<2x96xf32, #tpu.memory_space<vmem>>, vector<2x96xf32>
    %473 = arith.truncf %472 : vector<2x96xf32> to vector<2x96xbf16>
    %cst_166 = arith.constant dense<0.000000e+00> : vector<2x128xf32>
    %474 = tpu.matmul %473, %1, %cst_166 {dimension_numbers = #tpu.dot_dimension_numbers<[1], [0], [0], [1], [0, 0, 1, 1], [], []>} : vector<2x96xbf16>, vector<96x128xbf16>, vector<2x128xf32> -> vector<2x128xf32>
    %475 = arith.addf %474, %2 : vector<2x128xf32>
    %476 = arith.negf %475 : vector<2x128xf32>
    %477 = math.exp %476 : vector<2x128xf32>
    %cst_167 = arith.constant 1.000000e+00 : f32
    %478 = vector.broadcast %cst_167 : f32 to vector<2x128xf32>
    %479 = arith.addf %478, %477 : vector<2x128xf32>
    %480 = arith.divf %478, %479 : vector<2x128xf32>
    %481 = vector.extract_strided_slice %480 {offsets = [0, 0], sizes = [2, 32], strides = [1, 1]} : vector<2x128xf32> to vector<2x32xf32>
    %482 = vector.extract_strided_slice %480 {offsets = [0, 32], sizes = [2, 32], strides = [1, 1]} : vector<2x128xf32> to vector<2x32xf32>
    %483 = vector.extract_strided_slice %480 {offsets = [0, 96], sizes = [2, 32], strides = [1, 1]} : vector<2x128xf32> to vector<2x32xf32>
    %484 = vector.extract_strided_slice %475 {offsets = [0, 64], sizes = [2, 32], strides = [1, 1]} : vector<2x128xf32> to vector<2x32xf32>
    %485 = math.tanh %484 : vector<2x32xf32>
    %486 = arith.mulf %482, %418 : vector<2x32xf32>
    %487 = arith.mulf %481, %485 : vector<2x32xf32>
    %488 = arith.addf %486, %487 : vector<2x32xf32>
    %489 = math.tanh %488 : vector<2x32xf32>
    %490 = arith.mulf %483, %489 : vector<2x32xf32>
    %cst_168 = arith.constant 1.000000e+00 : f32
    %491 = vector.broadcast %cst_168 : f32 to vector<2x8xf32>
    %492 = arith.subf %491, %464 : vector<2x8xf32>
    %493 = vector.shape_cast %492 : vector<2x8xf32> to vector<2x8x1xf32>
    %494 = vector.shape_cast %490 : vector<2x32xf32> to vector<2x1x32xf32>
    %495 = vector.broadcast %494 : vector<2x1x32xf32> to vector<2x8x32xf32>
    %496 = arith.addf %428, %495 : vector<2x8x32xf32>
    %497 = vector.broadcast %493 : vector<2x8x1xf32> to vector<2x8x32xf32>
    %498 = arith.mulf %497, %496 : vector<2x8x32xf32>
    %c6_169 = arith.constant 6 : index
    %c0_170 = arith.constant 0 : index
    %c0_171 = arith.constant 0 : index
    %499 = vector.load %arg7[%c6_169, %c0_170, %c0_171] : memref<8x2x32xf32, #tpu.memory_space<vmem>>, vector<1x2x32xf32>
    %500 = vector.shape_cast %499 : vector<1x2x32xf32> to vector<2x32xf32>
    %501 = vector.shape_cast %490 : vector<2x32xf32> to vector<1x2x32xf32>
    tpu.vector_store %arg7[%c6_169, %c0_170, %c0_171], %501 {strides = array<i32>} : memref<8x2x32xf32, #tpu.memory_space<vmem>>, vector<1x2x32xf32>,
    %c7 = arith.constant 7 : index
    %c0_172 = arith.constant 0 : index
    %c0_173 = arith.constant 0 : index
    %502 = vector.load %arg1[%c7, %c0_172, %c0_173] : memref<8x2x128xf32, #tpu.memory_space<vmem>>, vector<1x2x128xf32>
    %503 = vector.shape_cast %502 : vector<1x2x128xf32> to vector<2x128xf32>
    %504 = arith.truncf %451 : vector<2x32xf32> to vector<2x32xbf16>
    %cst_174 = arith.constant dense<0.000000e+00> : vector<2x128xf32>
    %505 = tpu.matmul %504, %0, %cst_174 {dimension_numbers = #tpu.dot_dimension_numbers<[1], [0], [0], [1], [0, 0, 1, 1], [], []>} : vector<2x32xbf16>, vector<32x128xbf16>, vector<2x128xf32> -> vector<2x128xf32>
    %506 = arith.addf %503, %505 : vector<2x128xf32>
    %507 = arith.negf %506 : vector<2x128xf32>
    %508 = math.exp %507 : vector<2x128xf32>
    %cst_175 = arith.constant 1.000000e+00 : f32
    %509 = vector.broadcast %cst_175 : f32 to vector<2x128xf32>
    %510 = arith.addf %509, %508 : vector<2x128xf32>
    %511 = arith.divf %509, %510 : vector<2x128xf32>
    %512 = vector.extract_strided_slice %511 {offsets = [0, 0], sizes = [2, 32], strides = [1, 1]} : vector<2x128xf32> to vector<2x32xf32>
    %513 = vector.extract_strided_slice %511 {offsets = [0, 32], sizes = [2, 32], strides = [1, 1]} : vector<2x128xf32> to vector<2x32xf32>
    %514 = vector.extract_strided_slice %511 {offsets = [0, 96], sizes = [2, 32], strides = [1, 1]} : vector<2x128xf32> to vector<2x32xf32>
    %515 = vector.extract_strided_slice %506 {offsets = [0, 64], sizes = [2, 32], strides = [1, 1]} : vector<2x128xf32> to vector<2x32xf32>
    %516 = math.tanh %515 : vector<2x32xf32>
    %517 = arith.mulf %513, %449 : vector<2x32xf32>
    %518 = arith.mulf %512, %516 : vector<2x32xf32>
    %519 = arith.addf %517, %518 : vector<2x32xf32>
    %520 = math.tanh %519 : vector<2x32xf32>
    %521 = arith.mulf %514, %520 : vector<2x32xf32>
    %522 = vector.shape_cast %521 : vector<2x32xf32> to vector<2x1x32xf32>
    %523 = vector.broadcast %522 : vector<2x1x32xf32> to vector<2x8x32xf32>
    %524 = arith.mulf %523, %498 : vector<2x8x32xf32>
    %cst_176 = arith.constant dense<0.000000e+00> : vector<2x8xf32>
    %525 = vector.multi_reduction <add>, %524, %cst_176 [2] : vector<2x8x32xf32> to vector<2x8xf32>
    %cst_177 = arith.constant dense<0xFF800000> : vector<2xf32>
    %526 = vector.multi_reduction <maximumf>, %525, %cst_177 [1] : vector<2x8xf32> to vector<2xf32>
    %527 = vector.shape_cast %526 : vector<2xf32> to vector<2x1xf32>
    %528 = vector.broadcast %527 : vector<2x1xf32> to vector<2x8xf32>
    %529 = arith.subf %525, %528 : vector<2x8xf32>
    %530 = math.exp %529 : vector<2x8xf32>
    %cst_178 = arith.constant dense<0.000000e+00> : vector<2xf32>
    %531 = vector.multi_reduction <add>, %530, %cst_178 [1] : vector<2x8xf32> to vector<2xf32>
    %532 = vector.shape_cast %531 : vector<2xf32> to vector<2x1xf32>
    %533 = vector.broadcast %532 : vector<2x1xf32> to vector<2x8xf32>
    %534 = arith.divf %530, %533 : vector<2x8xf32>
    %535 = vector.shape_cast %534 : vector<2x8xf32> to vector<2x8x1xf32>
    %536 = vector.broadcast %535 : vector<2x8x1xf32> to vector<2x8x32xf32>
    %537 = arith.mulf %536, %498 : vector<2x8x32xf32>
    %cst_179 = arith.constant dense<0.000000e+00> : vector<2x32xf32>
    %538 = vector.multi_reduction <add>, %537, %cst_179 [1] : vector<2x8x32xf32> to vector<2x32xf32>
    %c0_180 = arith.constant 0 : index
    %c0_181 = arith.constant 0 : index
    %539 = vector.load %arg10[%c0_180, %c0_181] : memref<2x96xf32, #tpu.memory_space<vmem>>, vector<2x32xf32>
    tpu.vector_store %arg10[%c0_180, %c0_181], %521 {strides = array<i32>} : memref<2x96xf32, #tpu.memory_space<vmem>>, vector<2x32xf32>,
    %c0_182 = arith.constant 0 : index
    %c32_183 = arith.constant 32 : index
    %540 = vector.load %arg10[%c0_182, %c32_183] : memref<2x96xf32, #tpu.memory_space<vmem>>, vector<2x32xf32>
    tpu.vector_store %arg10[%c0_182, %c32_183], %538 {strides = array<i32>} : memref<2x96xf32, #tpu.memory_space<vmem>>, vector<2x32xf32>,
    %c0_184 = arith.constant 0 : index
    %c64_185 = arith.constant 64 : index
    %541 = vector.load %arg10[%c0_184, %c64_185] : memref<2x96xf32, #tpu.memory_space<vmem>>, vector<2x32xf32>
    tpu.vector_store %arg10[%c0_184, %c64_185], %490 {strides = array<i32>} : memref<2x96xf32, #tpu.memory_space<vmem>>, vector<2x32xf32>,
    %c0_186 = arith.constant 0 : index
    %c0_187 = arith.constant 0 : index
    %542 = vector.load %arg10[%c0_186, %c0_187] : memref<2x96xf32, #tpu.memory_space<vmem>>, vector<2x96xf32>
    %543 = arith.truncf %542 : vector<2x96xf32> to vector<2x96xbf16>
    %cst_188 = arith.constant dense<0.000000e+00> : vector<2x128xf32>
    %544 = tpu.matmul %543, %1, %cst_188 {dimension_numbers = #tpu.dot_dimension_numbers<[1], [0], [0], [1], [0, 0, 1, 1], [], []>} : vector<2x96xbf16>, vector<96x128xbf16>, vector<2x128xf32> -> vector<2x128xf32>
    %545 = arith.addf %544, %2 : vector<2x128xf32>
    %546 = arith.negf %545 : vector<2x128xf32>
    %547 = math.exp %546 : vector<2x128xf32>
    %cst_189 = arith.constant 1.000000e+00 : f32
    %548 = vector.broadcast %cst_189 : f32 to vector<2x128xf32>
    %549 = arith.addf %548, %547 : vector<2x128xf32>
    %550 = arith.divf %548, %549 : vector<2x128xf32>
    %551 = vector.extract_strided_slice %550 {offsets = [0, 0], sizes = [2, 32], strides = [1, 1]} : vector<2x128xf32> to vector<2x32xf32>
    %552 = vector.extract_strided_slice %550 {offsets = [0, 32], sizes = [2, 32], strides = [1, 1]} : vector<2x128xf32> to vector<2x32xf32>
    %553 = vector.extract_strided_slice %550 {offsets = [0, 96], sizes = [2, 32], strides = [1, 1]} : vector<2x128xf32> to vector<2x32xf32>
    %554 = vector.extract_strided_slice %545 {offsets = [0, 64], sizes = [2, 32], strides = [1, 1]} : vector<2x128xf32> to vector<2x32xf32>
    %555 = math.tanh %554 : vector<2x32xf32>
    %556 = arith.mulf %552, %488 : vector<2x32xf32>
    %557 = arith.mulf %551, %555 : vector<2x32xf32>
    %558 = arith.addf %556, %557 : vector<2x32xf32>
    %559 = math.tanh %558 : vector<2x32xf32>
    %560 = arith.mulf %553, %559 : vector<2x32xf32>
    %cst_190 = arith.constant 1.000000e+00 : f32
    %561 = vector.broadcast %cst_190 : f32 to vector<2x8xf32>
    %562 = arith.subf %561, %534 : vector<2x8xf32>
    %563 = vector.shape_cast %562 : vector<2x8xf32> to vector<2x8x1xf32>
    %564 = vector.shape_cast %560 : vector<2x32xf32> to vector<2x1x32xf32>
    %565 = vector.broadcast %564 : vector<2x1x32xf32> to vector<2x8x32xf32>
    %566 = arith.addf %498, %565 : vector<2x8x32xf32>
    %567 = vector.broadcast %563 : vector<2x8x1xf32> to vector<2x8x32xf32>
    %568 = arith.mulf %567, %566 : vector<2x8x32xf32>
    %c7_191 = arith.constant 7 : index
    %c0_192 = arith.constant 0 : index
    %c0_193 = arith.constant 0 : index
    %569 = vector.load %arg7[%c7_191, %c0_192, %c0_193] : memref<8x2x32xf32, #tpu.memory_space<vmem>>, vector<1x2x32xf32>
    %570 = vector.shape_cast %569 : vector<1x2x32xf32> to vector<2x32xf32>
    %571 = vector.shape_cast %560 : vector<2x32xf32> to vector<1x2x32xf32>
    tpu.vector_store %arg7[%c7_191, %c0_192, %c0_193], %571 {strides = array<i32>} : memref<8x2x32xf32, #tpu.memory_space<vmem>>, vector<1x2x32xf32>,
    %c0_194 = arith.constant 0 : index
    %c0_195 = arith.constant 0 : index
    %c0_196 = arith.constant 0 : index
    %572 = vector.load %arg8[%c0_194, %c0_195, %c0_196] : memref<4x2x32xf32, #tpu.memory_space<vmem>>, vector<1x2x32xf32>
    %573 = vector.shape_cast %572 : vector<1x2x32xf32> to vector<2x32xf32>
    %574 = vector.shape_cast %521 : vector<2x32xf32> to vector<1x2x32xf32>
    tpu.vector_store %arg8[%c0_194, %c0_195, %c0_196], %574 {strides = array<i32>} : memref<4x2x32xf32, #tpu.memory_space<vmem>>, vector<1x2x32xf32>,
    %c1_197 = arith.constant 1 : index
    %c0_198 = arith.constant 0 : index
    %c0_199 = arith.constant 0 : index
    %575 = vector.load %arg8[%c1_197, %c0_198, %c0_199] : memref<4x2x32xf32, #tpu.memory_space<vmem>>, vector<1x2x32xf32>
    %576 = vector.shape_cast %575 : vector<1x2x32xf32> to vector<2x32xf32>
    %577 = vector.shape_cast %519 : vector<2x32xf32> to vector<1x2x32xf32>
    tpu.vector_store %arg8[%c1_197, %c0_198, %c0_199], %577 {strides = array<i32>} : memref<4x2x32xf32, #tpu.memory_space<vmem>>, vector<1x2x32xf32>,
    %c2_200 = arith.constant 2 : index
    %c0_201 = arith.constant 0 : index
    %c0_202 = arith.constant 0 : index
    %578 = vector.load %arg8[%c2_200, %c0_201, %c0_202] : memref<4x2x32xf32, #tpu.memory_space<vmem>>, vector<1x2x32xf32>
    %579 = vector.shape_cast %578 : vector<1x2x32xf32> to vector<2x32xf32>
    %580 = vector.shape_cast %560 : vector<2x32xf32> to vector<1x2x32xf32>
    tpu.vector_store %arg8[%c2_200, %c0_201, %c0_202], %580 {strides = array<i32>} : memref<4x2x32xf32, #tpu.memory_space<vmem>>, vector<1x2x32xf32>,
    %c3_203 = arith.constant 3 : index
    %c0_204 = arith.constant 0 : index
    %c0_205 = arith.constant 0 : index
    %581 = vector.load %arg8[%c3_203, %c0_204, %c0_205] : memref<4x2x32xf32, #tpu.memory_space<vmem>>, vector<1x2x32xf32>
    %582 = vector.shape_cast %581 : vector<1x2x32xf32> to vector<2x32xf32>
    %583 = vector.shape_cast %558 : vector<2x32xf32> to vector<1x2x32xf32>
    tpu.vector_store %arg8[%c3_203, %c0_204, %c0_205], %583 {strides = array<i32>} : memref<4x2x32xf32, #tpu.memory_space<vmem>>, vector<1x2x32xf32>,
    %c0_206 = arith.constant 0 : index
    %c0_207 = arith.constant 0 : index
    %c0_208 = arith.constant 0 : index
    %584 = vector.load %arg9[%c0_206, %c0_207, %c0_208] : memref<2x8x32xf32, #tpu.memory_space<vmem>>, vector<2x8x32xf32>
    tpu.vector_store %arg9[%c0_206, %c0_207, %c0_208], %568 {strides = array<i32>} : memref<2x8x32xf32, #tpu.memory_space<vmem>>, vector<2x8x32xf32>,
    return
  }
  func.func @transform_0(%arg0: i32) -> (i32, i32, i32) {
    %c0_i32 = arith.constant 0 : i32
    %c0_i32_0 = arith.constant 0 : i32
    %c0_i32_1 = arith.constant 0 : i32
    %c0_i32_2 = arith.constant 0 : i32
    return %c0_i32, %c0_i32_0, %c0_i32_1 : i32, i32, i32
  }
  func.func @transform_1(%arg0: i32) -> (i32, i32, i32) {
    %c0_i32 = arith.constant 0 : i32
    %c0_i32_0 = arith.constant 0 : i32
    %c0_i32_1 = arith.constant 0 : i32
    %c0_i32_2 = arith.constant 0 : i32
    return %c0_i32, %c0_i32_0, %c0_i32_1 : i32, i32, i32
  }
  func.func @transform_2(%arg0: i32) -> (i32, i32, i32) {
    %c0_i32 = arith.constant 0 : i32
    %c0_i32_0 = arith.constant 0 : i32
    %c0_i32_1 = arith.constant 0 : i32
    %c0_i32_2 = arith.constant 0 : i32
    return %c0_i32, %c0_i32_0, %c0_i32_1 : i32, i32, i32
  }
  func.func @transform_3(%arg0: i32) -> (i32, i32) {
    %c0_i32 = arith.constant 0 : i32
    %c0_i32_0 = arith.constant 0 : i32
    %c0_i32_1 = arith.constant 0 : i32
    return %c0_i32, %c0_i32_0 : i32, i32
  }
  func.func @transform_4(%arg0: i32) -> (i32, i32) {
    %c0_i32 = arith.constant 0 : i32
    %c0_i32_0 = arith.constant 0 : i32
    %c0_i32_1 = arith.constant 0 : i32
    return %c0_i32, %c0_i32_0 : i32, i32
  }
  func.func @transform_5(%arg0: i32) -> (i32, i32) {
    %c0_i32 = arith.constant 0 : i32
    %c0_i32_0 = arith.constant 0 : i32
    %c0_i32_1 = arith.constant 0 : i32
    return %c0_i32, %c0_i32_0 : i32, i32
  }
  func.func @transform_6(%arg0: i32) -> (i32, i32, i32) {
    %c0_i32 = arith.constant 0 : i32
    %c0_i32_0 = arith.constant 0 : i32
    %c0_i32_1 = arith.constant 0 : i32
    %c0_i32_2 = arith.constant 0 : i32
    return %c0_i32, %c0_i32_0, %c0_i32_1 : i32, i32, i32
  }
  func.func @transform_7(%arg0: i32) -> (i32, i32, i32) {
    %c0_i32 = arith.constant 0 : i32
    %c0_i32_0 = arith.constant 0 : i32
    %c0_i32_1 = arith.constant 0 : i32
    %c0_i32_2 = arith.constant 0 : i32
    return %c0_i32, %c0_i32_0, %c0_i32_1 : i32, i32, i32
  }
  func.func @transform_8(%arg0: i32) -> (i32, i32, i32) {
    %c0_i32 = arith.constant 0 : i32
    %c0_i32_0 = arith.constant 0 : i32
    %c0_i32_1 = arith.constant 0 : i32
    %c0_i32_2 = arith.constant 0 : i32
    return %c0_i32, %c0_i32_0, %c0_i32_1 : i32, i32, i32
  }
}

</mosaic_0001>

<bundles_post_ra>
// kernel: nse_forward.1
= control target key start
LH: loop header
LB: loop body
LE: loop exit
PB: predicated region body
PF: predicated region fallthrough
CT: control target
= control target key end

     0   :  { %14 = vsyncpa [#allocation4], 0  ;;  %v3710_v1 = vmov 0.0   ;;  %vm3711_vm0 = vmmov 0   ;;  %vm69_vm1 = vcmask 261120   ;;  %s4830_s0 = inlined_call_operand.vmem [shape: f32[8,2,128], index: 0, kind: input, shape index: {}]   ;;  %s4831_s1 = inlined_call_operand.vmem [shape: f32[2,8,32], index: 1, kind: input, shape index: {}]   ;;  %s4832_s2 = inlined_call_operand.vmem [shape: f32[4,2,32], index: 2, kind: input, shape index: {}]   ;;  %s4833_s3 = inlined_call_operand.vmem [shape: bf16[32,128], index: 3, kind: input, shape index: {}]   ;;  %s4834_s4 = inlined_call_operand.vmem [shape: bf16[96,128], index: 4, kind: input, shape index: {}]   ;;  %s4835_s5 = inlined_call_operand.vmem [shape: f32[2,128], index: 5, kind: input, shape index: {}]   ;;  %s4836_s6 = inlined_call_operand.hbm [shape: f32[8,2,32], index: 6, kind: output, shape index: {0}]   ;;  %s4837_s7 = inlined_call_operand.vmem [shape: f32[4,2,32], index: 7, kind: output, shape index: {1}]   ;;  %s4838_s8 = inlined_call_operand.hbm [shape: f32[2,8,32], index: 8, kind: output, shape index: {2}]  }
   0x1   :  { %v3770_v0 = vld [vmem:[%s4833_s3] sm:$0xff]   ;;  %3238 = vmatprep.subr.bf16.mxu1 %v3710_v1  ;;  %3262 = vmatprep.subr.bf16.mxu0 %v3710_v1  ;;  %v3778_v2 = vld [vmem:[%s4833_s3 + $0x8] sm:$0xff]  }
   0x2   :  { %3239 = vmatpush3.bf16.msra.mxu1 %v3770_v0  ;;  %3242 = vmatprep.mubr.msk.bf16.mxu1 %vm3711_vm0, %v3710_v1  ;;  %v46_v3 = vld [vmem:[%s4832_s2] sm:$0x3] }
   0x3   :  { %3240 = vmatprep.subr.bf16.mxu1 %v3710_v1  ;;  %3263 = vmatpush3.bf16.msra.mxu0 %v3770_v0  ;;  %v56_v4 = vpack.c.bf16 %v46_v3, %v46_v3 }
   0x4   :  { %3264 = vmatprep.subr.bf16.mxu0 %v3710_v1  ;;  %3266 = vmatprep.mubr.msk.bf16.mxu0 %vm3711_vm0, %v3710_v1 }
   0x6   :  { %3241 = vmatpush3.bf16.msra.mxu1 %v3778_v2 }
   0x7   :  { %3265 = vmatpush3.bf16.msra.mxu0 %v3778_v2  ;;  %3246 = vmatprep.subr.bf16.mxu1 %v3710_v1 }
   0x8   :  { %15 = vsyncpa [#allocation6], 0  ;;  %3270 = vmatprep.subr.bf16.mxu0 %v3710_v1  ;;  %v55_v5 = vld [vmem:[%s4830_s0] sm:$0x3]  ;;  %s3712_s13 = smov 64   ;;  %s3713_s16 = smov 32   ;;  %v146_v28 = vlaneseq }
   0x9   :  { %3243 = vmatmul.mubr.msk.bf16.vlgmr.msra.gmra.mrb[0].mxu1 %vm69_vm1, %v56_v4  ;;  %v3105_v12 = vld [vmem:[%s4832_s2 + $0x2] sm:$0x3]  ;;  %s3714_s19 = smov 96   ;;  %v3820_v25 = vld [vmem:[%s4831_s1 + $0x8] sm:$0xff]  ;;  %v3715_v26 = vmov 1966171168  }
   0xa   :  { %3258 = vmatprep.mubr.msk.bf16.mxu1 %vm3711_vm0, %v3710_v1  ;;  %v3809_v19 = vld [vmem:[%s4831_s1] sm:$0xff]  ;;  %v144_v27 = vunpack.c.l.s4 %v3715_v26  ;;  %v147_v30 = vshrl.u32 %v146_v28, 7  ;;  %v202_v49 = vand.u32 127, %v146_v28  ;;  %vm211_vm2 = vcmask 1041409   ;;  %v3880_v26 = vld [vmem:[%s4834_s4 + $0x8] sm:$0xff]  }
   0xb   :  { %vm214_vm3 = vcmask 58368   ;;  %v3716_v57 = vmov 0   ;;  %vm300_vm4 = vcmask 254976   ;;  %vm308_vm5 = vcmask 517376  }
   0xc   :  { %v145_v29 = vunpack.c.0.s8 %v144_v27  ;;  %v3830_v35 = vsub.s32 0, %v147_v30  ;;  %v3840_v50 = vsub.s32 %v202_v49, %v147_v30  ;;  %3443 = vset.pattern.permute.xlu1 %v3716_v57  ;;  %3442 = vset.pattern.permute.xlu0 %v3716_v57  ;;  %v3846_v58 = vsub.s32 1, %v147_v30  ;;  %v3887_v27 = vld [vmem:[%s4834_s4 + $0x10] sm:$0xff]   ;;  %v3914_v49 = vld [vmem:[%s4834_s4 + $0x28] sm:$0xff]  }
   0xd   :  { %vm314_vm6 = vcmask 779776   ;;  %vm354_vm7 = vcmask 785408  }
   0xe   :  { %v3824_v31 = vsub.s32 %v145_v29, %v147_v30 }
  0xdc   :  { %v107_v6 = vpop.f32.mrb[0].mxu1 }
  0xdd   :  { %v113_v7 = vadd.f32 %v107_v6, %v55_v5  ;;  %v3244_v8 = vpop.f32.mrb[1].mxu1 }
  0xde   :  { %v110_v9 = vpop.f32.mrb[2].mxu1 }
  0xdf   :  { %3452 = vtanh.f32 %v113_v7  ;;  %v3245_v10 = vpop.f32.mrb[3].mxu1  ;;  %v3111_v13 = vmul.f32 -1.442695, %v113_v7 }
  0xe1   :  { %3454 = vpow2.f32 %v3111_v13 }
  0xe9   :  { %v3453_v11 = vpop.eup %3452 }
  0xea   :  { %127 = vrot.lane.b32.xlu0 %v3453_v11, %s3712_s13 }
  0xeb   :  { %v3455_v14 = vpop.eup %3454 }
  0xec   :  { %v117_v15 = vadd.f32 1.0, %v3455_v14 }
  0xee   :  { %122 = vrot.lane.b32.xlu0 %v3105_v12, %s3713_s16  ;;  %3456 = vrcp.f32 %v117_v15 }
  0xf2   :  { %177 = vrot.lane.b32.xlu0 %v3809_v19, %s3714_s19 }
  0xf8   :  { %v3457_v16 = vpop.eup %3456 }
 0x15c   :  { %v128_v17 = vpop.permute.xlu0 %127 }
 0x15d   :  { %v130_v18 = vmul.f32 %v3457_v16, %v128_v17 }
 0x15f   :  { %132 = vrot.lane.b32.xlu1 %v130_v18, %s3713_s16 }
 0x160   :  { %v123_v20 = vpop.permute.xlu0 %122 }
 0x161   :  { %v125_v21 = vmul.f32 %v3457_v16, %v123_v20 }
 0x164   :  { %v178_v38 = vpop.permute.xlu0 %177 }
 0x1d1   :  { %v133_v22 = vpop.permute.xlu1 %132 }
 0x1d2   :  { %v3813_v23 = vadd.f32 %v133_v22, %v125_v21  ;;  %v3106_v21 = vld [vmem:[%s4832_s2 + $0x4] sm:$0x3] }
 0x1d4   :  { %3458 = vtanh.f32 %v3813_v23 }
 0x1de   :  { %v3459_v24 = vpop.eup %3458 }
 0x1df   :  { %138 = vrot.lane.b32.xlu1 %v3459_v24, %s3712_s13  ;;  %v3874_v24 = vld [vmem:[%s4834_s4] sm:$0xff]  }
 0x1e0   :  { %3247 = vmatpush3.bf16.msra.mxu1 %v3874_v24 }
 0x1e1   :  { %3248 = vmatprep.subr.bf16.mxu1 %v3710_v1 }
 0x1e3   :  { %179 = vrot.lane.b32.xlu1 %v3820_v25, %s3714_s19 }
 0x1e4   :  { %3249 = vmatpush3.bf16.msra.mxu1 %v3880_v26 }
 0x1e5   :  { %3250 = vmatprep.subr.bf16.mxu1 %v3710_v1 }
 0x1e8   :  { %3251 = vmatpush3.bf16.msra.mxu1 %v3887_v27 }
 0x1e9   :  { %3252 = vmatprep.subr.bf16.mxu1 %v3710_v1 }
 0x251   :  { %v139_v32 = vpop.permute.xlu1 %138 }
 0x252   :  { %v3826_v33 = vmul.f32 %v3457_v16, %v139_v32 }
 0x254   :  { %v149_v34 = vrot.slane %v3826_v33, %v3824_v31  ;;  %v485_v22 = vpack.c.bf16 %v3826_v33, %v3826_v33 }
 0x255   :  { %v180_v41 = vpop.permute.xlu1 %179 }
 0x256   :  { %v157_v36 = vrot.slane %v149_v34, %v3824_v31  ;;  %v150_v37 = vcombine.high %v149_v34, %v149_v34 }
 0x258   :  { %v168_v39 = vrot.slane %v157_v36, %v3830_v35  ;;  %v164_v40 = vrot.slane %v150_v37, %v3824_v31 }
 0x25a   :  { %v183_v42 = vmul.f32 %v178_v38, %v168_v39  ;;  %v172_v43 = vrot.slane %v164_v40, %v3830_v35  ;;  %v3899_v38 = vld [vmem:[%s4834_s4 + $0x18] sm:$0xff]  }
 0x25b   :  { %3253 = vmatpush3.bf16.msra.mxu1 %v3899_v38 }
 0x25c   :  { %v184_v44 = vmul.f32 %v180_v41, %v172_v43  ;;  %187 = vrot.lane.b32.xlu0 %v183_v42, %s3713_s16  ;;  %3254 = vmatprep.subr.bf16.mxu1 %v3710_v1 }
 0x25e   :  { %189 = vrot.lane.b32.xlu1 %v184_v44, %s3713_s16  ;;  %v3907_v44 = vld [vmem:[%s4834_s4 + $0x20] sm:$0xff]  }
 0x25f   :  { %3255 = vmatpush3.bf16.msra.mxu1 %v3907_v44 }
 0x260   :  { %3256 = vmatprep.subr.bf16.mxu1 %v3710_v1 }
 0x263   :  { %3257 = vmatpush3.bf16.msra.mxu1 %v3914_v49 }
 0x264   :  { %3286 = vmatprep.subr.bf16.mxu1 %v3710_v1 }
 0x2ce   :  { %v188_v45 = vpop.permute.xlu0 %187 }
 0x2cf   :  { %v193_v46 = vsel %vm69_vm1, %v188_v45, 0.0 }
 0x2d0   :  { %194 = vadd.xlane.f32.xlu0 %v193_v46  ;;  %v190_v47 = vpop.permute.xlu1 %189 }
 0x2d1   :  { %v196_v48 = vsel %vm69_vm1, %v190_v47, 0.0 }
 0x2d2   :  { %197 = vadd.xlane.f32.xlu1 %v196_v48 }
 0x35d   :  { %v195_v51 = vpop.xlane.xlu0 %194 }
 0x35e   :  { %v206_v53 = vrot.slane %v195_v51, %v3840_v50 }
 0x35f   :  { %v198_v52 = vpop.xlane.xlu1 %197 }
 0x360   :  { %v210_v54 = vrot.slane %v198_v52, %v3840_v50 }
 0x362   :  { %v212_v55 = vsel %vm211_vm2, %v210_v54, %v206_v53 }
 0x363   :  { %v215_v56 = vsel %vm214_vm3, %v212_v55, -inf }
 0x364   :  { %216 = vmax.xlane.f32.xlu0 %v215_v56 }
 0x3f1   :  { %v217_v59 = vpop.xlane.xlu0 %216 }
 0x3f2   :  { %v222_v60 = vrot.slane %v217_v59, %v3830_v35  ;;  %v226_v61 = vrot.slane %v217_v59, %v3846_v58 }
 0x3f4   :  { %v229_v62 = vsub.f32 %v195_v51, %v222_v60  ;;  %v230_v63 = vsub.f32 %v198_v52, %v226_v61 }
 0x3f6   :  { %v231_v3 = vmul.f32 1.442695, %v229_v62  ;;  %v233_v4 = vmul.f32 1.442695, %v230_v63 }
 0x3f8   :  { %3460 = vpow2.f32 %v231_v3  ;;  %v3947_v3 = vld [vmem:[%s4835_s5] sm:$0x3] }
 0x3f9   :  { %3462 = vpow2.f32 %v233_v4 }
 0x402   :  { %v3461_v5 = vpop.eup %3460 }
 0x403   :  { %v3463_v6 = vpop.eup %3462  ;;  %238 = vperm.xlu0 %3442, %v3461_v5  }
 0x404   :  { %241 = vperm.xlu1 %3443, %v3463_v6  }
 0x482   :  { %v239_v7 = vpop.permute.xlu0 %238 }
 0x483   :  { %v242_v8 = vpop.permute.xlu1 %241  ;;  %v246_v9 = vrot.slane %v239_v7, %v3840_v50 }
 0x484   :  { %v250_v10 = vrot.slane %v242_v8, %v3840_v50 }
 0x486   :  { %v251_v11 = vsel %vm211_vm2, %v250_v10, %v246_v9  ;;  %v3120_v9 = vld [vmem:[%s4830_s0 + $0x2] sm:$0x3] }
 0x487   :  { %v253_v12 = vsel %vm214_vm3, %v251_v11, 0.0 }
 0x488   :  { %254 = vadd.xlane.f32.xlu1 %v253_v12  ;;  %v3107_v12 = vld [vmem:[%s4832_s2 + $0x6] sm:$0x3] }
 0x515   :  { %v255_v13 = vpop.xlane.xlu1 %254 }
 0x516   :  { %v260_v14 = vrot.slane %v255_v13, %v3830_v35  ;;  %v264_v15 = vrot.slane %v255_v13, %v3846_v58 }
 0x518   :  { %3464 = vrcp.f32 %v260_v14 }
 0x519   :  { %3466 = vrcp.f32 %v264_v15 }
 0x522   :  { %v3465_v16 = vpop.eup %3464 }
 0x523   :  { %v3856_v17 = vmul.f32 %v3465_v16, %v3461_v5  ;;  %v3467_v18 = vpop.eup %3466 }
 0x524   :  { %v3859_v20 = vmul.f32 %v3467_v18, %v3463_v6 }
 0x525   :  { %273 = vperm.xlu0 %3442, %v3856_v17  }
 0x529   :  { %278 = vperm.xlu0 %3442, %v3859_v20  }
 0x52d   :  { %297 = vrot.lane.b32.xlu0 %v3826_v33, %s3713_s16 }
 0x531   :  { %311 = vrot.lane.b32.xlu0 %v3106_v21, %s3712_s13 }
 0x535   :  { %487 = vrot.lane.b32.xlu0 %v485_v22, %s3713_s16 }
 0x5a4   :  { %v274_v28 = vpop.permute.xlu0 %273 }
 0x5a5   :  { %v281_v29 = vmul.f32 %v274_v28, %v3809_v19 }
 0x5a7   :  { %v283_v30 = vsel %vm69_vm1, %v281_v29, 0.0 }
 0x5a8   :  { %v284_v32 = vrot.slane %v283_v30, 4  ;;  %v279_v33 = vpop.permute.xlu0 %278 }
 0x5a9   :  { %v282_v34 = vmul.f32 %v279_v33, %v3820_v25 }
 0x5aa   :  { %v285_v36 = vadd.f32 %v284_v32, %v283_v30 }
 0x5ab   :  { %v290_v37 = vsel %vm69_vm1, %v282_v34, 0.0 }
 0x5ac   :  { %v286_v39 = vrot.slane %v285_v36, 2  ;;  %v291_v40 = vrot.slane %v290_v37, 4  ;;  %v298_v41 = vpop.permute.xlu0 %297 }
 0x5ad   :  { %301 = vst.msk [vmem:[#allocation2] sm:$0x3] %vm300_vm4, %v298_v41 }
 0x5ae   :  { %v287_v42 = vadd.f32 %v286_v39, %v285_v36  ;;  %v292_v43 = vadd.f32 %v291_v40, %v290_v37  ;;  %v427_v37 = vsub.f32 1.0, %v3859_v20 }
 0x5b0   :  { %v293_v45 = vrot.slane %v292_v43, 2  ;;  %v312_v46 = vpop.permute.xlu0 %311  ;;  %v288_v48 = vrot.slane %v287_v42, 1 }
 0x5b2   :  { %v294_v47 = vadd.f32 %v293_v45, %v292_v43  ;;  %v289_v53 = vadd.f32 %v288_v48, %v287_v42  ;;  %v426_v43 = vsub.f32 1.0, %v3856_v17 }
 0x5b4   :  { %v488_v51 = vpop.permute.xlu0 %487  ;;  %v295_v52 = vrot.slane %v294_v47, 1 }
 0x5b5   :  { %3267 = vmatmul.mubr.msk.bf16.vlgmr.msra.gmra.mrb[0].mxu0 %vm69_vm1, %v488_v51 }
 0x5b6   :  { %v296_v54 = vadd.f32 %v295_v52, %v294_v47  ;;  %3271 = vmatpush3.bf16.msra.mxu0 %v3874_v24  ;;  %3282 = vmatprep.mubr.msk.bf16.mxu0 %vm3711_vm0, %v3710_v1 }
 0x5b7   :  { %3272 = vmatprep.subr.bf16.mxu0 %v3710_v1 }
 0x5b8   :  { %v304_v55 = vsel %vm211_vm2, %v296_v54, %v289_v53 }
 0x5b9   :  { %305 = vrot.lane.b32.xlu1 %v304_v55, %s3713_s16 }
 0x5ba   :  { %3273 = vmatpush3.bf16.msra.mxu0 %v3880_v26 }
 0x5bb   :  { %3274 = vmatprep.subr.bf16.mxu0 %v3710_v1 }
 0x5be   :  { %3275 = vmatpush3.bf16.msra.mxu0 %v3887_v27 }
 0x5bf   :  { %3276 = vmatprep.subr.bf16.mxu0 %v3710_v1 }
 0x5c2   :  { %3277 = vmatpush3.bf16.msra.mxu0 %v3899_v38 }
 0x5c3   :  { %3278 = vmatprep.subr.bf16.mxu0 %v3710_v1 }
 0x5c6   :  { %3279 = vmatpush3.bf16.msra.mxu0 %v3907_v44 }
 0x5c7   :  { %3280 = vmatprep.subr.bf16.mxu0 %v3710_v1 }
 0x5ca   :  { %3281 = vmatpush3.bf16.msra.mxu0 %v3914_v49 }
 0x5cb   :  { %3310 = vmatprep.subr.bf16.mxu0 %v3710_v1 }
 0x62b   :  { %v306_v56 = vpop.permute.xlu1 %305 }
 0x62c   :  { %309 = vst.msk [vmem:[#allocation2] sm:$0x3] %vm308_vm5, %v306_v56 }
 0x62d   :  { %315 = vst.msk [vmem:[#allocation2] sm:$0x3] %vm314_vm6, %v312_v46 }
 0x634   :  { %v316_v57 = vld [vmem:[#allocation2] sm:$0x3] }
 0x635   :  { %v317_v59 = vpack.c.bf16 %v316_v57, %v316_v57 }
 0x637   :  { %3259 = vmatmul.mubr.msk.bf16.vlgmr.msra.gmra.mrb[4].mxu1 %vm354_vm7, %v317_v59 }
 0x638   :  { %3287 = vmatpush3.bf16.msra.mxu1 %v3770_v0  ;;  %3290 = vmatprep.mubr.msk.bf16.mxu1 %vm3711_vm0, %v3710_v1 }
 0x639   :  { %3288 = vmatprep.subr.bf16.mxu1 %v3710_v1 }
 0x63c   :  { %3289 = vmatpush3.bf16.msra.mxu1 %v3778_v2 }
 0x63d   :  { %3294 = vmatprep.subr.bf16.mxu1 %v3710_v1 }
 0x688   :  { %v526_v60 = vpop.f32.mrb[0].mxu0 }
 0x689   :  { %v3268_v61 = vpop.f32.mrb[1].mxu0  ;;  %v532_v10 = vadd.f32 %v3120_v9, %v526_v60 }
 0x68a   :  { %v529_v62 = vpop.f32.mrb[2].mxu0 }
 0x68b   :  { %v3269_v63 = vpop.f32.mrb[3].mxu0  ;;  %v3122_v15 = vmul.f32 -1.442695, %v532_v10 }
 0x70a   :  { %v392_v4 = vpop.f32.mrb[4].mxu1 }
 0x70b   :  { %v393_v5 = vadd.f32 %v392_v4, %v3947_v3  ;;  %v3260_v6 = vpop.f32.mrb[5].mxu1 }
 0x70c   :  { %v395_v7 = vpop.f32.mrb[6].mxu1 }
 0x70d   :  { %3468 = vtanh.f32 %v393_v5  ;;  %v3261_v8 = vpop.f32.mrb[7].mxu1  ;;  %v3119_v14 = vmul.f32 -1.442695, %v393_v5 }
 0x70e   :  { %3470 = vtanh.f32 %v532_v10 }
 0x70f   :  { %3472 = vpow2.f32 %v3119_v14 }
 0x710   :  { %3474 = vpow2.f32 %v3122_v15 }
 0x717   :  { %v3469_v11 = vpop.eup %3468 }
 0x718   :  { %411 = vrot.lane.b32.xlu0 %v3469_v11, %s3712_s13  ;;  %v3471_v13 = vpop.eup %3470 }
 0x719   :  { %v3473_v16 = vpop.eup %3472 }
 0x71a   :  { %v401_v18 = vadd.f32 1.0, %v3473_v16  ;;  %v3475_v21 = vpop.eup %3474 }
 0x71b   :  { %v536_v22 = vadd.f32 1.0, %v3475_v21 }
 0x71c   :  { %406 = vrot.lane.b32.xlu0 %v3107_v12, %s3713_s16  ;;  %3476 = vrcp.f32 %v401_v18 }
 0x71d   :  { %3478 = vrcp.f32 %v536_v22 }
 0x720   :  { %542 = vrot.lane.b32.xlu0 %v3471_v13, %s3712_s13 }
 0x726   :  { %v3477_v28 = vpop.eup %3476 }
 0x727   :  { %v3479_v33 = vpop.eup %3478 }
 0x728   :  { %v540_v46 = vmul.f32 %v3479_v33, %v3813_v23 }
 0x78a   :  { %v412_v29 = vpop.permute.xlu0 %411 }
 0x78b   :  { %v414_v30 = vmul.f32 %v3477_v28, %v412_v29 }
 0x78d   :  { %416 = vrot.lane.b32.xlu1 %v414_v30, %s3713_s16 }
 0x78e   :  { %v407_v32 = vpop.permute.xlu0 %406 }
 0x78f   :  { %v409_v39 = vmul.f32 %v3477_v28, %v407_v32 }
 0x792   :  { %v543_v34 = vpop.permute.xlu0 %542 }
 0x793   :  { %v545_v36 = vmul.f32 %v3479_v33, %v543_v34 }
 0x795   :  { %547 = vrot.lane.b32.xlu0 %v545_v36, %s3713_s16 }
 0x799   :  { %474 = vperm.xlu0 %3442, %v427_v37  }
 0x7ff   :  { %v417_v40 = vpop.permute.xlu1 %416 }
 0x800   :  { %v3962_v41 = vadd.f32 %v417_v40, %v409_v39 }
 0x802   :  { %3480 = vtanh.f32 %v3962_v41 }
 0x807   :  { %v548_v45 = vpop.permute.xlu0 %547 }
 0x808   :  { %v3968_v47 = vadd.f32 %v548_v45, %v540_v46 }
 0x80a   :  { %3482 = vtanh.f32 %v3968_v47 }
 0x80c   :  { %v3481_v42 = vpop.eup %3480 }
 0x80d   :  { %422 = vrot.lane.b32.xlu1 %v3481_v42, %s3712_s13 }
 0x811   :  { %469 = vperm.xlu1 %3443, %v426_v43  }
 0x814   :  { %v3483_v55 = vpop.eup %3482 }
 0x818   :  { %v475_v57 = vpop.permute.xlu0 %474 }
 0x87f   :  { %v423_v48 = vpop.permute.xlu1 %422 }
 0x880   :  { %v3970_v20 = vmul.f32 %v3477_v28, %v423_v48 }
 0x882   :  { %v435_v51 = vrot.slane %v3970_v20, %v3824_v31 }
 0x884   :  { %v443_v52 = vrot.slane %v435_v51, %v3824_v31  ;;  %v436_v53 = vcombine.high %v435_v51, %v435_v51 }
 0x886   :  { %v454_v54 = vrot.slane %v443_v52, %v3830_v35  ;;  %v450_v17 = vrot.slane %v436_v53, %v3824_v31 }
 0x888   :  { %459 = vrot.lane.b32.xlu1 %v454_v54, %s3713_s16  ;;  %v458_v23 = vrot.slane %v450_v17, %v3830_v35 }
 0x88a   :  { %461 = vrot.lane.b32.xlu0 %v458_v23, %s3713_s16 }
 0x88c   :  { %553 = vrot.lane.b32.xlu1 %v3483_v55, %s3712_s13 }
 0x890   :  { %v470_v56 = vpop.permute.xlu1 %469 }
 0x8fa   :  { %v460_v59 = vpop.permute.xlu1 %459 }
 0x8fb   :  { %v465_v60 = vadd.f32 %v460_v59, %v3809_v19 }
 0x8fc   :  { %v462_v61 = vpop.permute.xlu0 %461 }
 0x8fd   :  { %v3983_v62 = vmul.f32 %v470_v56, %v465_v60  ;;  %v466_v63 = vadd.f32 %v462_v61, %v3820_v25 }
 0x8fe   :  { %v554_v5 = vpop.permute.xlu1 %553 }
 0x8ff   :  { %v3986_v4 = vmul.f32 %v475_v57, %v466_v63  ;;  %592 = vrot.lane.b32.xlu0 %v3983_v62, %s3714_s19  ;;  %v3992_v6 = vmul.f32 %v3479_v33, %v554_v5 }
 0x901   :  { %594 = vrot.lane.b32.xlu1 %v3986_v4, %s3714_s19  ;;  %v564_v7 = vrot.slane %v3992_v6, %v3824_v31 }
 0x903   :  { %v565_v19 = vcombine.high %v564_v7, %v564_v7  ;;  %v572_v8 = vrot.slane %v564_v7, %v3824_v31 }
 0x905   :  { %v579_v9 = vrot.slane %v565_v19, %v3824_v31  ;;  %v583_v25 = vrot.slane %v572_v8, %v3830_v35 }
 0x907   :  { %v587_v12 = vrot.slane %v579_v9, %v3830_v35 }
 0x971   :  { %v593_v10 = vpop.permute.xlu0 %592 }
 0x972   :  { %v598_v11 = vmul.f32 %v593_v10, %v583_v25 }
 0x973   :  { %v595_v13 = vpop.permute.xlu1 %594 }
 0x974   :  { %v599_v14 = vmul.f32 %v595_v13, %v587_v12  ;;  %602 = vrot.lane.b32.xlu0 %v598_v11, %s3713_s16 }
 0x976   :  { %604 = vrot.lane.b32.xlu1 %v599_v14, %s3713_s16 }
 0x9e6   :  { %v603_v15 = vpop.permute.xlu0 %602 }
 0x9e7   :  { %v608_v16 = vsel %vm69_vm1, %v603_v15, 0.0 }
 0x9e8   :  { %609 = vadd.xlane.f32.xlu0 %v608_v16  ;;  %v605_v18 = vpop.permute.xlu1 %604 }
 0x9e9   :  { %v611_v21 = vsel %vm69_vm1, %v605_v18, 0.0 }
 0x9ea   :  { %612 = vadd.xlane.f32.xlu1 %v611_v21 }
 0xa75   :  { %v610_v22 = vpop.xlane.xlu0 %609 }
 0xa76   :  { %v619_v29 = vrot.slane %v610_v22, %v3840_v50 }
 0xa77   :  { %v613_v28 = vpop.xlane.xlu1 %612 }
 0xa78   :  { %v623_v30 = vrot.slane %v613_v28, %v3840_v50 }
 0xa7a   :  { %v624_v32 = vsel %vm211_vm2, %v623_v30, %v619_v29 }
 0xa7b   :  { %v626_v33 = vsel %vm214_vm3, %v624_v32, -inf  ;;  %v852_v32 = vpack.c.bf16 %v3992_v6, %v3992_v6 }
 0xa7c   :  { %627 = vmax.xlane.f32.xlu0 %v626_v33 }
 0xb09   :  { %v628_v34 = vpop.xlane.xlu0 %627 }
 0xb0a   :  { %v633_v36 = vrot.slane %v628_v34, %v3830_v35  ;;  %v637_v37 = vrot.slane %v628_v34, %v3846_v58 }
 0xb0c   :  { %v640_v39 = vsub.f32 %v610_v22, %v633_v36  ;;  %v641_v40 = vsub.f32 %v613_v28, %v637_v37 }
 0xb0e   :  { %v642_v42 = vmul.f32 1.442695, %v640_v39  ;;  %v644_v43 = vmul.f32 1.442695, %v641_v40 }
 0xb10   :  { %3484 = vpow2.f32 %v642_v42 }
 0xb11   :  { %3486 = vpow2.f32 %v644_v43 }
 0xb1a   :  { %v3485_v45 = vpop.eup %3484 }
 0xb1b   :  { %v3487_v46 = vpop.eup %3486  ;;  %649 = vperm.xlu0 %3442, %v3485_v45  }
 0xb1c   :  { %652 = vperm.xlu1 %3443, %v3487_v46  }
 0xb9a   :  { %v650_v48 = vpop.permute.xlu0 %649 }
 0xb9b   :  { %v653_v51 = vpop.permute.xlu1 %652  ;;  %v657_v52 = vrot.slane %v650_v48, %v3840_v50 }
 0xb9c   :  { %v661_v53 = vrot.slane %v653_v51, %v3840_v50 }
 0xb9e   :  { %v662_v54 = vsel %vm211_vm2, %v661_v53, %v657_v52 }
 0xb9f   :  { %v664_v17 = vsel %vm214_vm3, %v662_v54, 0.0 }
 0xba0   :  { %665 = vadd.xlane.f32.xlu1 %v664_v17  ;;  %v3125_v17 = vld [vmem:[%s4830_s0 + $0x4] sm:$0x3] }
 0xc2d   :  { %v666_v23 = vpop.xlane.xlu1 %665 }
 0xc2e   :  { %v671_v55 = vrot.slane %v666_v23, %v3830_v35  ;;  %v675_v56 = vrot.slane %v666_v23, %v3846_v58 }
 0xc30   :  { %3488 = vrcp.f32 %v671_v55 }
 0xc31   :  { %3490 = vrcp.f32 %v675_v56 }
 0xc3a   :  { %v3489_v57 = vpop.eup %3488 }
 0xc3b   :  { %v4016_v59 = vmul.f32 %v3489_v57, %v3485_v45  ;;  %v3491_v60 = vpop.eup %3490 }
 0xc3c   :  { %v4019_v61 = vmul.f32 %v3491_v60, %v3487_v46 }
 0xc3d   :  { %684 = vperm.xlu0 %3442, %v4016_v59  }
 0xc41   :  { %689 = vperm.xlu0 %3442, %v4019_v61  }
 0xc45   :  { %708 = vrot.lane.b32.xlu0 %v3992_v6, %s3713_s16 }
 0xcbc   :  { %v685_v63 = vpop.permute.xlu0 %684 }
 0xcbd   :  { %v692_v5 = vmul.f32 %v685_v63, %v3983_v62 }
 0xcbf   :  { %v694_v7 = vsel %vm69_vm1, %v692_v5, 0.0 }
 0xcc0   :  { %v695_v19 = vrot.slane %v694_v7, 4  ;;  %v690_v8 = vpop.permute.xlu0 %689 }
 0xcc1   :  { %v693_v9 = vmul.f32 %v690_v8, %v3986_v4 }
 0xcc2   :  { %v696_v25 = vadd.f32 %v695_v19, %v694_v7 }
 0xcc3   :  { %v701_v10 = vsel %vm69_vm1, %v693_v9, 0.0 }
 0xcc4   :  { %v697_v11 = vrot.slane %v696_v25, 2  ;;  %v702_v12 = vrot.slane %v701_v10, 4  ;;  %v709_v13 = vpop.permute.xlu0 %708 }
 0xcc5   :  { %711 = vst.msk [vmem:[#allocation2] sm:$0x3] %vm300_vm4, %v709_v13 }
 0xcc6   :  { %v698_v14 = vadd.f32 %v697_v11, %v696_v25  ;;  %v703_v15 = vadd.f32 %v702_v12, %v701_v10  ;;  %v792_v12 = vsub.f32 1.0, %v4016_v59 }
 0xcc8   :  { %v704_v16 = vrot.slane %v703_v15, 2  ;;  %v699_v21 = vrot.slane %v698_v14, 1 }
 0xcca   :  { %v705_v18 = vadd.f32 %v704_v16, %v703_v15  ;;  %v700_v28 = vadd.f32 %v699_v21, %v698_v14  ;;  %v793_v14 = vsub.f32 1.0, %v4019_v61 }
 0xccc   :  { %v706_v22 = vrot.slane %v705_v18, 1 }
 0xcce   :  { %v707_v29 = vadd.f32 %v706_v22, %v705_v18 }
 0xcd0   :  { %v714_v30 = vsel %vm211_vm2, %v707_v29, %v700_v28 }
 0xcd1   :  { %715 = vrot.lane.b32.xlu0 %v714_v30, %s3713_s16 }
 0xcd5   :  { %719 = vrot.lane.b32.xlu0 %v3970_v20, %s3714_s19 }
 0xcd9   :  { %854 = vrot.lane.b32.xlu0 %v852_v32, %s3713_s16 }
 0xd43   :  { %v716_v33 = vpop.permute.xlu0 %715 }
 0xd44   :  { %718 = vst.msk [vmem:[#allocation2] sm:$0x3] %vm308_vm5, %v716_v33 }
 0xd47   :  { %v720_v34 = vpop.permute.xlu0 %719 }
 0xd48   :  { %722 = vst.msk [vmem:[#allocation2] sm:$0x3] %vm314_vm6, %v720_v34 }
 0xd4b   :  { %v855_v36 = vpop.permute.xlu0 %854 }
 0xd4c   :  { %3291 = vmatmul.mubr.msk.bf16.vlgmr.msra.gmra.mrb[8].mxu1 %vm69_vm1, %v855_v36 }
 0xd4d   :  { %3295 = vmatpush3.bf16.msra.mxu1 %v3874_v24  ;;  %3306 = vmatprep.mubr.msk.bf16.mxu1 %vm3711_vm0, %v3710_v1 }
 0xd4e   :  { %3296 = vmatprep.subr.bf16.mxu1 %v3710_v1 }
 0xd4f   :  { %v723_v37 = vld [vmem:[#allocation2] sm:$0x3] }
 0xd50   :  { %v724_v6 = vpack.c.bf16 %v723_v37, %v723_v37 }
 0xd51   :  { %3297 = vmatpush3.bf16.msra.mxu1 %v3880_v26 }
 0xd52   :  { %3283 = vmatmul.mubr.msk.bf16.vlgmr.msra.gmra.mrb[4].mxu0 %vm354_vm7, %v724_v6  ;;  %3298 = vmatprep.subr.bf16.mxu1 %v3710_v1 }
 0xd53   :  { %3311 = vmatpush3.bf16.msra.mxu0 %v3770_v0  ;;  %3314 = vmatprep.mubr.msk.bf16.mxu0 %vm3711_vm0, %v3710_v1 }
 0xd54   :  { %3312 = vmatprep.subr.bf16.mxu0 %v3710_v1 }
 0xd55   :  { %3299 = vmatpush3.bf16.msra.mxu1 %v3887_v27 }
 0xd56   :  { %3300 = vmatprep.subr.bf16.mxu1 %v3710_v1 }
 0xd57   :  { %3313 = vmatpush3.bf16.msra.mxu0 %v3778_v2 }
 0xd58   :  { %3318 = vmatprep.subr.bf16.mxu0 %v3710_v1 }
 0xd59   :  { %3301 = vmatpush3.bf16.msra.mxu1 %v3899_v38 }
 0xd5a   :  { %3302 = vmatprep.subr.bf16.mxu1 %v3710_v1 }
 0xd5d   :  { %3303 = vmatpush3.bf16.msra.mxu1 %v3907_v44 }
 0xd5e   :  { %3304 = vmatprep.subr.bf16.mxu1 %v3710_v1 }
 0xd61   :  { %3305 = vmatpush3.bf16.msra.mxu1 %v3914_v49 }
 0xd62   :  { %3334 = vmatprep.subr.bf16.mxu1 %v3710_v1 }
 0xe1f   :  { %v893_v0 = vpop.f32.mrb[8].mxu1 }
 0xe20   :  { %v3292_v39 = vpop.f32.mrb[9].mxu1  ;;  %v899_v23 = vadd.f32 %v3125_v17, %v893_v0 }
 0xe21   :  { %v896_v40 = vpop.f32.mrb[10].mxu1 }
 0xe22   :  { %v3293_v42 = vpop.f32.mrb[11].mxu1  ;;  %v3127_v63 = vmul.f32 -1.442695, %v899_v23 }
 0xe25   :  { %v762_v43 = vpop.f32.mrb[4].mxu0 }
 0xe26   :  { %v763_v2 = vadd.f32 %v762_v43, %v3947_v3  ;;  %v3284_v45 = vpop.f32.mrb[5].mxu0 }
 0xe27   :  { %v765_v46 = vpop.f32.mrb[6].mxu0 }
 0xe28   :  { %3492 = vtanh.f32 %v763_v2  ;;  %v3285_v48 = vpop.f32.mrb[7].mxu0  ;;  %v3124_v52 = vmul.f32 -1.442695, %v763_v2 }
 0xe2a   :  { %3494 = vpow2.f32 %v3124_v52 }
 0xe32   :  { %v3493_v51 = vpop.eup %3492 }
 0xe33   :  { %777 = vrot.lane.b32.xlu0 %v3493_v51, %s3712_s13 }
 0xe34   :  { %v3495_v53 = vpop.eup %3494 }
 0xe35   :  { %v771_v54 = vadd.f32 1.0, %v3495_v53 }
 0xe37   :  { %3496 = vrcp.f32 %v771_v54 }
 0xe38   :  { %3498 = vtanh.f32 %v899_v23 }
 0xe39   :  { %3500 = vpow2.f32 %v3127_v63 }
 0xe41   :  { %v3497_v55 = vpop.eup %3496 }
 0xe42   :  { %v3499_v60 = vpop.eup %3498  ;;  %v775_v19 = vmul.f32 %v3497_v55, %v3962_v41 }
 0xe43   :  { %v3501_v5 = vpop.eup %3500 }
 0xe44   :  { %v903_v7 = vadd.f32 1.0, %v3501_v5 }
 0xe46   :  { %3502 = vrcp.f32 %v903_v7 }
 0xe50   :  { %v3503_v25 = vpop.eup %3502 }
 0xe51   :  { %v907_v41 = vmul.f32 %v3503_v25, %v3968_v47 }
 0xea5   :  { %v778_v56 = vpop.permute.xlu0 %777 }
 0xea6   :  { %v780_v57 = vmul.f32 %v3497_v55, %v778_v56 }
 0xea8   :  { %782 = vrot.lane.b32.xlu0 %v780_v57, %s3713_s16 }
 0xeac   :  { %909 = vrot.lane.b32.xlu0 %v3499_v60, %s3712_s13 }
 0xf1a   :  { %v783_v8 = vpop.permute.xlu0 %782 }
 0xf1b   :  { %v4068_v9 = vadd.f32 %v783_v8, %v775_v19 }
 0xf1d   :  { %3504 = vtanh.f32 %v4068_v9 }
 0xf1e   :  { %v910_v10 = vpop.permute.xlu0 %909 }
 0xf1f   :  { %v912_v11 = vmul.f32 %v3503_v25, %v910_v10 }
 0xf21   :  { %914 = vrot.lane.b32.xlu0 %v912_v11, %s3713_s16 }
 0xf25   :  { %835 = vperm.xlu0 %3442, %v792_v12  }
 0xf27   :  { %v3505_v13 = vpop.eup %3504 }
 0xf28   :  { %788 = vrot.lane.b32.xlu1 %v3505_v13, %s3712_s13 }
 0xf29   :  { %840 = vperm.xlu0 %3442, %v793_v14  }
 0xf93   :  { %v915_v15 = vpop.permute.xlu0 %914 }
 0xf94   :  { %v4076_v16 = vadd.f32 %v915_v15, %v907_v41 }
 0xf96   :  { %3506 = vtanh.f32 %v4076_v16 }
 0xf9a   :  { %v789_v18 = vpop.permute.xlu1 %788 }
 0xf9b   :  { %v4079_v21 = vmul.f32 %v3497_v55, %v789_v18 }
 0xf9d   :  { %v801_v59 = vrot.slane %v4079_v21, %v3824_v31 }
 0xf9f   :  { %v802_v22 = vcombine.high %v801_v59, %v801_v59  ;;  %v809_v28 = vrot.slane %v801_v59, %v3824_v31 }
 0xfa0   :  { %v3507_v61 = vpop.eup %3506 }
 0xfa1   :  { %920 = vrot.lane.b32.xlu1 %v3507_v61, %s3712_s13  ;;  %v820_v29 = vrot.slane %v809_v28, %v3830_v35  ;;  %v816_v47 = vrot.slane %v802_v22, %v3824_v31 }
 0xfa3   :  { %825 = vrot.lane.b32.xlu0 %v820_v29, %s3713_s16  ;;  %v824_v30 = vrot.slane %v816_v47, %v3830_v35 }
 0xfa4   :  { %v836_v32 = vpop.permute.xlu0 %835 }
 0xfa7   :  { %827 = vrot.lane.b32.xlu0 %v824_v30, %s3713_s16 }
 0xfa8   :  { %v841_v33 = vpop.permute.xlu0 %840 }
0x1013   :  { %v921_v40 = vpop.permute.xlu1 %920 }
0x1014   :  { %v4100_v42 = vmul.f32 %v3503_v25, %v921_v40 }
0x1015   :  { %v826_v34 = vpop.permute.xlu0 %825 }
0x1016   :  { %v831_v36 = vadd.f32 %v826_v34, %v3983_v62  ;;  %v931_v43 = vrot.slane %v4100_v42, %v3824_v31 }
0x1018   :  { %v4091_v37 = vmul.f32 %v836_v32, %v831_v36  ;;  %v939_v62 = vrot.slane %v931_v43, %v3824_v31  ;;  %v932_v2 = vcombine.high %v931_v43, %v931_v43 }
0x1019   :  { %v828_v6 = vpop.permute.xlu0 %827 }
0x101a   :  { %v832_v0 = vadd.f32 %v828_v6, %v3986_v4  ;;  %959 = vrot.lane.b32.xlu0 %v4091_v37, %s3714_s19  ;;  %v950_v45 = vrot.slane %v939_v62, %v3830_v35  ;;  %v946_v4 = vrot.slane %v932_v2, %v3824_v31 }
0x101c   :  { %v4096_v39 = vmul.f32 %v841_v33, %v832_v0  ;;  %v954_v51 = vrot.slane %v946_v4, %v3830_v35 }
0x101e   :  { %961 = vrot.lane.b32.xlu1 %v4096_v39, %s3714_s19 }
0x108c   :  { %v960_v46 = vpop.permute.xlu0 %959 }
0x108d   :  { %v965_v48 = vmul.f32 %v960_v46, %v950_v45 }
0x108f   :  { %969 = vrot.lane.b32.xlu0 %v965_v48, %s3713_s16 }
0x1090   :  { %v962_v52 = vpop.permute.xlu1 %961 }
0x1091   :  { %v966_v53 = vmul.f32 %v962_v52, %v954_v51 }
0x1093   :  { %971 = vrot.lane.b32.xlu1 %v966_v53, %s3713_s16 }
0x1101   :  { %v970_v54 = vpop.permute.xlu0 %969 }
0x1102   :  { %v975_v17 = vsel %vm69_vm1, %v970_v54, 0.0 }
0x1103   :  { %976 = vadd.xlane.f32.xlu0 %v975_v17 }
0x1105   :  { %v972_v23 = vpop.permute.xlu1 %971 }
0x1106   :  { %v978_v55 = vsel %vm69_vm1, %v972_v23, 0.0 }
0x1107   :  { %979 = vadd.xlane.f32.xlu1 %v978_v55 }
0x1190   :  { %v977_v56 = vpop.xlane.xlu0 %976 }
0x1191   :  { %v986_v60 = vrot.slane %v977_v56, %v3840_v50 }
0x1194   :  { %v980_v57 = vpop.xlane.xlu1 %979 }
0x1195   :  { %v990_v63 = vrot.slane %v980_v57, %v3840_v50 }
0x1197   :  { %v991_v5 = vsel %vm211_vm2, %v990_v63, %v986_v60  ;;  %v1219_v63 = vpack.c.bf16 %v4100_v42, %v4100_v42 }
0x1198   :  { %v993_v7 = vsel %vm214_vm3, %v991_v5, -inf }
0x1199   :  { %994 = vmax.xlane.f32.xlu0 %v993_v7 }
0x1226   :  { %v995_v19 = vpop.xlane.xlu0 %994 }
0x1227   :  { %v1000_v8 = vrot.slane %v995_v19, %v3830_v35  ;;  %v1004_v25 = vrot.slane %v995_v19, %v3846_v58 }
0x1229   :  { %v1007_v10 = vsub.f32 %v977_v56, %v1000_v8  ;;  %v1008_v11 = vsub.f32 %v980_v57, %v1004_v25  ;;  %v4157_v25 = vld [vmem:[%s4833_s3] sm:$0xff]  }
0x122b   :  { %v1009_v12 = vmul.f32 1.442695, %v1007_v10  ;;  %v1011_v13 = vmul.f32 1.442695, %v1008_v11 }
0x122d   :  { %3508 = vpow2.f32 %v1009_v12 }
0x122e   :  { %3510 = vpow2.f32 %v1011_v13 }
0x1237   :  { %v3509_v14 = vpop.eup %3508 }
0x1238   :  { %v3511_v41 = vpop.eup %3510  ;;  %1016 = vperm.xlu0 %3442, %v3509_v14  }
0x1239   :  { %1019 = vperm.xlu1 %3443, %v3511_v41  }
0x12b7   :  { %v1017_v15 = vpop.permute.xlu0 %1016 }
0x12b8   :  { %v1020_v18 = vpop.permute.xlu1 %1019  ;;  %v1024_v59 = vrot.slane %v1017_v15, %v3840_v50 }
0x12b9   :  { %v1028_v22 = vrot.slane %v1020_v18, %v3840_v50 }
0x12bb   :  { %v1029_v28 = vsel %vm211_vm2, %v1028_v22, %v1024_v59  ;;  %v3130_v59 = vld [vmem:[%s4830_s0 + $0x6] sm:$0x3] }
0x12bc   :  { %v1031_v61 = vsel %vm214_vm3, %v1029_v28, 0.0 }
0x12bd   :  { %1032 = vadd.xlane.f32.xlu1 %v1031_v61 }
0x134a   :  { %v1033_v29 = vpop.xlane.xlu1 %1032 }
0x134b   :  { %v1038_v47 = vrot.slane %v1033_v29, %v3830_v35  ;;  %v1042_v30 = vrot.slane %v1033_v29, %v3846_v58 }
0x134d   :  { %3512 = vrcp.f32 %v1038_v47 }
0x134e   :  { %3514 = vrcp.f32 %v1042_v30 }
0x1357   :  { %v3513_v32 = vpop.eup %3512 }
0x1358   :  { %v4124_v33 = vmul.f32 %v3513_v32, %v3509_v14  ;;  %v3515_v34 = vpop.eup %3514 }
0x1359   :  { %v4127_v36 = vmul.f32 %v3515_v34, %v3511_v41 }
0x135a   :  { %1051 = vperm.xlu0 %3442, %v4124_v33  }
0x135e   :  { %1056 = vperm.xlu0 %3442, %v4127_v36  }
0x1362   :  { %1075 = vrot.lane.b32.xlu0 %v4100_v42, %s3713_s16 }
0x13d9   :  { %v1052_v6 = vpop.permute.xlu0 %1051 }
0x13da   :  { %v1059_v0 = vmul.f32 %v1052_v6, %v4091_v37 }
0x13dc   :  { %v1061_v40 = vsel %vm69_vm1, %v1059_v0, 0.0 }
0x13dd   :  { %v1062_v43 = vrot.slane %v1061_v40, 4  ;;  %v1057_v62 = vpop.permute.xlu0 %1056 }
0x13de   :  { %v1060_v2 = vmul.f32 %v1057_v62, %v4096_v39 }
0x13df   :  { %v1063_v45 = vadd.f32 %v1062_v43, %v1061_v40 }
0x13e0   :  { %v1068_v4 = vsel %vm69_vm1, %v1060_v2, 0.0  ;;  %v1159_v2 = vsub.f32 1.0, %v4124_v33 }
0x13e1   :  { %v1064_v46 = vrot.slane %v1063_v45, 2  ;;  %v1069_v48 = vrot.slane %v1068_v4, 4  ;;  %v1076_v51 = vpop.permute.xlu0 %1075 }
0x13e2   :  { %1078 = vst.msk [vmem:[#allocation2] sm:$0x3] %vm300_vm4, %v1076_v51 }
0x13e3   :  { %v1065_v52 = vadd.f32 %v1064_v46, %v1063_v45  ;;  %v1070_v53 = vadd.f32 %v1069_v48, %v1068_v4  ;;  %v1160_v4 = vsub.f32 1.0, %v4127_v36 }
0x13e5   :  { %v1071_v54 = vrot.slane %v1070_v53, 2  ;;  %v1066_v23 = vrot.slane %v1065_v52, 1 }
0x13e7   :  { %v1072_v17 = vadd.f32 %v1071_v54, %v1070_v53  ;;  %v1067_v56 = vadd.f32 %v1066_v23, %v1065_v52 }
0x13e9   :  { %v1073_v55 = vrot.slane %v1072_v17, 1 }
0x13eb   :  { %v1074_v57 = vadd.f32 %v1073_v55, %v1072_v17 }
0x13ed   :  { %v1081_v60 = vsel %vm211_vm2, %v1074_v57, %v1067_v56 }
0x13ee   :  { %1082 = vrot.lane.b32.xlu0 %v1081_v60, %s3713_s16 }
0x13f2   :  { %1086 = vrot.lane.b32.xlu0 %v4079_v21, %s3714_s19 }
0x13f6   :  { %1221 = vrot.lane.b32.xlu0 %v1219_v63, %s3713_s16 }
0x1460   :  { %v1083_v5 = vpop.permute.xlu0 %1082 }
0x1461   :  { %1085 = vst.msk [vmem:[#allocation2] sm:$0x3] %vm308_vm5, %v1083_v5 }
0x1464   :  { %v1087_v7 = vpop.permute.xlu0 %1086 }
0x1465   :  { %1089 = vst.msk [vmem:[#allocation2] sm:$0x3] %vm314_vm6, %v1087_v7 }
0x1468   :  { %v1222_v19 = vpop.permute.xlu0 %1221 }
0x1469   :  { %3315 = vmatmul.mubr.msk.bf16.vlgmr.msra.gmra.mrb[8].mxu0 %vm69_vm1, %v1222_v19 }
0x146a   :  { %3319 = vmatpush3.bf16.msra.mxu0 %v3874_v24  ;;  %3330 = vmatprep.mubr.msk.bf16.mxu0 %vm3711_vm0, %v3710_v1  ;;  %v4168_v24 = vld [vmem:[%s4833_s3 + $0x8] sm:$0xff]  }
0x146b   :  { %3320 = vmatprep.subr.bf16.mxu0 %v3710_v1 }
0x146c   :  { %v1090_v8 = vld [vmem:[#allocation2] sm:$0x3] }
0x146d   :  { %v1091_v42 = vpack.c.bf16 %v1090_v8, %v1090_v8 }
0x146e   :  { %3321 = vmatpush3.bf16.msra.mxu0 %v3880_v26 }
0x146f   :  { %3307 = vmatmul.mubr.msk.bf16.vlgmr.msra.gmra.mrb[12].mxu1 %vm354_vm7, %v1091_v42  ;;  %3322 = vmatprep.subr.bf16.mxu0 %v3710_v1 }
0x1470   :  { %3335 = vmatpush3.bf16.msra.mxu1 %v4157_v25  ;;  %3338 = vmatprep.mubr.msk.bf16.mxu1 %vm3711_vm0, %v3710_v1 }
0x1471   :  { %3336 = vmatprep.subr.bf16.mxu1 %v3710_v1 }
0x1472   :  { %3323 = vmatpush3.bf16.msra.mxu0 %v3887_v27 }
0x1473   :  { %3324 = vmatprep.subr.bf16.mxu0 %v3710_v1 }
0x1474   :  { %3337 = vmatpush3.bf16.msra.mxu1 %v4168_v24 }
0x1475   :  { %3342 = vmatprep.subr.bf16.mxu1 %v3710_v1 }
0x1476   :  { %3325 = vmatpush3.bf16.msra.mxu0 %v3899_v38 }
0x1477   :  { %3326 = vmatprep.subr.bf16.mxu0 %v3710_v1 }
0x147a   :  { %3327 = vmatpush3.bf16.msra.mxu0 %v3907_v44 }
0x147b   :  { %3328 = vmatprep.subr.bf16.mxu0 %v3710_v1 }
0x147e   :  { %3329 = vmatpush3.bf16.msra.mxu0 %v3914_v49 }
0x147f   :  { %3358 = vmatprep.subr.bf16.mxu0 %v3710_v1 }
0x153c   :  { %v1260_v26 = vpop.f32.mrb[8].mxu0 }
0x153d   :  { %v3316_v27 = vpop.f32.mrb[9].mxu0  ;;  %v1266_v22 = vadd.f32 %v3130_v59, %v1260_v26 }
0x153e   :  { %v1263_v10 = vpop.f32.mrb[10].mxu0 }
0x153f   :  { %v3317_v11 = vpop.f32.mrb[11].mxu0  ;;  %v3132_v47 = vmul.f32 -1.442695, %v1266_v22 }
0x1542   :  { %v1129_v12 = vpop.f32.mrb[12].mxu1 }
0x1543   :  { %v1130_v13 = vadd.f32 %v1129_v12, %v3947_v3  ;;  %v3308_v14 = vpop.f32.mrb[13].mxu1 }
0x1544   :  { %v1132_v41 = vpop.f32.mrb[14].mxu1 }
0x1545   :  { %3516 = vtanh.f32 %v1130_v13  ;;  %v3309_v38 = vpop.f32.mrb[15].mxu1  ;;  %v3129_v44 = vmul.f32 -1.442695, %v1130_v13 }
0x1547   :  { %3518 = vpow2.f32 %v3129_v44 }
0x154f   :  { %v3517_v15 = vpop.eup %3516 }
0x1550   :  { %1144 = vrot.lane.b32.xlu0 %v3517_v15, %s3712_s13 }
0x1551   :  { %v3519_v18 = vpop.eup %3518 }
0x1552   :  { %v1138_v49 = vadd.f32 1.0, %v3519_v18 }
0x1554   :  { %3520 = vrcp.f32 %v1138_v49 }
0x1555   :  { %3522 = vtanh.f32 %v1266_v22 }
0x1556   :  { %3524 = vpow2.f32 %v3132_v47 }
0x155e   :  { %v3521_v28 = vpop.eup %3520 }
0x155f   :  { %v3523_v29 = vpop.eup %3522  ;;  %v1142_v34 = vmul.f32 %v3521_v28, %v4068_v9 }
0x1560   :  { %v3525_v30 = vpop.eup %3524 }
0x1561   :  { %v1270_v32 = vadd.f32 1.0, %v3525_v30 }
0x1563   :  { %3526 = vrcp.f32 %v1270_v32 }
0x156d   :  { %v3527_v40 = vpop.eup %3526 }
0x156e   :  { %v1274_v46 = vmul.f32 %v3527_v40, %v4076_v16 }
0x15c2   :  { %v1145_v3 = vpop.permute.xlu0 %1144 }
0x15c3   :  { %v1147_v61 = vmul.f32 %v3521_v28, %v1145_v3 }
0x15c5   :  { %1149 = vrot.lane.b32.xlu0 %v1147_v61, %s3713_s16 }
0x15c9   :  { %1276 = vrot.lane.b32.xlu0 %v3523_v29, %s3712_s13 }
0x1637   :  { %v1150_v6 = vpop.permute.xlu0 %1149 }
0x1638   :  { %v4186_v0 = vadd.f32 %v1150_v6, %v1142_v34 }
0x163a   :  { %3528 = vtanh.f32 %v4186_v0 }
0x163b   :  { %v1277_v43 = vpop.permute.xlu0 %1276 }
0x163c   :  { %v1279_v62 = vmul.f32 %v3527_v40, %v1277_v43 }
0x163e   :  { %1281 = vrot.lane.b32.xlu0 %v1279_v62, %s3713_s16 }
0x1642   :  { %1202 = vperm.xlu0 %3442, %v1159_v2  }
0x1644   :  { %v3529_v45 = vpop.eup %3528 }
0x1645   :  { %1155 = vrot.lane.b32.xlu1 %v3529_v45, %s3712_s13 }
0x1646   :  { %1207 = vperm.xlu0 %3442, %v1160_v4  }
0x16b0   :  { %v1282_v9 = vpop.permute.xlu0 %1281 }
0x16b1   :  { %v4194_v48 = vadd.f32 %v1282_v9, %v1274_v46 }
0x16b3   :  { %3530 = vtanh.f32 %v4194_v48 }
0x16b7   :  { %v1156_v51 = vpop.permute.xlu1 %1155 }
0x16b8   :  { %v4196_v52 = vmul.f32 %v3521_v28, %v1156_v51 }
0x16ba   :  { %v1168_v33 = vrot.slane %v4196_v52, %v3824_v31 }
0x16bc   :  { %v1169_v53 = vcombine.high %v1168_v33, %v1168_v33  ;;  %v1176_v54 = vrot.slane %v1168_v33, %v3824_v31 }
0x16bd   :  { %v3531_v23 = vpop.eup %3530 }
0x16be   :  { %v1187_v36 = vrot.slane %v1176_v54, %v3830_v35  ;;  %v1183_v17 = vrot.slane %v1169_v53, %v3824_v31 }
0x16c0   :  { %1192 = vrot.lane.b32.xlu0 %v1187_v36, %s3713_s16  ;;  %v1191_v16 = vrot.slane %v1183_v17, %v3830_v35 }
0x16c1   :  { %v1203_v55 = vpop.permute.xlu0 %1202 }
0x16c2   :  { %1194 = vrot.lane.b32.xlu1 %v1191_v16, %s3713_s16 }
0x16c4   :  { %1287 = vrot.lane.b32.xlu0 %v3531_v23, %s3712_s13 }
0x16c5   :  { %v1208_v56 = vpop.permute.xlu0 %1207 }
0x1732   :  { %v1193_v57 = vpop.permute.xlu0 %1192 }
0x1733   :  { %v1198_v60 = vadd.f32 %v1193_v57, %v4091_v37 }
0x1734   :  { %v1195_v63 = vpop.permute.xlu1 %1194 }
0x1735   :  { %v4209_v5 = vmul.f32 %v1203_v55, %v1198_v60  ;;  %v1199_v7 = vadd.f32 %v1195_v63, %v4096_v39 }
0x1736   :  { %v1288_v8 = vpop.permute.xlu0 %1287 }
0x1737   :  { %v4212_v19 = vmul.f32 %v1208_v56, %v1199_v7  ;;  %1326 = vrot.lane.b32.xlu1 %v4209_v5, %s3714_s19  ;;  %v4218_v42 = vmul.f32 %v3527_v40, %v1288_v8 }
0x1739   :  { %1328 = vrot.lane.b32.xlu0 %v4212_v19, %s3714_s19  ;;  %v1298_v26 = vrot.slane %v4218_v42, %v3824_v31 }
0x173b   :  { %v1299_v37 = vcombine.high %v1298_v26, %v1298_v26  ;;  %v1306_v27 = vrot.slane %v1298_v26, %v3824_v31 }
0x173d   :  { %v1313_v10 = vrot.slane %v1299_v37, %v3824_v31  ;;  %v1317_v39 = vrot.slane %v1306_v27, %v3830_v35 }
0x173f   :  { %v1321_v13 = vrot.slane %v1313_v10, %v3830_v35 }
0x17a9   :  { %v1327_v11 = vpop.permute.xlu1 %1326 }
0x17aa   :  { %v1332_v12 = vmul.f32 %v1327_v11, %v1317_v39 }
0x17ab   :  { %v1329_v14 = vpop.permute.xlu0 %1328 }
0x17ac   :  { %v1333_v41 = vmul.f32 %v1329_v14, %v1321_v13  ;;  %1336 = vrot.lane.b32.xlu1 %v1332_v12, %s3713_s16 }
0x17ae   :  { %1338 = vrot.lane.b32.xlu0 %v1333_v41, %s3713_s16 }
0x181e   :  { %v1337_v38 = vpop.permute.xlu1 %1336 }
0x181f   :  { %v1342_v15 = vsel %vm69_vm1, %v1337_v38, 0.0 }
0x1820   :  { %v1339_v44 = vpop.permute.xlu0 %1338  ;;  %1343 = vadd.xlane.f32.xlu1 %v1342_v15 }
0x1821   :  { %v1345_v18 = vsel %vm69_vm1, %v1339_v44, 0.0 }
0x1822   :  { %1346 = vadd.xlane.f32.xlu0 %v1345_v18  ;;  %v1586_v18 = vpack.c.bf16 %v4218_v42, %v4218_v42 }
0x18ad   :  { %v1344_v49 = vpop.xlane.xlu1 %1343 }
0x18ae   :  { %v1353_v22 = vrot.slane %v1344_v49, %v3840_v50 }
0x18af   :  { %v1347_v59 = vpop.xlane.xlu0 %1346 }
0x18b0   :  { %v1357_v28 = vrot.slane %v1347_v59, %v3840_v50 }
0x18b2   :  { %v1358_v3 = vsel %vm211_vm2, %v1357_v28, %v1353_v22  ;;  %v4268_v28 = vld [vmem:[%s4834_s4] sm:$0xff]  }
0x18b3   :  { %v1360_v61 = vsel %vm214_vm3, %v1358_v3, -inf }
0x18b4   :  { %1361 = vmax.xlane.f32.xlu0 %v1360_v61  ;;  %v4277_v61 = vld [vmem:[%s4834_s4 + $0x8] sm:$0xff]  }
0x1941   :  { %v1362_v29 = vpop.xlane.xlu0 %1361 }
0x1942   :  { %v1367_v47 = vrot.slane %v1362_v29, %v3830_v35  ;;  %v1371_v30 = vrot.slane %v1362_v29, %v3846_v58  ;;  %v4289_v29 = vld [vmem:[%s4834_s4 + $0x10] sm:$0xff]  }
0x1944   :  { %v1374_v32 = vsub.f32 %v1344_v49, %v1367_v47  ;;  %v1375_v34 = vsub.f32 %v1347_v59, %v1371_v30  ;;  %v4298_v47 = vld [vmem:[%s4834_s4 + $0x18] sm:$0xff]   ;;  %v4305_v30 = vld [vmem:[%s4834_s4 + $0x20] sm:$0xff]  }
0x1946   :  { %v1376_v6 = vmul.f32 1.442695, %v1374_v32  ;;  %v1378_v40 = vmul.f32 1.442695, %v1375_v34  ;;  %v4312_v32 = vld [vmem:[%s4834_s4 + $0x28] sm:$0xff]  }
0x1947   :  { %v3135_v34 = vld [vmem:[%s4830_s0 + $0x8] sm:$0x3] }
0x1948   :  { %3532 = vpow2.f32 %v1376_v6 }
0x1949   :  { %3534 = vpow2.f32 %v1378_v40 }
0x1952   :  { %v3533_v43 = vpop.eup %3532 }
0x1953   :  { %v3535_v62 = vpop.eup %3534  ;;  %1383 = vperm.xlu1 %3443, %v3533_v43  }
0x1954   :  { %1386 = vperm.xlu0 %3442, %v3535_v62  }
0x19d2   :  { %v1384_v2 = vpop.permute.xlu1 %1383 }
0x19d3   :  { %v1387_v45 = vpop.permute.xlu0 %1386  ;;  %v1391_v4 = vrot.slane %v1384_v2, %v3840_v50 }
0x19d4   :  { %v1395_v9 = vrot.slane %v1387_v45, %v3840_v50 }
0x19d6   :  { %v1396_v46 = vsel %vm211_vm2, %v1395_v9, %v1391_v4  ;;  %v4322_v4 = vld [vmem:[%s4835_s5] sm:$0x3] }
0x19d7   :  { %v1398_v51 = vsel %vm214_vm3, %v1396_v46, 0.0 }
0x19d8   :  { %1399 = vadd.xlane.f32.xlu1 %v1398_v51 }
0x1a65   :  { %v1400_v33 = vpop.xlane.xlu1 %1399 }
0x1a66   :  { %v1405_v53 = vrot.slane %v1400_v33, %v3830_v35  ;;  %v1409_v54 = vrot.slane %v1400_v33, %v3846_v58 }
0x1a68   :  { %3536 = vrcp.f32 %v1405_v53 }
0x1a69   :  { %3538 = vrcp.f32 %v1409_v54 }
0x1a72   :  { %v3537_v36 = vpop.eup %3536 }
0x1a73   :  { %v4242_v17 = vmul.f32 %v3537_v36, %v3533_v43  ;;  %v3539_v16 = vpop.eup %3538 }
0x1a74   :  { %v4245_v23 = vmul.f32 %v3539_v16, %v3535_v62 }
0x1a75   :  { %1418 = vperm.xlu0 %3442, %v4242_v17  }
0x1a79   :  { %1423 = vperm.xlu0 %3442, %v4245_v23  }
0x1a7d   :  { %1442 = vrot.lane.b32.xlu0 %v4218_v42, %s3713_s16 }
0x1af4   :  { %v1419_v55 = vpop.permute.xlu0 %1418 }
0x1af5   :  { %v1426_v56 = vmul.f32 %v1419_v55, %v4209_v5 }
0x1af7   :  { %v1428_v57 = vsel %vm69_vm1, %v1426_v56, 0.0 }
0x1af8   :  { %v1429_v60 = vrot.slane %v1428_v57, 4  ;;  %v1424_v63 = vpop.permute.xlu0 %1423 }
0x1af9   :  { %v1427_v7 = vmul.f32 %v1424_v63, %v4212_v19 }
0x1afa   :  { %v1430_v8 = vadd.f32 %v1429_v60, %v1428_v57 }
0x1afb   :  { %v1435_v26 = vsel %vm69_vm1, %v1427_v7, 0.0 }
0x1afc   :  { %v1431_v37 = vrot.slane %v1430_v8, 2  ;;  %v1436_v27 = vrot.slane %v1435_v26, 4  ;;  %v1443_v10 = vpop.permute.xlu0 %1442 }
0x1afd   :  { %1445 = vst.msk [vmem:[#allocation2] sm:$0x3] %vm300_vm4, %v1443_v10 }
0x1afe   :  { %v1432_v39 = vadd.f32 %v1431_v37, %v1430_v8  ;;  %v1437_v11 = vadd.f32 %v1436_v27, %v1435_v26 }
0x1b00   :  { %v1438_v12 = vrot.slane %v1437_v11, 2  ;;  %v1433_v13 = vrot.slane %v1432_v39, 1 }
0x1b02   :  { %v1439_v14 = vadd.f32 %v1438_v12, %v1437_v11  ;;  %v1434_v38 = vadd.f32 %v1433_v13, %v1432_v39  ;;  %v1526_v13 = vsub.f32 1.0, %v4242_v17 }
0x1b04   :  { %v1440_v41 = vrot.slane %v1439_v14, 1 }
0x1b06   :  { %v1441_v15 = vadd.f32 %v1440_v41, %v1439_v14 }
0x1b08   :  { %v1448_v44 = vsel %vm211_vm2, %v1441_v15, %v1434_v38 }
0x1b09   :  { %1449 = vrot.lane.b32.xlu0 %v1448_v44, %s3713_s16 }
0x1b0d   :  { %1453 = vrot.lane.b32.xlu0 %v4196_v52, %s3714_s19 }
0x1b11   :  { %1588 = vrot.lane.b32.xlu0 %v1586_v18, %s3713_s16 }
0x1b7b   :  { %v1450_v49 = vpop.permute.xlu0 %1449 }
0x1b7c   :  { %1452 = vst.msk [vmem:[#allocation2] sm:$0x3] %vm308_vm5, %v1450_v49 }
0x1b7f   :  { %v1454_v59 = vpop.permute.xlu0 %1453 }
0x1b80   :  { %1456 = vst.msk [vmem:[#allocation2] sm:$0x3] %vm314_vm6, %v1454_v59 }
0x1b83   :  { %v1589_v22 = vpop.permute.xlu0 %1588 }
0x1b84   :  { %3339 = vmatmul.mubr.msk.bf16.vlgmr.msra.gmra.mrb[16].mxu1 %vm69_vm1, %v1589_v22 }
0x1b85   :  { %3343 = vmatpush3.bf16.msra.mxu1 %v4268_v28  ;;  %3354 = vmatprep.mubr.msk.bf16.mxu1 %vm3711_vm0, %v3710_v1 }
0x1b86   :  { %3344 = vmatprep.subr.bf16.mxu1 %v3710_v1 }
0x1b87   :  { %v1457_v42 = vld [vmem:[#allocation2] sm:$0x3] }
0x1b88   :  { %v1458_v3 = vpack.c.bf16 %v1457_v42, %v1457_v42 }
0x1b89   :  { %3345 = vmatpush3.bf16.msra.mxu1 %v4277_v61 }
0x1b8a   :  { %3331 = vmatmul.mubr.msk.bf16.vlgmr.msra.gmra.mrb[12].mxu0 %vm354_vm7, %v1458_v3  ;;  %3346 = vmatprep.subr.bf16.mxu1 %v3710_v1 }
0x1b8b   :  { %3359 = vmatpush3.bf16.msra.mxu0 %v4157_v25  ;;  %3362 = vmatprep.mubr.msk.bf16.mxu0 %vm3711_vm0, %v3710_v1 }
0x1b8c   :  { %3360 = vmatprep.subr.bf16.mxu0 %v3710_v1 }
0x1b8d   :  { %3347 = vmatpush3.bf16.msra.mxu1 %v4289_v29 }
0x1b8e   :  { %3348 = vmatprep.subr.bf16.mxu1 %v3710_v1 }
0x1b8f   :  { %3361 = vmatpush3.bf16.msra.mxu0 %v4168_v24 }
0x1b90   :  { %3366 = vmatprep.subr.bf16.mxu0 %v3710_v1 }
0x1b91   :  { %3349 = vmatpush3.bf16.msra.mxu1 %v4298_v47 }
0x1b92   :  { %3350 = vmatprep.subr.bf16.mxu1 %v3710_v1 }
0x1b95   :  { %3351 = vmatpush3.bf16.msra.mxu1 %v4305_v30 }
0x1b96   :  { %3352 = vmatprep.subr.bf16.mxu1 %v3710_v1 }
0x1b99   :  { %3353 = vmatpush3.bf16.msra.mxu1 %v4312_v32 }
0x1b9a   :  { %3382 = vmatprep.subr.bf16.mxu1 %v3710_v1 }
0x1c57   :  { %v1627_v6 = vpop.f32.mrb[16].mxu1 }
0x1c58   :  { %v1633_v40 = vadd.f32 %v3135_v34, %v1627_v6  ;;  %v3340_v43 = vpop.f32.mrb[17].mxu1 }
0x1c59   :  { %v1630_v62 = vpop.f32.mrb[18].mxu1 }
0x1c5a   :  { %3540 = vtanh.f32 %v1633_v40  ;;  %v3341_v2 = vpop.f32.mrb[19].mxu1  ;;  %v3137_v63 = vmul.f32 -1.442695, %v1633_v40 }
0x1c5d   :  { %v1496_v45 = vpop.f32.mrb[12].mxu0 }
0x1c5e   :  { %v1497_v9 = vadd.f32 %v4322_v4, %v1496_v45  ;;  %v3332_v46 = vpop.f32.mrb[13].mxu0 }
0x1c5f   :  { %v1499_v51 = vpop.f32.mrb[14].mxu0 }
0x1c60   :  { %3542 = vtanh.f32 %v1497_v9  ;;  %v3333_v33 = vpop.f32.mrb[15].mxu0  ;;  %v3134_v36 = vmul.f32 -1.442695, %v1497_v9 }
0x1c62   :  { %3544 = vpow2.f32 %v3134_v36 }
0x1c64   :  { %v3541_v53 = vpop.eup %3540 }
0x1c65   :  { %1643 = vrot.lane.b32.xlu1 %v3541_v53, %s3712_s13 }
0x1c6a   :  { %v3543_v54 = vpop.eup %3542 }
0x1c6b   :  { %1511 = vrot.lane.b32.xlu0 %v3543_v54, %s3712_s13 }
0x1c6c   :  { %v3545_v16 = vpop.eup %3544 }
0x1c6d   :  { %v1505_v55 = vadd.f32 1.0, %v3545_v16 }
0x1c6f   :  { %3546 = vrcp.f32 %v1505_v55 }
0x1c70   :  { %3548 = vpow2.f32 %v3137_v63 }
0x1c79   :  { %v3547_v56 = vpop.eup %3546 }
0x1c7a   :  { %v3549_v7 = vpop.eup %3548  ;;  %v1509_v8 = vmul.f32 %v3547_v56, %v4186_v0  ;;  %v1527_v0 = vsub.f32 1.0, %v4245_v23 }
0x1c7b   :  { %v1637_v37 = vadd.f32 1.0, %v3549_v7 }
0x1cd7   :  { %v1644_v39 = vpop.permute.xlu1 %1643 }
0x1cdd   :  { %v1512_v57 = vpop.permute.xlu0 %1511 }
0x1cde   :  { %v1514_v60 = vmul.f32 %v3547_v56, %v1512_v57 }
0x1ce0   :  { %1516 = vrot.lane.b32.xlu0 %v1514_v60, %s3713_s16 }
0x1d52   :  { %v1517_v26 = vpop.permute.xlu0 %1516 }
0x1d53   :  { %v4329_v27 = vadd.f32 %v1517_v26, %v1509_v8 }
0x1d55   :  { %3550 = vtanh.f32 %v4329_v27 }
0x1d56   :  { %3552 = vrcp.f32 %v1637_v37 }
0x1d5f   :  { %v3551_v10 = vpop.eup %3550 }
0x1d60   :  { %1522 = vrot.lane.b32.xlu0 %v3551_v10, %s3712_s13  ;;  %v3553_v11 = vpop.eup %3552 }
0x1d61   :  { %v1646_v12 = vmul.f32 %v3553_v11, %v1644_v39  ;;  %v1641_v15 = vmul.f32 %v3553_v11, %v4194_v48 }
0x1d64   :  { %1648 = vrot.lane.b32.xlu0 %v1646_v12, %s3713_s16 }
0x1d68   :  { %1569 = vperm.xlu0 %3442, %v1526_v13  }
0x1d6c   :  { %1574 = vperm.xlu0 %3442, %v1527_v0  }
0x1dd2   :  { %v1523_v14 = vpop.permute.xlu0 %1522 }
0x1dd3   :  { %v4336_v41 = vmul.f32 %v3547_v56, %v1523_v14 }
0x1dd5   :  { %v1535_v38 = vrot.slane %v4336_v41, %v3824_v31 }
0x1dd6   :  { %v1649_v44 = vpop.permute.xlu0 %1648 }
0x1dd7   :  { %v1536_v18 = vcombine.high %v1535_v38, %v1535_v38  ;;  %v4341_v49 = vadd.f32 %v1649_v44, %v1641_v15  ;;  %v1543_v59 = vrot.slane %v1535_v38, %v3824_v31 }
0x1dd9   :  { %3554 = vtanh.f32 %v4341_v49  ;;  %v1554_v17 = vrot.slane %v1543_v59, %v3830_v35  ;;  %v1550_v23 = vrot.slane %v1536_v18, %v3824_v31 }
0x1ddb   :  { %1559 = vrot.lane.b32.xlu1 %v1554_v17, %s3713_s16  ;;  %v1558_v22 = vrot.slane %v1550_v23, %v3830_v35 }
0x1ddd   :  { %1561 = vrot.lane.b32.xlu0 %v1558_v22, %s3713_s16 }
0x1de3   :  { %v3555_v42 = vpop.eup %3554 }
0x1de4   :  { %1654 = vrot.lane.b32.xlu1 %v3555_v42, %s3712_s13 }
0x1de7   :  { %v1570_v48 = vpop.permute.xlu0 %1569 }
0x1deb   :  { %v1575_v3 = vpop.permute.xlu0 %1574 }
0x1e4d   :  { %v1560_v34 = vpop.permute.xlu1 %1559 }
0x1e4e   :  { %v1565_v6 = vadd.f32 %v1560_v34, %v4209_v5 }
0x1e4f   :  { %v1562_v40 = vpop.permute.xlu0 %1561 }
0x1e50   :  { %v4352_v43 = vmul.f32 %v1570_v48, %v1565_v6  ;;  %v1566_v62 = vadd.f32 %v1562_v40, %v4212_v19 }
0x1e52   :  { %v4355_v2 = vmul.f32 %v1575_v3, %v1566_v62  ;;  %1693 = vrot.lane.b32.xlu0 %v4352_v43, %s3714_s19 }
0x1e54   :  { %1695 = vrot.lane.b32.xlu1 %v4355_v2, %s3714_s19 }
0x1e56   :  { %v1655_v45 = vpop.permute.xlu1 %1654 }
0x1e57   :  { %v4361_v9 = vmul.f32 %v3553_v11, %v1655_v45 }
0x1e59   :  { %v1665_v46 = vrot.slane %v4361_v9, %v3824_v31 }
0x1e5b   :  { %v1666_v5 = vcombine.high %v1665_v46, %v1665_v46  ;;  %v1673_v51 = vrot.slane %v1665_v46, %v3824_v31 }
0x1e5d   :  { %v1680_v33 = vrot.slane %v1666_v5, %v3824_v31  ;;  %v1684_v19 = vrot.slane %v1673_v51, %v3830_v35 }
0x1e5f   :  { %v1688_v36 = vrot.slane %v1680_v33, %v3830_v35 }
0x1ec4   :  { %v1694_v53 = vpop.permute.xlu0 %1693 }
0x1ec5   :  { %v1699_v54 = vmul.f32 %v1694_v53, %v1684_v19 }
0x1ec6   :  { %v1696_v16 = vpop.permute.xlu1 %1695 }
0x1ec7   :  { %v1700_v55 = vmul.f32 %v1696_v16, %v1688_v36  ;;  %1703 = vrot.lane.b32.xlu0 %v1699_v54, %s3713_s16 }
0x1ec9   :  { %1705 = vrot.lane.b32.xlu1 %v1700_v55, %s3713_s16 }
0x1f39   :  { %v1704_v56 = vpop.permute.xlu0 %1703 }
0x1f3a   :  { %v1709_v57 = vsel %vm69_vm1, %v1704_v56, 0.0 }
0x1f3b   :  { %1710 = vadd.xlane.f32.xlu0 %v1709_v57  ;;  %v1706_v60 = vpop.permute.xlu1 %1705 }
0x1f3c   :  { %v1712_v63 = vsel %vm69_vm1, %v1706_v60, 0.0 }
0x1f3d   :  { %1713 = vadd.xlane.f32.xlu1 %v1712_v63 }
0x1fc8   :  { %v1711_v7 = vpop.xlane.xlu0 %1710 }
0x1fc9   :  { %v1720_v26 = vrot.slane %v1711_v7, %v3840_v50 }
0x1fca   :  { %v1714_v8 = vpop.xlane.xlu1 %1713 }
0x1fcb   :  { %v1724_v37 = vrot.slane %v1714_v8, %v3840_v50 }
0x1fcd   :  { %v1725_v10 = vsel %vm211_vm2, %v1724_v37, %v1720_v26 }
0x1fce   :  { %v1727_v39 = vsel %vm214_vm3, %v1725_v10, -inf }
0x1fcf   :  { %1728 = vmax.xlane.f32.xlu0 %v1727_v39 }
0x205c   :  { %v1729_v11 = vpop.xlane.xlu0 %1728 }
0x205d   :  { %v1734_v12 = vrot.slane %v1729_v11, %v3830_v35  ;;  %v1738_v13 = vrot.slane %v1729_v11, %v3846_v58 }
0x205f   :  { %v1741_v0 = vsub.f32 %v1711_v7, %v1734_v12  ;;  %v1742_v14 = vsub.f32 %v1714_v8, %v1738_v13  ;;  %v1953_v12 = vpack.c.bf16 %v4361_v9, %v4361_v9 }
0x2061   :  { %v1743_v38 = vmul.f32 1.442695, %v1741_v0  ;;  %v1745_v15 = vmul.f32 1.442695, %v1742_v14 }
0x2063   :  { %3556 = vpow2.f32 %v1743_v38 }
0x2064   :  { %3558 = vpow2.f32 %v1745_v15 }
0x206d   :  { %v3557_v44 = vpop.eup %3556 }
0x206e   :  { %v3559_v18 = vpop.eup %3558  ;;  %1750 = vperm.xlu0 %3442, %v3557_v44  }
0x206f   :  { %1753 = vperm.xlu1 %3443, %v3559_v18  }
0x20ed   :  { %v1751_v59 = vpop.permute.xlu0 %1750 }
0x20ee   :  { %v1754_v17 = vpop.permute.xlu1 %1753  ;;  %v1758_v23 = vrot.slane %v1751_v59, %v3840_v50 }
0x20ef   :  { %v1762_v22 = vrot.slane %v1754_v17, %v3840_v50 }
0x20f1   :  { %v1763_v42 = vsel %vm211_vm2, %v1762_v22, %v1758_v23 }
0x20f2   :  { %v1765_v48 = vsel %vm214_vm3, %v1763_v42, 0.0 }
0x20f3   :  { %1766 = vadd.xlane.f32.xlu1 %v1765_v48 }
0x2180   :  { %v1767_v3 = vpop.xlane.xlu1 %1766 }
0x2181   :  { %v1772_v34 = vrot.slane %v1767_v3, %v3830_v35  ;;  %v1776_v6 = vrot.slane %v1767_v3, %v3846_v58 }
0x2183   :  { %3560 = vrcp.f32 %v1772_v34 }
0x2184   :  { %3562 = vrcp.f32 %v1776_v6  ;;  %v3140_v6 = vld [vmem:[%s4830_s0 + $0xa] sm:$0x3] }
0x218d   :  { %v3561_v40 = vpop.eup %3560 }
0x218e   :  { %v4385_v62 = vmul.f32 %v3561_v40, %v3557_v44  ;;  %v3563_v45 = vpop.eup %3562 }
0x218f   :  { %v4388_v46 = vmul.f32 %v3563_v45, %v3559_v18 }
0x2190   :  { %1785 = vperm.xlu0 %3442, %v4385_v62  }
0x2194   :  { %1790 = vperm.xlu0 %3442, %v4388_v46  }
0x2198   :  { %1809 = vrot.lane.b32.xlu0 %v4361_v9, %s3713_s16 }
0x220f   :  { %v1786_v5 = vpop.permute.xlu0 %1785 }
0x2210   :  { %v1793_v51 = vmul.f32 %v1786_v5, %v4352_v43 }
0x2212   :  { %v1795_v33 = vsel %vm69_vm1, %v1793_v51, 0.0 }
0x2213   :  { %v1796_v19 = vrot.slane %v1795_v33, 4  ;;  %v1791_v53 = vpop.permute.xlu0 %1790 }
0x2214   :  { %v1794_v54 = vmul.f32 %v1791_v53, %v4355_v2 }
0x2215   :  { %v1797_v36 = vadd.f32 %v1796_v19, %v1795_v33 }
0x2216   :  { %v1802_v16 = vsel %vm69_vm1, %v1794_v54, 0.0 }
0x2217   :  { %v1798_v55 = vrot.slane %v1797_v36, 2  ;;  %v1803_v56 = vrot.slane %v1802_v16, 4  ;;  %v1810_v57 = vpop.permute.xlu0 %1809 }
0x2218   :  { %1812 = vst.msk [vmem:[#allocation2] sm:$0x3] %vm300_vm4, %v1810_v57 }
0x2219   :  { %v1799_v60 = vadd.f32 %v1798_v55, %v1797_v36  ;;  %v1804_v63 = vadd.f32 %v1803_v56, %v1802_v16 }
0x221b   :  { %v1805_v7 = vrot.slane %v1804_v63, 2  ;;  %v1800_v8 = vrot.slane %v1799_v60, 1 }
0x221d   :  { %v1806_v26 = vadd.f32 %v1805_v7, %v1804_v63  ;;  %v1801_v10 = vadd.f32 %v1800_v8, %v1799_v60  ;;  %v1893_v63 = vsub.f32 1.0, %v4385_v62  ;;  %v1894_v8 = vsub.f32 1.0, %v4388_v46 }
0x221f   :  { %v1807_v37 = vrot.slane %v1806_v26, 1 }
0x2221   :  { %v1808_v39 = vadd.f32 %v1807_v37, %v1806_v26 }
0x2223   :  { %v1815_v11 = vsel %vm211_vm2, %v1808_v39, %v1801_v10 }
0x2224   :  { %1816 = vrot.lane.b32.xlu0 %v1815_v11, %s3713_s16 }
0x2228   :  { %1820 = vrot.lane.b32.xlu0 %v4336_v41, %s3714_s19 }
0x222c   :  { %1955 = vrot.lane.b32.xlu0 %v1953_v12, %s3713_s16 }
0x2296   :  { %v1817_v13 = vpop.permute.xlu0 %1816 }
0x2297   :  { %1819 = vst.msk [vmem:[#allocation2] sm:$0x3] %vm308_vm5, %v1817_v13 }
0x229a   :  { %v1821_v0 = vpop.permute.xlu0 %1820 }
0x229b   :  { %1823 = vst.msk [vmem:[#allocation2] sm:$0x3] %vm314_vm6, %v1821_v0 }
0x229e   :  { %v1956_v14 = vpop.permute.xlu0 %1955 }
0x229f   :  { %3363 = vmatmul.mubr.msk.bf16.vlgmr.msra.gmra.mrb[16].mxu0 %vm69_vm1, %v1956_v14 }
0x22a0   :  { %3367 = vmatpush3.bf16.msra.mxu0 %v4268_v28  ;;  %3378 = vmatprep.mubr.msk.bf16.mxu0 %vm3711_vm0, %v3710_v1 }
0x22a1   :  { %3368 = vmatprep.subr.bf16.mxu0 %v3710_v1 }
0x22a2   :  { %v1824_v38 = vld [vmem:[#allocation2] sm:$0x3] }
0x22a3   :  { %v1825_v9 = vpack.c.bf16 %v1824_v38, %v1824_v38 }
0x22a4   :  { %3369 = vmatpush3.bf16.msra.mxu0 %v4277_v61 }
0x22a5   :  { %3355 = vmatmul.mubr.msk.bf16.vlgmr.msra.gmra.mrb[20].mxu1 %vm354_vm7, %v1825_v9  ;;  %3370 = vmatprep.subr.bf16.mxu0 %v3710_v1 }
0x22a6   :  { %3383 = vmatpush3.bf16.msra.mxu1 %v4157_v25  ;;  %3386 = vmatprep.mubr.msk.bf16.mxu1 %vm3711_vm0, %v3710_v1 }
0x22a7   :  { %3384 = vmatprep.subr.bf16.mxu1 %v3710_v1 }
0x22a8   :  { %3371 = vmatpush3.bf16.msra.mxu0 %v4289_v29 }
0x22a9   :  { %3372 = vmatprep.subr.bf16.mxu0 %v3710_v1 }
0x22aa   :  { %3385 = vmatpush3.bf16.msra.mxu1 %v4168_v24 }
0x22ab   :  { %3390 = vmatprep.subr.bf16.mxu1 %v3710_v1 }
0x22ac   :  { %3373 = vmatpush3.bf16.msra.mxu0 %v4298_v47 }
0x22ad   :  { %3374 = vmatprep.subr.bf16.mxu0 %v3710_v1 }
0x22b0   :  { %3375 = vmatpush3.bf16.msra.mxu0 %v4305_v30 }
0x22b1   :  { %3376 = vmatprep.subr.bf16.mxu0 %v3710_v1 }
0x22b4   :  { %3377 = vmatpush3.bf16.msra.mxu0 %v4312_v32 }
0x22b5   :  { %3406 = vmatprep.subr.bf16.mxu0 %v3710_v1 }
0x2372   :  { %v1994_v25 = vpop.f32.mrb[16].mxu0 }
0x2373   :  { %v3364_v15 = vpop.f32.mrb[17].mxu0  ;;  %v2000_v40 = vadd.f32 %v3140_v6, %v1994_v25 }
0x2374   :  { %v1997_v44 = vpop.f32.mrb[18].mxu0 }
0x2375   :  { %v3365_v18 = vpop.f32.mrb[19].mxu0  ;;  %v3142_v19 = vmul.f32 -1.442695, %v2000_v40 }
0x2378   :  { %v1863_v59 = vpop.f32.mrb[20].mxu1 }
0x2379   :  { %v1864_v24 = vadd.f32 %v4322_v4, %v1863_v59  ;;  %v3356_v17 = vpop.f32.mrb[21].mxu1 }
0x237a   :  { %v1866_v23 = vpop.f32.mrb[22].mxu1 }
0x237b   :  { %3564 = vtanh.f32 %v1864_v24  ;;  %v3357_v22 = vpop.f32.mrb[23].mxu1  ;;  %v3139_v48 = vmul.f32 -1.442695, %v1864_v24 }
0x237d   :  { %3566 = vpow2.f32 %v3139_v48 }
0x2385   :  { %v3565_v42 = vpop.eup %3564 }
0x2386   :  { %1878 = vrot.lane.b32.xlu0 %v3565_v42, %s3712_s13 }
0x2387   :  { %v3567_v3 = vpop.eup %3566 }
0x2388   :  { %v1872_v34 = vadd.f32 1.0, %v3567_v3 }
0x238a   :  { %3568 = vrcp.f32 %v1872_v34 }
0x238b   :  { %3570 = vtanh.f32 %v2000_v40 }
0x238c   :  { %3572 = vpow2.f32 %v3142_v19 }
0x2394   :  { %v3569_v45 = vpop.eup %3568 }
0x2395   :  { %v3571_v33 = vpop.eup %3570  ;;  %v1876_v36 = vmul.f32 %v3569_v45, %v4329_v27 }
0x2396   :  { %v3573_v53 = vpop.eup %3572 }
0x2397   :  { %v2004_v54 = vadd.f32 1.0, %v3573_v53 }
0x2399   :  { %3574 = vrcp.f32 %v2004_v54 }
0x23a3   :  { %v3575_v56 = vpop.eup %3574 }
0x23a4   :  { %v2008_v26 = vmul.f32 %v3575_v56, %v4341_v49 }
0x23f8   :  { %v1879_v5 = vpop.permute.xlu0 %1878 }
0x23f9   :  { %v1881_v51 = vmul.f32 %v3569_v45, %v1879_v5 }
0x23fb   :  { %1883 = vrot.lane.b32.xlu0 %v1881_v51, %s3713_s16 }
0x23ff   :  { %2010 = vrot.lane.b32.xlu0 %v3571_v33, %s3712_s13 }
0x246d   :  { %v1884_v16 = vpop.permute.xlu0 %1883 }
0x246e   :  { %v4437_v55 = vadd.f32 %v1884_v16, %v1876_v36 }
0x2470   :  { %3576 = vtanh.f32 %v4437_v55 }
0x2471   :  { %v2011_v57 = vpop.permute.xlu0 %2010 }
0x2472   :  { %v2013_v60 = vmul.f32 %v3575_v56, %v2011_v57 }
0x2474   :  { %2015 = vrot.lane.b32.xlu0 %v2013_v60, %s3713_s16 }
0x2478   :  { %1936 = vperm.xlu0 %3442, %v1893_v63  }
0x247a   :  { %v3577_v7 = vpop.eup %3576 }
0x247b   :  { %1889 = vrot.lane.b32.xlu1 %v3577_v7, %s3712_s13 }
0x247c   :  { %1941 = vperm.xlu0 %3442, %v1894_v8  }
0x24e6   :  { %v2016_v27 = vpop.permute.xlu0 %2015 }
0x24e7   :  { %v4445_v37 = vadd.f32 %v2016_v27, %v2008_v26 }
0x24e9   :  { %3578 = vtanh.f32 %v4445_v37 }
0x24ed   :  { %v1890_v10 = vpop.permute.xlu1 %1889 }
0x24ee   :  { %v4447_v39 = vmul.f32 %v3569_v45, %v1890_v10 }
0x24f0   :  { %v1902_v62 = vrot.slane %v4447_v39, %v3824_v31 }
0x24f2   :  { %v1903_v11 = vcombine.high %v1902_v62, %v1902_v62  ;;  %v1910_v12 = vrot.slane %v1902_v62, %v3824_v31 }
0x24f3   :  { %v3579_v0 = vpop.eup %3578 }
0x24f4   :  { %v1921_v46 = vrot.slane %v1910_v12, %v3830_v35  ;;  %v1917_v13 = vrot.slane %v1903_v11, %v3824_v31 }
0x24f6   :  { %1926 = vrot.lane.b32.xlu0 %v1921_v46, %s3713_s16  ;;  %v1925_v49 = vrot.slane %v1917_v13, %v3830_v35 }
0x24f7   :  { %v1937_v14 = vpop.permute.xlu0 %1936 }
0x24f8   :  { %1928 = vrot.lane.b32.xlu1 %v1925_v49, %s3713_s16 }
0x24fa   :  { %2021 = vrot.lane.b32.xlu0 %v3579_v0, %s3712_s13 }
0x24fb   :  { %v1942_v38 = vpop.permute.xlu0 %1941 }
0x2568   :  { %v1927_v9 = vpop.permute.xlu0 %1926 }
0x2569   :  { %v1932_v25 = vadd.f32 %v1927_v9, %v4352_v43 }
0x256a   :  { %v1929_v15 = vpop.permute.xlu1 %1928 }
0x256b   :  { %v4460_v44 = vmul.f32 %v1937_v14, %v1932_v25  ;;  %v1933_v18 = vadd.f32 %v1929_v15, %v4355_v2 }
0x256c   :  { %v2022_v24 = vpop.permute.xlu0 %2021 }
0x256d   :  { %v4463_v59 = vmul.f32 %v1942_v38, %v1933_v18  ;;  %2060 = vrot.lane.b32.xlu1 %v4460_v44, %s3714_s19  ;;  %v4469_v17 = vmul.f32 %v3575_v56, %v2022_v24 }
0x256f   :  { %2062 = vrot.lane.b32.xlu0 %v4463_v59, %s3714_s19  ;;  %v2032_v23 = vrot.slane %v4469_v17, %v3824_v31 }
0x2571   :  { %v2033_v43 = vcombine.high %v2032_v23, %v2032_v23  ;;  %v2040_v22 = vrot.slane %v2032_v23, %v3824_v31 }
0x2573   :  { %v2047_v42 = vrot.slane %v2033_v43, %v3824_v31  ;;  %v2051_v2 = vrot.slane %v2040_v22, %v3830_v35 }
0x2575   :  { %v2055_v34 = vrot.slane %v2047_v42, %v3830_v35 }
0x25df   :  { %v2061_v48 = vpop.permute.xlu1 %2060 }
0x25e0   :  { %v2066_v3 = vmul.f32 %v2061_v48, %v2051_v2 }
0x25e1   :  { %v2063_v6 = vpop.permute.xlu0 %2062 }
0x25e2   :  { %v2067_v40 = vmul.f32 %v2063_v6, %v2055_v34  ;;  %2070 = vrot.lane.b32.xlu1 %v2066_v3, %s3713_s16 }
0x25e4   :  { %2072 = vrot.lane.b32.xlu0 %v2067_v40, %s3713_s16 }
0x2654   :  { %v2071_v45 = vpop.permute.xlu1 %2070 }
0x2655   :  { %v2076_v5 = vsel %vm69_vm1, %v2071_v45, 0.0 }
0x2656   :  { %v2073_v51 = vpop.permute.xlu0 %2072  ;;  %2077 = vadd.xlane.f32.xlu1 %v2076_v5 }
0x2657   :  { %v2079_v33 = vsel %vm69_vm1, %v2073_v51, 0.0 }
0x2658   :  { %2080 = vadd.xlane.f32.xlu0 %v2079_v33 }
0x26e3   :  { %v2078_v19 = vpop.xlane.xlu1 %2077 }
0x26e4   :  { %v2087_v54 = vrot.slane %v2078_v19, %v3840_v50 }
0x26e5   :  { %v2081_v53 = vpop.xlane.xlu0 %2080 }
0x26e6   :  { %v2091_v36 = vrot.slane %v2081_v53, %v3840_v50 }
0x26e8   :  { %v2092_v16 = vsel %vm211_vm2, %v2091_v36, %v2087_v54 }
0x26e9   :  { %v2094_v56 = vsel %vm214_vm3, %v2092_v16, -inf }
0x26ea   :  { %2095 = vmax.xlane.f32.xlu0 %v2094_v56 }
0x2777   :  { %v2096_v57 = vpop.xlane.xlu0 %2095 }
0x2778   :  { %v2101_v60 = vrot.slane %v2096_v57, %v3830_v35  ;;  %v2105_v63 = vrot.slane %v2096_v57, %v3846_v58  ;;  %v2320_v57 = vpack.c.bf16 %v4469_v17, %v4469_v17 }
0x277a   :  { %v2108_v7 = vsub.f32 %v2078_v19, %v2101_v60  ;;  %v2109_v8 = vsub.f32 %v2081_v53, %v2105_v63 }
0x277c   :  { %v2110_v27 = vmul.f32 1.442695, %v2108_v7  ;;  %v2112_v26 = vmul.f32 1.442695, %v2109_v8 }
0x277e   :  { %3580 = vpow2.f32 %v2110_v27  ;;  %v3653_v27 = vld [vmem:[%s4833_s3] sm:$0xff]  }
0x277f   :  { %3582 = vpow2.f32 %v2112_v26 }
0x2788   :  { %v3581_v10 = vpop.eup %3580 }
0x2789   :  { %v3583_v62 = vpop.eup %3582  ;;  %2117 = vperm.xlu0 %3442, %v3581_v10  }
0x278a   :  { %2120 = vperm.xlu1 %3443, %v3583_v62  }
0x2808   :  { %v2118_v11 = vpop.permute.xlu0 %2117 }
0x2809   :  { %v2121_v12 = vpop.permute.xlu1 %2120  ;;  %v2125_v46 = vrot.slane %v2118_v11, %v3840_v50 }
0x280a   :  { %v2129_v13 = vrot.slane %v2121_v12, %v3840_v50 }
0x280c   :  { %v2130_v49 = vsel %vm211_vm2, %v2129_v13, %v2125_v46 }
0x280d   :  { %v2132_v0 = vsel %vm214_vm3, %v2130_v49, 0.0 }
0x280e   :  { %2133 = vadd.xlane.f32.xlu1 %v2132_v0 }
0x289b   :  { %v2134_v14 = vpop.xlane.xlu1 %2133 }
0x289c   :  { %v2139_v38 = vrot.slane %v2134_v14, %v3830_v35  ;;  %v2143_v9 = vrot.slane %v2134_v14, %v3846_v58 }
0x289e   :  { %3584 = vrcp.f32 %v2139_v38 }
0x289f   :  { %3586 = vrcp.f32 %v2143_v9 }
0x28a8   :  { %v3585_v25 = vpop.eup %3584 }
0x28a9   :  { %v4493_v15 = vmul.f32 %v3585_v25, %v3581_v10  ;;  %v3587_v18 = vpop.eup %3586 }
0x28aa   :  { %v4496_v24 = vmul.f32 %v3587_v18, %v3583_v62 }
0x28ab   :  { %2152 = vperm.xlu0 %3442, %v4493_v15  }
0x28af   :  { %2157 = vperm.xlu0 %3442, %v4496_v24  }
0x28b3   :  { %2176 = vrot.lane.b32.xlu0 %v4469_v17, %s3713_s16 }
0x292a   :  { %v2153_v23 = vpop.permute.xlu0 %2152 }
0x292b   :  { %v2160_v43 = vmul.f32 %v2153_v23, %v4460_v44 }
0x292d   :  { %v2162_v22 = vsel %vm69_vm1, %v2160_v43, 0.0 }
0x292e   :  { %v2163_v42 = vrot.slane %v2162_v22, 4  ;;  %v2158_v2 = vpop.permute.xlu0 %2157 }
0x292f   :  { %v2161_v48 = vmul.f32 %v2158_v2, %v4463_v59 }
0x2930   :  { %v2164_v3 = vadd.f32 %v2163_v42, %v2162_v22 }
0x2931   :  { %v2169_v34 = vsel %vm69_vm1, %v2161_v48, 0.0 }
0x2932   :  { %v2165_v6 = vrot.slane %v2164_v3, 2  ;;  %v2170_v40 = vrot.slane %v2169_v34, 4  ;;  %v2177_v45 = vpop.permute.xlu0 %2176 }
0x2933   :  { %2179 = vst.msk [vmem:[#allocation2] sm:$0x3] %vm300_vm4, %v2177_v45 }
0x2934   :  { %v2166_v5 = vadd.f32 %v2165_v6, %v2164_v3  ;;  %v2171_v51 = vadd.f32 %v2170_v40, %v2169_v34  ;;  %v2260_v40 = vsub.f32 1.0, %v4493_v15 }
0x2936   :  { %v2172_v33 = vrot.slane %v2171_v51, 2  ;;  %v2167_v19 = vrot.slane %v2166_v5, 1 }
0x2938   :  { %v2173_v53 = vadd.f32 %v2172_v33, %v2171_v51  ;;  %v2168_v36 = vadd.f32 %v2167_v19, %v2166_v5 }
0x293a   :  { %v2174_v54 = vrot.slane %v2173_v53, 1 }
0x293c   :  { %v2175_v16 = vadd.f32 %v2174_v54, %v2173_v53 }
0x293e   :  { %v2182_v56 = vsel %vm211_vm2, %v2175_v16, %v2168_v36 }
0x293f   :  { %2183 = vrot.lane.b32.xlu0 %v2182_v56, %s3713_s16 }
0x2943   :  { %2187 = vrot.lane.b32.xlu0 %v4447_v39, %s3714_s19 }
0x2947   :  { %2322 = vrot.lane.b32.xlu0 %v2320_v57, %s3713_s16 }
0x29b1   :  { %v2184_v60 = vpop.permute.xlu0 %2183 }
0x29b2   :  { %2186 = vst.msk [vmem:[#allocation2] sm:$0x3] %vm308_vm5, %v2184_v60 }
0x29b5   :  { %v2188_v63 = vpop.permute.xlu0 %2187 }
0x29b6   :  { %2190 = vst.msk [vmem:[#allocation2] sm:$0x3] %vm314_vm6, %v2188_v63 }
0x29b9   :  { %v2323_v7 = vpop.permute.xlu0 %2322 }
0x29ba   :  { %3387 = vmatmul.mubr.msk.bf16.vlgmr.msra.gmra.mrb[24].mxu1 %vm69_vm1, %v2323_v7 }
0x29bb   :  { %3391 = vmatpush3.bf16.msra.mxu1 %v4268_v28  ;;  %3402 = vmatprep.mubr.msk.bf16.mxu1 %vm3711_vm0, %v3710_v1  ;;  %v3654_v28 = vld [vmem:[%s4833_s3 + $0x8] sm:$0xff]  }
0x29bc   :  { %3392 = vmatprep.subr.bf16.mxu1 %v3710_v1 }
0x29bd   :  { %v2191_v8 = vld [vmem:[#allocation2] sm:$0x3] }
0x29be   :  { %v2192_v17 = vpack.c.bf16 %v2191_v8, %v2191_v8 }
0x29bf   :  { %3393 = vmatpush3.bf16.msra.mxu1 %v4277_v61  ;;  %v3145_v61 = vld [vmem:[%s4830_s0 + $0xc] sm:$0x3] }
0x29c0   :  { %3379 = vmatmul.mubr.msk.bf16.vlgmr.msra.gmra.mrb[20].mxu0 %vm354_vm7, %v2192_v17  ;;  %3394 = vmatprep.subr.bf16.mxu1 %v3710_v1 }
0x29c1   :  { %3407 = vmatpush3.bf16.msra.mxu0 %v3653_v27  ;;  %3410 = vmatprep.mubr.msk.bf16.mxu0 %vm3711_vm0, %v3710_v1 }
0x29c2   :  { %3408 = vmatprep.subr.bf16.mxu0 %v3710_v1 }
0x29c3   :  { %3395 = vmatpush3.bf16.msra.mxu1 %v4289_v29 }
0x29c4   :  { %3396 = vmatprep.subr.bf16.mxu1 %v3710_v1 }
0x29c5   :  { %3409 = vmatpush3.bf16.msra.mxu0 %v3654_v28 }
0x29c6   :  { %3414 = vmatprep.subr.bf16.mxu0 %v3710_v1 }
0x29c7   :  { %3397 = vmatpush3.bf16.msra.mxu1 %v4298_v47 }
0x29c8   :  { %3398 = vmatprep.subr.bf16.mxu1 %v3710_v1 }
0x29cb   :  { %3399 = vmatpush3.bf16.msra.mxu1 %v4305_v30 }
0x29cc   :  { %3400 = vmatprep.subr.bf16.mxu1 %v3710_v1 }
0x29cf   :  { %3401 = vmatpush3.bf16.msra.mxu1 %v4312_v32 }
0x2a8d   :  { %v2361_v29 = vpop.f32.mrb[24].mxu1 }
0x2a8e   :  { %v2367_v26 = vadd.f32 %v3145_v61, %v2361_v29  ;;  %v3388_v10 = vpop.f32.mrb[25].mxu1 }
0x2a8f   :  { %v2364_v62 = vpop.f32.mrb[26].mxu1 }
0x2a90   :  { %3588 = vtanh.f32 %v2367_v26  ;;  %v3389_v11 = vpop.f32.mrb[27].mxu1 }
0x2a93   :  { %v2230_v12 = vpop.f32.mrb[20].mxu0 }
0x2a94   :  { %v2231_v47 = vadd.f32 %v4322_v4, %v2230_v12  ;;  %v3380_v46 = vpop.f32.mrb[21].mxu0  ;;  %v3147_v4 = vmul.f32 -1.442695, %v2367_v26 }
0x2a95   :  { %v2233_v13 = vpop.f32.mrb[22].mxu0 }
0x2a96   :  { %3590 = vtanh.f32 %v2231_v47  ;;  %v3381_v30 = vpop.f32.mrb[23].mxu0  ;;  %v3144_v0 = vmul.f32 -1.442695, %v2231_v47 }
0x2a98   :  { %3592 = vpow2.f32 %v3144_v0 }
0x2a9a   :  { %v3589_v49 = vpop.eup %3588 }
0x2a9b   :  { %2377 = vrot.lane.b32.xlu1 %v3589_v49, %s3712_s13 }
0x2aa0   :  { %v3591_v32 = vpop.eup %3590 }
0x2aa1   :  { %2245 = vrot.lane.b32.xlu0 %v3591_v32, %s3712_s13 }
0x2aa2   :  { %v3593_v14 = vpop.eup %3592 }
0x2aa3   :  { %v2239_v38 = vadd.f32 1.0, %v3593_v14 }
0x2aa5   :  { %3594 = vrcp.f32 %v2239_v38 }
0x2aa6   :  { %3596 = vpow2.f32 %v3147_v4 }
0x2aaf   :  { %v3595_v9 = vpop.eup %3594 }
0x2ab0   :  { %v3597_v23 = vpop.eup %3596  ;;  %v2243_v43 = vmul.f32 %v3595_v9, %v4437_v55  ;;  %v2261_v55 = vsub.f32 1.0, %v4496_v24 }
0x2ab1   :  { %v2371_v42 = vadd.f32 1.0, %v3597_v23 }
0x2b0d   :  { %v2378_v3 = vpop.permute.xlu1 %2377 }
0x2b13   :  { %v2246_v25 = vpop.permute.xlu0 %2245 }
0x2b14   :  { %v2248_v18 = vmul.f32 %v3595_v9, %v2246_v25 }
0x2b16   :  { %2250 = vrot.lane.b32.xlu0 %v2248_v18, %s3713_s16 }
0x2b88   :  { %v2251_v22 = vpop.permute.xlu0 %2250 }
0x2b89   :  { %v4548_v2 = vadd.f32 %v2251_v22, %v2243_v43 }
0x2b8b   :  { %3598 = vtanh.f32 %v4548_v2 }
0x2b8c   :  { %3600 = vrcp.f32 %v2371_v42 }
0x2b95   :  { %v3599_v48 = vpop.eup %3598 }
0x2b96   :  { %2256 = vrot.lane.b32.xlu0 %v3599_v48, %s3712_s13  ;;  %v3601_v34 = vpop.eup %3600 }
0x2b97   :  { %v2380_v6 = vmul.f32 %v3601_v34, %v2378_v3  ;;  %v2375_v33 = vmul.f32 %v3601_v34, %v4445_v37 }
0x2b9a   :  { %2382 = vrot.lane.b32.xlu0 %v2380_v6, %s3713_s16 }
0x2b9e   :  { %2303 = vperm.xlu0 %3442, %v2260_v40  }
0x2ba2   :  { %2308 = vperm.xlu0 %3442, %v2261_v55  }
0x2c08   :  { %v2257_v45 = vpop.permute.xlu0 %2256 }
0x2c09   :  { %v4555_v5 = vmul.f32 %v3595_v9, %v2257_v45 }
0x2c0b   :  { %v2269_v51 = vrot.slane %v4555_v5, %v3824_v31 }
0x2c0c   :  { %v2383_v19 = vpop.permute.xlu0 %2382 }
0x2c0d   :  { %v2270_v53 = vcombine.high %v2269_v51, %v2269_v51  ;;  %v2277_v54 = vrot.slane %v2269_v51, %v3824_v31  ;;  %v4561_v36 = vadd.f32 %v2383_v19, %v2375_v33 }
0x2c0f   :  { %3602 = vtanh.f32 %v4561_v36  ;;  %v2288_v15 = vrot.slane %v2277_v54, %v3830_v35  ;;  %v2284_v24 = vrot.slane %v2270_v53, %v3824_v31 }
0x2c11   :  { %2293 = vrot.lane.b32.xlu0 %v2288_v15, %s3713_s16  ;;  %v2292_v16 = vrot.slane %v2284_v24, %v3830_v35 }
0x2c13   :  { %2295 = vrot.lane.b32.xlu1 %v2292_v16, %s3713_s16 }
0x2c19   :  { %v3603_v56 = vpop.eup %3602 }
0x2c1a   :  { %2388 = vrot.lane.b32.xlu0 %v3603_v56, %s3712_s13 }
0x2c1d   :  { %v2304_v37 = vpop.permute.xlu0 %2303 }
0x2c21   :  { %v2309_v57 = vpop.permute.xlu0 %2308 }
0x2c83   :  { %v2294_v60 = vpop.permute.xlu0 %2293 }
0x2c84   :  { %v2299_v63 = vadd.f32 %v2294_v60, %v4460_v44 }
0x2c85   :  { %v2296_v7 = vpop.permute.xlu1 %2295 }
0x2c86   :  { %v4571_v8 = vmul.f32 %v2304_v37, %v2299_v63  ;;  %v2300_v17 = vadd.f32 %v2296_v7, %v4463_v59 }
0x2c88   :  { %v4574_v27 = vmul.f32 %v2309_v57, %v2300_v17  ;;  %2427 = vrot.lane.b32.xlu1 %v4571_v8, %s3714_s19 }
0x2c8a   :  { %2429 = vrot.lane.b32.xlu0 %v4574_v27, %s3714_s19 }
0x2c8c   :  { %v2389_v28 = vpop.permute.xlu0 %2388 }
0x2c8d   :  { %v4580_v61 = vmul.f32 %v3601_v34, %v2389_v28 }
0x2c8f   :  { %v2399_v29 = vrot.slane %v4580_v61, %v3824_v31 }
0x2c91   :  { %v2400_v44 = vcombine.high %v2399_v29, %v2399_v29  ;;  %v2407_v26 = vrot.slane %v2399_v29, %v3824_v31 }
0x2c93   :  { %v2414_v10 = vrot.slane %v2400_v44, %v3824_v31  ;;  %v2418_v59 = vrot.slane %v2407_v26, %v3830_v35 }
0x2c95   :  { %v2422_v12 = vrot.slane %v2414_v10, %v3830_v35 }
0x2cfa   :  { %v2428_v62 = vpop.permute.xlu1 %2427 }
0x2cfb   :  { %v2433_v11 = vmul.f32 %v2428_v62, %v2418_v59 }
0x2cfc   :  { %v2430_v47 = vpop.permute.xlu0 %2429 }
0x2cfd   :  { %v2434_v46 = vmul.f32 %v2430_v47, %v2422_v12  ;;  %2437 = vrot.lane.b32.xlu1 %v2433_v11, %s3713_s16 }
0x2cff   :  { %2439 = vrot.lane.b32.xlu0 %v2434_v46, %s3713_s16 }
0x2d6f   :  { %v2438_v13 = vpop.permute.xlu1 %2437 }
0x2d70   :  { %v2443_v30 = vsel %vm69_vm1, %v2438_v13, 0.0 }
0x2d71   :  { %2444 = vadd.xlane.f32.xlu1 %v2443_v30  ;;  %v2440_v49 = vpop.permute.xlu0 %2439 }
0x2d72   :  { %v2446_v32 = vsel %vm69_vm1, %v2440_v49, 0.0 }
0x2d73   :  { %2447 = vadd.xlane.f32.xlu0 %v2446_v32 }
0x2dfe   :  { %v2445_v0 = vpop.xlane.xlu1 %2444 }
0x2dff   :  { %v2454_v38 = vrot.slane %v2445_v0, %v3840_v50 }
0x2e00   :  { %v2448_v14 = vpop.xlane.xlu0 %2447 }
0x2e01   :  { %v2458_v9 = vrot.slane %v2448_v14, %v3840_v50 }
0x2e03   :  { %v2459_v25 = vsel %vm211_vm2, %v2458_v9, %v2454_v38 }
0x2e04   :  { %v2461_v18 = vsel %vm214_vm3, %v2459_v25, -inf  ;;  %v3655_v25 = vld [vmem:[%s4834_s4] sm:$0xff]  }
0x2e05   :  { %2462 = vmax.xlane.f32.xlu0 %v2461_v18 }
0x2e92   :  { %v2463_v4 = vpop.xlane.xlu0 %2462 }
0x2e93   :  { %v2468_v23 = vrot.slane %v2463_v4, %v3830_v35  ;;  %v2472_v43 = vrot.slane %v2463_v4, %v3846_v58  ;;  %v3656_v4 = vld [vmem:[%s4834_s4 + $0x8] sm:$0xff]  }
0x2e95   :  { %v2475_v22 = vsub.f32 %v2445_v0, %v2468_v23  ;;  %v2476_v42 = vsub.f32 %v2448_v14, %v2472_v43  ;;  %v2687_v0 = vpack.c.bf16 %v4580_v61, %v4580_v61  ;;  %v3657_v23 = vld [vmem:[%s4834_s4 + $0x10] sm:$0xff]   ;;  %v3658_v43 = vld [vmem:[%s4834_s4 + $0x18] sm:$0xff]  }
0x2e97   :  { %v2477_v48 = vmul.f32 1.442695, %v2475_v22  ;;  %v2479_v3 = vmul.f32 1.442695, %v2476_v42  ;;  %v3659_v22 = vld [vmem:[%s4834_s4 + $0x20] sm:$0xff]   ;;  %v3660_v42 = vld [vmem:[%s4834_s4 + $0x28] sm:$0xff]  }
0x2e99   :  { %3604 = vpow2.f32 %v2477_v48  ;;  %v3150_v48 = vld [vmem:[%s4830_s0 + $0xe] sm:$0x3] }
0x2e9a   :  { %3606 = vpow2.f32 %v2479_v3 }
0x2ea3   :  { %v3605_v34 = vpop.eup %3604 }
0x2ea4   :  { %v3607_v6 = vpop.eup %3606  ;;  %2484 = vperm.xlu1 %3443, %v3605_v34  }
0x2ea5   :  { %2487 = vperm.xlu0 %3442, %v3607_v6  }
0x2f23   :  { %v2485_v40 = vpop.permute.xlu1 %2484 }
0x2f24   :  { %v2488_v55 = vpop.permute.xlu0 %2487  ;;  %v2492_v45 = vrot.slane %v2485_v40, %v3840_v50 }
0x2f25   :  { %v2496_v51 = vrot.slane %v2488_v55, %v3840_v50 }
0x2f27   :  { %v2497_v33 = vsel %vm211_vm2, %v2496_v51, %v2492_v45 }
0x2f28   :  { %v2499_v19 = vsel %vm214_vm3, %v2497_v33, 0.0 }
0x2f29   :  { %2500 = vadd.xlane.f32.xlu1 %v2499_v19 }
0x2fb6   :  { %v2501_v53 = vpop.xlane.xlu1 %2500 }
0x2fb7   :  { %v2506_v54 = vrot.slane %v2501_v53, %v3830_v35  ;;  %v2510_v15 = vrot.slane %v2501_v53, %v3846_v58 }
0x2fb9   :  { %3608 = vrcp.f32 %v2506_v54 }
0x2fba   :  { %3610 = vrcp.f32 %v2510_v15 }
0x2fc3   :  { %v3609_v24 = vpop.eup %3608 }
0x2fc4   :  { %v4604_v16 = vmul.f32 %v3609_v24, %v3605_v34  ;;  %v3611_v56 = vpop.eup %3610 }
0x2fc5   :  { %v4607_v37 = vmul.f32 %v3611_v56, %v3607_v6 }
0x2fc6   :  { %2519 = vperm.xlu0 %3442, %v4604_v16  }
0x2fca   :  { %2524 = vperm.xlu0 %3442, %v4607_v37  }
0x2fce   :  { %2543 = vrot.lane.b32.xlu0 %v4580_v61, %s3713_s16 }
0x3045   :  { %v2520_v57 = vpop.permute.xlu0 %2519 }
0x3046   :  { %v2527_v60 = vmul.f32 %v2520_v57, %v4571_v8 }
0x3048   :  { %v2529_v63 = vsel %vm69_vm1, %v2527_v60, 0.0 }
0x3049   :  { %v2530_v7 = vrot.slane %v2529_v63, 4  ;;  %v2525_v17 = vpop.permute.xlu0 %2524 }
0x304a   :  { %v2528_v28 = vmul.f32 %v2525_v17, %v4574_v27 }
0x304b   :  { %v2531_v29 = vadd.f32 %v2530_v7, %v2529_v63 }
0x304c   :  { %v2536_v44 = vsel %vm69_vm1, %v2528_v28, 0.0 }
0x304d   :  { %v2532_v26 = vrot.slane %v2531_v29, 2  ;;  %v2537_v10 = vrot.slane %v2536_v44, 4  ;;  %v2544_v59 = vpop.permute.xlu0 %2543 }
0x304e   :  { %2546 = vst.msk [vmem:[#allocation2] sm:$0x3] %vm300_vm4, %v2544_v59 }
0x304f   :  { %v2533_v62 = vadd.f32 %v2532_v26, %v2531_v29  ;;  %v2538_v11 = vadd.f32 %v2537_v10, %v2536_v44 }
0x3051   :  { %v2539_v12 = vrot.slane %v2538_v11, 2  ;;  %v2534_v47 = vrot.slane %v2533_v62, 1 }
0x3053   :  { %v2540_v46 = vadd.f32 %v2539_v12, %v2538_v11  ;;  %v2535_v30 = vadd.f32 %v2534_v47, %v2533_v62  ;;  %v2627_v47 = vsub.f32 1.0, %v4604_v16 }
0x3055   :  { %v2541_v13 = vrot.slane %v2540_v46, 1 }
0x3057   :  { %v2542_v49 = vadd.f32 %v2541_v13, %v2540_v46 }
0x3059   :  { %v2549_v32 = vsel %vm211_vm2, %v2542_v49, %v2535_v30 }
0x305a   :  { %2550 = vrot.lane.b32.xlu0 %v2549_v32, %s3713_s16 }
0x305e   :  { %2554 = vrot.lane.b32.xlu0 %v4555_v5, %s3714_s19 }
0x3062   :  { %2689 = vrot.lane.b32.xlu0 %v2687_v0, %s3713_s16 }
0x30cc   :  { %v2551_v14 = vpop.permute.xlu0 %2550 }
0x30cd   :  { %2553 = vst.msk [vmem:[#allocation2] sm:$0x3] %vm308_vm5, %v2551_v14 }
0x30d0   :  { %v2555_v38 = vpop.permute.xlu0 %2554 }
0x30d1   :  { %2557 = vst.msk [vmem:[#allocation2] sm:$0x3] %vm314_vm6, %v2555_v38 }
0x30d4   :  { %v2690_v9 = vpop.permute.xlu0 %2689 }
0x30d5   :  { %3411 = vmatmul.mubr.msk.bf16.vlgmr.msra.gmra.mrb[24].mxu0 %vm69_vm1, %v2690_v9 }
0x30d6   :  { %3415 = vmatpush3.bf16.msra.mxu0 %v3655_v25  ;;  %3426 = vmatprep.mubr.msk.bf16.mxu0 %vm3711_vm0, %v3710_v1 }
0x30d7   :  { %3416 = vmatprep.subr.bf16.mxu0 %v3710_v1 }
0x30d8   :  { %v2558_v61 = vld [vmem:[#allocation2] sm:$0x3] }
0x30d9   :  { %v2559_v18 = vpack.c.bf16 %v2558_v61, %v2558_v61 }
0x30da   :  { %3417 = vmatpush3.bf16.msra.mxu0 %v3656_v4 }
0x30db   :  { %3403 = vmatmul.mubr.msk.bf16.vlgmr.msra.gmra.mrb[28].mxu1 %vm354_vm7, %v2559_v18  ;;  %3418 = vmatprep.subr.bf16.mxu0 %v3710_v1 }
0x30de   :  { %3419 = vmatpush3.bf16.msra.mxu0 %v3657_v23 }
0x30df   :  { %3420 = vmatprep.subr.bf16.mxu0 %v3710_v1 }
0x30e2   :  { %3421 = vmatpush3.bf16.msra.mxu0 %v3658_v43 }
0x30e3   :  { %3422 = vmatprep.subr.bf16.mxu0 %v3710_v1 }
0x30e6   :  { %3423 = vmatpush3.bf16.msra.mxu0 %v3659_v22 }
0x30e7   :  { %3424 = vmatprep.subr.bf16.mxu0 %v3710_v1  ;;  %v4659_v1 = vld [vmem:[%s4835_s5] sm:$0x3] }
0x30ea   :  { %3425 = vmatpush3.bf16.msra.mxu0 %v3660_v42 }
0x31a8   :  { %v2728_v3 = vpop.f32.mrb[24].mxu0 }
0x31a9   :  { %v2734_v34 = vadd.f32 %v3150_v48, %v2728_v3  ;;  %v3412_v6 = vpop.f32.mrb[25].mxu0 }
0x31aa   :  { %v2731_v40 = vpop.f32.mrb[26].mxu0 }
0x31ab   :  { %3612 = vtanh.f32 %v2734_v34  ;;  %v3413_v55 = vpop.f32.mrb[27].mxu0  ;;  %v3152_v17 = vmul.f32 -1.442695, %v2734_v34 }
0x31ae   :  { %v2597_v45 = vpop.f32.mrb[28].mxu1 }
0x31af   :  { %v2598_v51 = vadd.f32 %v4659_v1, %v2597_v45  ;;  %v3404_v33 = vpop.f32.mrb[29].mxu1 }
0x31b0   :  { %v2600_v19 = vpop.f32.mrb[30].mxu1 }
0x31b1   :  { %3614 = vtanh.f32 %v2598_v51  ;;  %v3405_v53 = vpop.f32.mrb[31].mxu1  ;;  %v3149_v24 = vmul.f32 -1.442695, %v2598_v51 }
0x31b3   :  { %3616 = vpow2.f32 %v3149_v24 }
0x31b5   :  { %v3613_v54 = vpop.eup %3612 }
0x31b6   :  { %2744 = vrot.lane.b32.xlu1 %v3613_v54, %s3712_s13 }
0x31bb   :  { %v3615_v15 = vpop.eup %3614 }
0x31bc   :  { %2612 = vrot.lane.b32.xlu0 %v3615_v15, %s3712_s13 }
0x31bd   :  { %v3617_v56 = vpop.eup %3616 }
0x31be   :  { %v2606_v57 = vadd.f32 1.0, %v3617_v56 }
0x31c0   :  { %3618 = vrcp.f32 %v2606_v57 }
0x31c1   :  { %3620 = vpow2.f32 %v3152_v17 }
0x31ca   :  { %v3619_v60 = vpop.eup %3618 }
0x31cb   :  { %v3621_v28 = vpop.eup %3620  ;;  %v2610_v29 = vmul.f32 %v3619_v60, %v4548_v2  ;;  %v2628_v2 = vsub.f32 1.0, %v4607_v37 }
0x31cc   :  { %v2738_v26 = vadd.f32 1.0, %v3621_v28 }
0x3228   :  { %v2745_v62 = vpop.permute.xlu1 %2744 }
0x322e   :  { %v2613_v63 = vpop.permute.xlu0 %2612 }
0x322f   :  { %v2615_v7 = vmul.f32 %v3619_v60, %v2613_v63 }
0x3231   :  { %2617 = vrot.lane.b32.xlu0 %v2615_v7, %s3713_s16 }
0x32a3   :  { %v2618_v44 = vpop.permute.xlu0 %2617 }
0x32a4   :  { %v4666_v10 = vadd.f32 %v2618_v44, %v2610_v29 }
0x32a6   :  { %3622 = vtanh.f32 %v4666_v10 }
0x32a7   :  { %3624 = vrcp.f32 %v2738_v26 }
0x32b0   :  { %v3623_v59 = vpop.eup %3622 }
0x32b1   :  { %2623 = vrot.lane.b32.xlu0 %v3623_v59, %s3712_s13  ;;  %v3625_v11 = vpop.eup %3624 }
0x32b2   :  { %v2747_v12 = vmul.f32 %v3625_v11, %v2745_v62  ;;  %v2742_v49 = vmul.f32 %v3625_v11, %v4561_v36 }
0x32b5   :  { %2749 = vrot.lane.b32.xlu0 %v2747_v12, %s3713_s16 }
0x32b9   :  { %2670 = vperm.xlu0 %3442, %v2627_v47  }
0x32bd   :  { %2675 = vperm.xlu0 %3442, %v2628_v2  }
0x3323   :  { %v2624_v46 = vpop.permute.xlu0 %2623 }
0x3324   :  { %v4673_v13 = vmul.f32 %v3619_v60, %v2624_v46 }
0x3326   :  { %v2636_v30 = vrot.slane %v4673_v13, %v3824_v31 }
0x3327   :  { %v2750_v32 = vpop.permute.xlu0 %2749 }
0x3328   :  { %v2637_v0 = vcombine.high %v2636_v30, %v2636_v30  ;;  %v2644_v14 = vrot.slane %v2636_v30, %v3824_v31  ;;  %v4679_v38 = vadd.f32 %v2750_v32, %v2742_v49 }
0x332a   :  { %v2651_v16 = vrot.slane %v2637_v0, %v3824_v31  ;;  %3626 = vtanh.f32 %v4679_v38  ;;  %v2655_v37 = vrot.slane %v2644_v14, %v3830_v35 }
0x332c   :  { %2660 = vrot.lane.b32.xlu1 %v2655_v37, %s3713_s16  ;;  %v2659_v9 = vrot.slane %v2651_v16, %v3830_v35 }
0x332e   :  { %2662 = vrot.lane.b32.xlu0 %v2659_v9, %s3713_s16 }
0x3334   :  { %v3627_v25 = vpop.eup %3626 }
0x3335   :  { %2755 = vrot.lane.b32.xlu1 %v3627_v25, %s3712_s13 }
0x3338   :  { %v2671_v36 = vpop.permute.xlu0 %2670 }
0x333c   :  { %v2676_v61 = vpop.permute.xlu0 %2675 }
0x339e   :  { %v2661_v18 = vpop.permute.xlu1 %2660 }
0x339f   :  { %v2666_v4 = vadd.f32 %v2661_v18, %v4571_v8 }
0x33a0   :  { %v2663_v23 = vpop.permute.xlu0 %2662 }
0x33a1   :  { %v4689_v43 = vmul.f32 %v2671_v36, %v2666_v4  ;;  %v2667_v22 = vadd.f32 %v2663_v23, %v4574_v27 }
0x33a3   :  { %v4692_v42 = vmul.f32 %v2676_v61, %v2667_v22  ;;  %2794 = vrot.lane.b32.xlu0 %v4689_v43, %s3714_s19 }
0x33a5   :  { %2796 = vrot.lane.b32.xlu1 %v4692_v42, %s3714_s19 }
0x33a7   :  { %v2756_v48 = vpop.permute.xlu1 %2755 }
0x33a8   :  { %v2758_v3 = vmul.f32 %v3625_v11, %v2756_v48 }
0x33aa   :  { %v2766_v34 = vrot.slane %v2758_v3, %v3824_v31 }
0x33ac   :  { %v2767_v6 = vcombine.high %v2766_v34, %v2766_v34  ;;  %v2774_v8 = vrot.slane %v2766_v34, %v3824_v31 }
0x33ae   :  { %v2781_v40 = vrot.slane %v2767_v6, %v3824_v31  ;;  %v2785_v55 = vrot.slane %v2774_v8, %v3830_v35 }
0x33b0   :  { %v2789_v51 = vrot.slane %v2781_v40, %v3830_v35 }
0x3415   :  { %v2795_v27 = vpop.permute.xlu0 %2794 }
0x3416   :  { %v2800_v45 = vmul.f32 %v2795_v27, %v2785_v55 }
0x3417   :  { %v2797_v33 = vpop.permute.xlu1 %2796 }
0x3418   :  { %v2801_v19 = vmul.f32 %v2797_v33, %v2789_v51  ;;  %2804 = vrot.lane.b32.xlu0 %v2800_v45, %s3713_s16 }
0x341a   :  { %2806 = vrot.lane.b32.xlu1 %v2801_v19, %s3713_s16 }
0x348a   :  { %v2805_v53 = vpop.permute.xlu0 %2804 }
0x348b   :  { %v2810_v54 = vsel %vm69_vm1, %v2805_v53, 0.0 }
0x348c   :  { %v2807_v15 = vpop.permute.xlu1 %2806  ;;  %2811 = vadd.xlane.f32.xlu0 %v2810_v54 }
0x348d   :  { %v2813_v24 = vsel %vm69_vm1, %v2807_v15, 0.0 }
0x348e   :  { %2814 = vadd.xlane.f32.xlu1 %v2813_v24 }
0x3519   :  { %v2812_v56 = vpop.xlane.xlu0 %2811 }
0x351a   :  { %v2821_v60 = vrot.slane %v2812_v56, %v3840_v50 }
0x351b   :  { %v2815_v57 = vpop.xlane.xlu1 %2814 }
0x351c   :  { %v2825_v63 = vrot.slane %v2815_v57, %v3840_v50 }
0x351e   :  { %v2826_v7 = vsel %vm211_vm2, %v2825_v63, %v2821_v60 }
0x351f   :  { %v2828_v17 = vsel %vm214_vm3, %v2826_v7, -inf }
0x3520   :  { %2829 = vmax.xlane.f32.xlu0 %v2828_v17 }
0x35ad   :  { %v2830_v28 = vpop.xlane.xlu0 %2829 }
0x35ae   :  { %v2835_v29 = vrot.slane %v2830_v28, %v3830_v35  ;;  %v2839_v44 = vrot.slane %v2830_v28, %v3846_v58 }
0x35b0   :  { %v2842_v26 = vsub.f32 %v2812_v56, %v2835_v29  ;;  %v2843_v59 = vsub.f32 %v2815_v57, %v2839_v44 }
0x35b2   :  { %v2844_v62 = vmul.f32 1.442695, %v2842_v26  ;;  %v2846_v11 = vmul.f32 1.442695, %v2843_v59 }
0x35b4   :  { %3628 = vpow2.f32 %v2844_v62 }
0x35b5   :  { %3630 = vpow2.f32 %v2846_v11 }
0x35be   :  { %v3629_v12 = vpop.eup %3628 }
0x35bf   :  { %v3631_v47 = vpop.eup %3630  ;;  %2851 = vperm.xlu0 %3442, %v3629_v12  }
0x35c0   :  { %2854 = vperm.xlu1 %3443, %v3631_v47  }
0x363e   :  { %v2852_v2 = vpop.permute.xlu0 %2851 }
0x363f   :  { %v2855_v46 = vpop.permute.xlu1 %2854  ;;  %v2859_v30 = vrot.slane %v2852_v2, %v3840_v50 }
0x3640   :  { %v2863_v49 = vrot.slane %v2855_v46, %v3840_v50 }
0x3642   :  { %v2864_v32 = vsel %vm211_vm2, %v2863_v49, %v2859_v30 }
0x3643   :  { %v2866_v0 = vsel %vm214_vm3, %v2864_v32, 0.0 }
0x3644   :  { %2867 = vadd.xlane.f32.xlu1 %v2866_v0 }
0x36d1   :  { %v2868_v14 = vpop.xlane.xlu1 %2867 }
0x36d2   :  { %v2873_v16 = vrot.slane %v2868_v14, %v3830_v35  ;;  %v2877_v37 = vrot.slane %v2868_v14, %v3846_v58 }
0x36d4   :  { %3632 = vrcp.f32 %v2873_v16 }
0x36d5   :  { %3634 = vrcp.f32 %v2877_v37 }
0x36de   :  { %v3633_v9 = vpop.eup %3632 }
0x36df   :  { %v3635_v25 = vpop.eup %3634  ;;  %v4719_v36 = vmul.f32 %v3633_v9, %v3629_v12 }
0x36e0   :  { %v2883_v61 = vmul.f32 %v3635_v25, %v3631_v47 }
0x36e1   :  { %2886 = vperm.xlu0 %3442, %v4719_v36   ;;  %v2994_v32 = vsub.f32 1.0, %v4719_v36 }
0x36e2   :  { %v2995_v50 = vsub.f32 1.0, %v2883_v61 }
0x36e4   :  { %3042 = vperm.xlu1 %3443, %v2995_v50  }
0x36e5   :  { %2891 = vperm.xlu0 %3442, %v2883_v61  }
0x36e8   :  { %1212 = vrot.lane.b32.xlu1 %v4196_v52, %s3713_s16 }
0x36e9   :  { %2910 = vrot.lane.b32.xlu0 %v2758_v3, %s3713_s16 }
0x36ec   :  { %1946 = vrot.lane.b32.xlu1 %v4447_v39, %s3713_s16 }
0x36f0   :  { %2680 = vrot.lane.b32.xlu1 %v4673_v13, %s3713_s16 }
0x36f4   :  { %3054 = vrot.lane.b32.xlu1 %v4679_v38, %s3714_s19 }
0x3760   :  { %v2887_v58 = vpop.permute.xlu0 %2886 }
0x3761   :  { %v2894_v18 = vmul.f32 %v2887_v58, %v4689_v43 }
0x3763   :  { %v2896_v4 = vsel %vm69_vm1, %v2894_v18, 0.0  ;;  %v4733_v23 = vpop.permute.xlu1 %3042 }
0x3764   :  { %v2897_v22 = vrot.slane %v2896_v4, 4  ;;  %v2892_v52 = vpop.permute.xlu0 %2891 }
0x3765   :  { %v2895_v48 = vmul.f32 %v2892_v52, %v4692_v42 }
0x3766   :  { %v2898_v3 = vadd.f32 %v2897_v22, %v2896_v4 }
0x3767   :  { %v2903_v39 = vsel %vm69_vm1, %v2895_v48, 0.0  ;;  %v1213_v34 = vpop.permute.xlu1 %1212 }
0x3768   :  { %v2899_v6 = vrot.slane %v2898_v3, 2  ;;  %v2904_v8 = vrot.slane %v2903_v39, 4  ;;  %1216 = vst.msk [vmem:[#allocation3 + $0x4] sm:$0x3] %vm300_vm4, %v1213_v34  ;;  %v2911_v38 = vpop.permute.xlu0 %2910 }
0x3769   :  { %2913 = vst.msk [vmem:[#allocation2] sm:$0x3] %vm300_vm4, %v2911_v38  ;;  %3052 = vst.msk [vmem:[%s4837_s7] sm:$0x3] %vm300_vm4, %v2911_v38 }
0x376a   :  { %v2900_v40 = vadd.f32 %v2899_v6, %v2898_v3  ;;  %v2905_v55 = vadd.f32 %v2904_v8, %v2903_v39 }
0x376b   :  { %v1947_v27 = vpop.permute.xlu1 %1946 }
0x376c   :  { %v2906_v45 = vrot.slane %v2905_v55, 2  ;;  %1950 = vst.msk [vmem:[#allocation3 + $0x8] sm:$0x3] %vm300_vm4, %v1947_v27  ;;  %v2901_v51 = vrot.slane %v2900_v40, 1 }
0x376e   :  { %v2907_v33 = vadd.f32 %v2906_v45, %v2905_v55  ;;  %v2902_v54 = vadd.f32 %v2901_v51, %v2900_v40 }
0x376f   :  { %v2681_v19 = vpop.permute.xlu1 %2680 }
0x3770   :  { %v2908_v53 = vrot.slane %v2907_v33, 1  ;;  %2684 = vst.msk [vmem:[#allocation3 + $0xc] sm:$0x3] %vm300_vm4, %v2681_v19 }
0x3772   :  { %v2909_v15 = vadd.f32 %v2908_v53, %v2907_v33 }
0x3773   :  { %v3055_v24 = vpop.permute.xlu1 %3054 }
0x3774   :  { %3155 = vst.msk [vmem:[%s4837_s7 + $0x2] sm:$0x3] %vm300_vm4, %v3055_v24  ;;  %v2916_v56 = vsel %vm211_vm2, %v2909_v15, %v2902_v54 }
0x3775   :  { %2917 = vrot.lane.b32.xlu0 %v2916_v56, %s3713_s16 }
0x3779   :  { %2921 = vrot.lane.b32.xlu0 %v4673_v13, %s3714_s19 }
0x37e7   :  { %v2918_v57 = vpop.permute.xlu0 %2917 }
0x37e8   :  { %2920 = vst.msk [vmem:[#allocation2] sm:$0x3] %vm308_vm5, %v2918_v57 }
0x37eb   :  { %v2922_v60 = vpop.permute.xlu0 %2921 }
0x37ec   :  { %2924 = vst.msk [vmem:[#allocation2] sm:$0x3] %vm314_vm6, %v2922_v60 }
0x37f3   :  { %v2925_v63 = vld [vmem:[#allocation2] sm:$0x3] }
0x37f4   :  { %v2926_v7 = vpack.c.bf16 %v2925_v63, %v2925_v63 }
0x37f6   :  { %3427 = vmatmul.mubr.msk.bf16.vlgmr.msra.gmra.mrb[28].mxu0 %vm354_vm7, %v2926_v7 }
0x38c9   :  { %v2964_v17 = vpop.f32.mrb[28].mxu0 }
0x38ca   :  { %v2965_v28 = vadd.f32 %v4659_v1, %v2964_v17  ;;  %v3428_v29 = vpop.f32.mrb[29].mxu0 }
0x38cb   :  { %v2967_v44 = vpop.f32.mrb[30].mxu0 }
0x38cc   :  { %3636 = vtanh.f32 %v2965_v28  ;;  %v3429_v26 = vpop.f32.mrb[31].mxu0  ;;  %v3154_v13 = vmul.f32 -1.442695, %v2965_v28 }
0x38ce   :  { %3638 = vpow2.f32 %v3154_v13 }
0x38d6   :  { %v3637_v59 = vpop.eup %3636 }
0x38d7   :  { %2979 = vrot.lane.b32.xlu0 %v3637_v59, %s3712_s13 }
0x38d8   :  { %v3639_v62 = vpop.eup %3638 }
0x38d9   :  { %v2973_v11 = vadd.f32 1.0, %v3639_v62 }
0x38db   :  { %3640 = vrcp.f32 %v2973_v11 }
0x38e5   :  { %v3641_v12 = vpop.eup %3640 }
0x38e6   :  { %v2977_v46 = vmul.f32 %v3641_v12, %v4666_v10 }
0x3949   :  { %v2980_v47 = vpop.permute.xlu0 %2979 }
0x394a   :  { %v2982_v2 = vmul.f32 %v3641_v12, %v2980_v47 }
0x394c   :  { %2984 = vrot.lane.b32.xlu0 %v2982_v2, %s3713_s16 }
0x39be   :  { %v2985_v1 = vpop.permute.xlu0 %2984 }
0x39bf   :  { %v2987_v30 = vadd.f32 %v2985_v1, %v2977_v46 }
0x39c1   :  { %3642 = vtanh.f32 %v2987_v30 }
0x39cb   :  { %v3643_v49 = vpop.eup %3642 }
0x39cc   :  { %2990 = vrot.lane.b32.xlu0 %v3643_v49, %s3712_s13  ;;  %s3717_s13 = smov [#allocation3]  }
0x39cd   :  { %s3074_s26 = sshll.u32 %s3717_s13, 4  ;;  %s3075_s26 = int_to_ptr.vmem [resolvable:$true] %s3074_s26 }
0x39ce   :  { %s3662_s30 = scalar_lea.vmem %s3075_s26, 256  ;;  %p3667_p1 = scmp.lt.s32.totalorder %s3075_s26, %s3075_s26 }
0x39cf   :  { %p3663_p0 = scmp.ne.s32.totalorder %s3075_s26, %s3662_s30  ;;  %p3668_p2 = scmp.lt.s32.totalorder %s3662_s30, %s3662_s30 }
0x39d0   :  { %3037 = vperm.xlu0 %3442, %v2994_v32  }
0x39d1   :  { %p3669_p3 = por %p3668_p2, %p3667_p1 }
0x39d3   :  { %p3670_p4 = pnand %p3669_p3, %p3663_p0 }
0x39d4   :  { %479 = vrot.lane.b32.xlu0 %v3970_v20, %s3713_s16 }
0x39d8   :  { %845 = vrot.lane.b32.xlu0 %v4079_v21, %s3713_s16 }
0x39dc   :  { %1579 = vrot.lane.b32.xlu0 %v4336_v41, %s3713_s16 }
0x39e0   :  { %2313 = vrot.lane.b32.xlu0 %v4555_v5, %s3713_s16 }
0x3a3e   :  { %v2991_v10 = vpop.permute.xlu0 %2990 }
0x3a3f   :  { %v2993_v0 = vmul.f32 %v3641_v12, %v2991_v10 }
0x3a41   :  { %v3003_v14 = vrot.slane %v2993_v0, %v3824_v31 }
0x3a43   :  { %v3004_v16 = vcombine.high %v3003_v14, %v3003_v14  ;;  %v3011_v37 = vrot.slane %v3003_v14, %v3824_v31 }
0x3a45   :  { %v3018_v9 = vrot.slane %v3004_v16, %v3824_v31  ;;  %v3022_v20 = vrot.slane %v3011_v37, %v3830_v35 }
0x3a47   :  { %3027 = vrot.lane.b32.xlu0 %v3022_v20, %s3713_s16  ;;  %v3026_v21 = vrot.slane %v3018_v9, %v3830_v35 }
0x3a4b   :  { %3029 = vrot.lane.b32.xlu0 %v3026_v21, %s3713_s16 }
0x3a4f   :  { %3047 = vrot.lane.b32.xlu0 %v2993_v0, %s3713_s16  ;;  %v3038_v41 = vpop.permute.xlu0 %3037 }
0x3a53   :  { %3062 = vrot.lane.b32.xlu0 %v2987_v30, %s3714_s19  ;;  %v480_v5 = vpop.permute.xlu0 %479  ;;  %s3718_s19 = smov [#allocation5]  }
0x3a54   :  { %482 = vst.msk [vmem:[#allocation3] sm:$0x3] %vm300_vm4, %v480_v5  ;;  %s3088_s27 = sshll.u32 %s3718_s19, 4  ;;  %s4787_s27 = int_to_ptr.vmem [resolvable:$true] %s3088_s27 }
0x3a57   :  { %v846_v25 = vpop.permute.xlu0 %845 }
0x3a58   :  { %849 = vst.msk [vmem:[#allocation3 + $0x2] sm:$0x3] %vm300_vm4, %v846_v25 }
0x3a5b   :  { %v1580_v31 = vpop.permute.xlu0 %1579 }
0x3a5c   :  { %1583 = vst.msk [vmem:[#allocation3 + $0x6] sm:$0x3] %vm300_vm4, %v1580_v31 }
0x3a5f   :  { %v2314_v36 = vpop.permute.xlu0 %2313 }
0x3a60   :  { %2317 = vst.msk [vmem:[#allocation3 + $0xa] sm:$0x3] %vm300_vm4, %v2314_v36 }
0x3ab9   :  { %v3028_v35 = vpop.permute.xlu0 %3027 }
0x3aba   :  { %v3033_v61 = vadd.f32 %v3028_v35, %v4689_v43 }
0x3abc   :  { %v3045_v50 = vmul.f32 %v3038_v41, %v3033_v61 }
0x3abd   :  { %v3030_v58 = vpop.permute.xlu0 %3029 }
0x3abe   :  { %3067 = vst.msk [vmem:[#allocation5] sm:$0xff] %vm69_vm1, %v3045_v50  ;;  %v3034_v18 = vadd.f32 %v3030_v58, %v4692_v42 }
0x3ac0   :  { %v3046_v4 = vmul.f32 %v4733_v23, %v3034_v18 }
0x3ac1   :  { %v3048_v22 = vpop.permute.xlu0 %3047 }
0x3ac2   :  { %3068 = vst.msk [vmem:[#allocation5 + $0x8] sm:$0xff] %vm69_vm1, %v3046_v4 }
0x3ac3   :  { %3051 = vst.msk [vmem:[#allocation3 + $0xe] sm:$0x3] %vm300_vm4, %v3048_v22  ;;  %3156 = vst.msk [vmem:[%s4837_s7 + $0x4] sm:$0x3] %vm300_vm4, %v3048_v22 }
0x3ac4   :  { %3673 = shalt.err (!%p3670_p4)
}
0x3ac5   :  { %s3674_s10 = scalar_lea.hbm %s4836_s6, 256 }
0x3ac6   :  { %p3675_p5 = scmp.ne.s32.totalorder %s4836_s6, %s3674_s10  ;;  %p3678_p6 = scmp.lt.u32.totalorder %s3674_s10, %s4836_s6 }
0x3ac8   :  { %p3680_p7 = pnand %p3678_p6, %p3675_p5 }
0x3aca   :  { %3683 = shalt.err (!%p3680_p7)
}
0x3acb   :  { %s3719_s17 = smov 2   ;;  %s3684_s21 = scalar_lea.vmem %s4787_s27, 256 }
0x3acc   :  { %3080 = dma.vmem_to_hbm [thread:$0]  %s3075_s26, 256, %s4836_s6, [#allocation4], %s3713_s16, %s3713_s16, %s3719_s17  }
0x3acd   :  { %p3685_p8 = scmp.ne.s32.totalorder %s4787_s27, %s3684_s21  ;;  %p3689_p9 = scmp.lt.s32.totalorder %s4787_s27, %s4787_s27 }
0x3ace   :  { %p3690_p10 = scmp.lt.s32.totalorder %s3684_s21, %s3684_s21 }
0x3ad0   :  { %p3691_p11 = por %p3690_p10, %p3689_p9 }
0x3ad2   :  { %p3692_p12 = pnand %p3691_p11, %p3685_p8 }
0x3ad4   :  { %3695 = shalt.err (!%p3692_p12)
}
0x3ad5   :  { %s3696_s22 = scalar_lea.hbm %s4838_s8, 256 }
0x3ad6   :  { %p3697_p13 = scmp.ne.s32.totalorder %s4838_s8, %s3696_s22  ;;  %p3700_p0 = scmp.lt.u32.totalorder %s3696_s22, %s4838_s8 }
0x3ad8   :  { %p3702_p1 = pnand %p3700_p0, %p3697_p13 }
0x3ada   :  { %3705 = shalt.err (!%p3702_p1)
}
0x3adb   :  { %s3720_s6 = smov 128   ;;  %s3721_s16 = smov 8   ;;  %v3063_v43 = vpop.permute.xlu0 %3062 }
0x3adc   :  { %3094 = dma.vmem_to_hbm [thread:$0]  %s4787_s27, 256, %s4838_s8, [#allocation6], %s3720_s6, %s3720_s6, %s3721_s16  }
0x3add   :  { %3157 = vst.msk [vmem:[%s4837_s7 + $0x6] sm:$0x3] %vm300_vm4, %v3063_v43 }
0x3ade   :  { %3706 = dma.done.wait [#allocation4], 256  }
0x3adf   :  { %3707 = vsyncadd [#allocation4], 4294967040 }
0x3ae0   :  { %3708 = dma.done.wait [#allocation6], 256  }
0x3ae1   :  { %3709 = vsyncadd [#allocation6], 4294967040 }
0x3ae2   :  { %3103 = vsyncpa [#allocation4], 1 }
0x3ae3   :  { %3104 = vsyncpa [#allocation6], 1 }

</bundles_post_ra>
